<compile_context>
chip_gen: v7x
topology: tpu7x:2x2x1
jax: 0.10.0
libtpu: 0.0.40
codegen_flags: <defaults>
</compile_context>

<pallas_src>
import functools

import jax
import jax.numpy as jnp
from jax import lax
from jax.experimental import pallas as pl
from jax.experimental.pallas import tpu as pltpu


def _router_kernel(x_ref, w_ref, g_ref, gt_ref, s_ref, st_ref, v_ref, *, num_routing):
    """Dynamic routing for one batch tile.

    x_ref  : (in_caps, TB, in_dim)   primary capsules (batch-tiled, in_caps leading)
    w_ref  : (in_caps, in_dim, N*D)  routing weights, one (in_dim, N*D) matrix per in-capsule
    g_ref  : (N*D, N)                0/1: sums a (..., N*D) tensor over dim_caps per capsule
    gt_ref : (N, N*D)                0/1: broadcasts a (..., N) tensor across dim_caps
    s_ref  : (TB, in_caps*TB)        0/1: sums rows ordered (in_cap, batch) over in_caps
    st_ref : (in_caps*TB, TB)        0/1: broadcasts per-batch rows across in_caps
    v_ref  : (TB, N*D)               output capsules (flattened per batch element)
    """
    f32 = jnp.float32
    x = x_ref[...]
    W = w_ref[...]
    G, Gt = g_ref[...], gt_ref[...]
    S, St = s_ref[...], st_ref[...]

    ic, tb, _ = x.shape
    M = W.shape[-1]          # num_caps * dim_caps (lane-dense)
    N = G.shape[-1]          # num_caps
    rows = ic * tb

    # u_hat[i, t, m] = sum_k x[i, t, k] * W[i, k, m]
    # Batched-over-in_caps MXU matmul: reduction on in_dim, lanes carry M = N*D.
    u_hat = jnp.einsum("itk,ikm->itm", x, W, preferred_element_type=f32)
    # Collapse leading dims (minor dim untouched, TB = 8 keeps sublane alignment);
    # rows are ordered (in_cap, batch_in_tile).
    u_hat = u_hat.reshape(rows, M)

    def routed_caps(b):
        # softmax over num_caps (last axis of the (rows, N) logits)
        bm = b - jnp.max(b, axis=-1, keepdims=True)
        e = jnp.exp(bm)
        sc = e / jnp.sum(e, axis=-1, keepdims=True)                    # (rows, N)
        sc_m = jnp.dot(sc, Gt, preferred_element_type=f32)             # (rows, M) bcast over D
        vec = jnp.dot(S, sc_m * u_hat, preferred_element_type=f32)     # (TB, M) sum over in_caps
        s = jnp.dot(vec * vec, G, preferred_element_type=f32)          # (TB, N) ||.||^2 per capsule
        # squash: s/(1+s) * vec / (sqrt(s) + 1e-8)  (torch epsilon placement kept)
        scale = s / ((1.0 + s) * (jnp.sqrt(s) + 1e-8))
        return vec * jnp.dot(scale, Gt, preferred_element_type=f32)    # (TB, M)

    b = jnp.zeros((rows, N), f32)
    for _ in range(num_routing - 1):                                   # small static unroll
        v = routed_caps(b)
        v_rows = jnp.dot(St, v, preferred_element_type=f32)            # (rows, M) bcast over in_caps
        uv = jnp.dot(u_hat * v_rows, G, preferred_element_type=f32)    # (rows, N) agreement
        b = b + uv

    # torch's .detach() only affects gradients; forward values are identical.
    v_ref[...] = routed_caps(b)


def router_forward(W, x, num_routing, *, batch_tile=8):
    """W: (1, num_caps, in_caps, dim_caps, in_dim) (torch param layout) or 4-D without
    the leading 1; x: (B, in_caps, in_dim). Returns v: (B, num_caps, dim_caps)."""
    if W.ndim == 5:
        W = W[0]
    N, I, D, K = W.shape
    B = x.shape[0]
    M = N * D
    TB = batch_tile
    B_pad = ((B + TB - 1) // TB) * TB
    R = I * TB

    # Host-side (plain JAX, fused under jit) layout prep, done once per call.
    x_p = jnp.pad(x.astype(jnp.float32), ((0, B_pad - B), (0, 0), (0, 0)))
    x_t = jnp.transpose(x_p, (1, 0, 2))                                        # (I, B_pad, K)
    W2 = jnp.transpose(W.astype(jnp.float32), (1, 3, 0, 2)).reshape(I, K, M)   # (I, K, N*D)

    # Constant 0/1 grouping matrices (built host-side; kernel needs no integer div).
    caps_of_m = jnp.arange(M, dtype=jnp.int32) // D
    n_ids = jnp.arange(N, dtype=jnp.int32)
    G = (caps_of_m[:, None] == n_ids[None, :]).astype(jnp.float32)   # (M, N)
    Gt = G.T                                                         # (N, M)
    batch_of_r = jnp.arange(R, dtype=jnp.int32) % TB
    t_ids = jnp.arange(TB, dtype=jnp.int32)
    S = (t_ids[:, None] == batch_of_r[None, :]).astype(jnp.float32)  # (TB, R)
    St = S.T                                                         # (R, TB)

    vmem = pltpu.MemorySpace.VMEM
    out = pl.pallas_call(
        functools.partial(_router_kernel, num_routing=num_routing),
        out_shape=jax.ShapeDtypeStruct((B_pad, M), jnp.float32),
        grid=(B_pad // TB,),
        in_specs=[
            pl.BlockSpec((I, TB, K), lambda t: (0, t, 0)),   # batch-tiled x
            pl.BlockSpec(memory_space=vmem),                 # W2: resident, not double-buffered
            pl.BlockSpec(memory_space=vmem),                 # G
            pl.BlockSpec(memory_space=vmem),                 # Gt
            pl.BlockSpec(memory_space=vmem),                 # S
            pl.BlockSpec(memory_space=vmem),                 # St
        ],
        out_specs=pl.BlockSpec((TB, M), lambda t: (t, 0)),   # lane-dense output (M = N*D)
        compiler_params=pltpu.CompilerParams(dimension_semantics=("parallel",)),
    )(x_t, W2, G, Gt, S, St)

    return out[:B].reshape(B, N, D)


def router_reference(W, x, num_routing):
    """Pure-JAX reference matching the PyTorch Router.forward."""
    if W.ndim == 5:
        W = W[0]
    u_hat = jnp.einsum("nidk,bik->bnid", W, x, precision=lax.Precision.HIGHEST)

    def squash(v):
        s = jnp.sum(v * v, axis=-1, keepdims=True)
        return s / (1.0 + s) * v / (jnp.sqrt(s) + 1e-8)

    b = jnp.zeros(u_hat.shape[:3], jnp.float32)          # (B, N, I)
    for _ in range(num_routing - 1):
        sc = jax.nn.softmax(b, axis=1)
        v = squash(jnp.sum(sc[..., None] * u_hat, axis=2))
        b = b + jnp.sum(u_hat * v[:, :, None, :], axis=-1)
    sc = jax.nn.softmax(b, axis=1)
    return squash(jnp.sum(sc[..., None] * u_hat, axis=2))


if __name__ == "__main__":
    in_dim, in_caps, num_caps, dim_caps, num_routing = 8, 32, 10, 16, 3
    batch = 2

    key = jax.random.PRNGKey(0)
    kw, kx = jax.random.split(key)
    # torch: self.W = nn.Parameter(0.01 * torch.randn(1, num_caps, in_caps, dim_caps, in_dim))
    W = 0.01 * jax.random.normal(kw, (1, num_caps, in_caps, dim_caps, in_dim), jnp.float32)
    x = jax.random.normal(kx, (batch, in_caps, in_dim), jnp.float32)

    fwd = jax.jit(functools.partial(router_forward, num_routing=num_routing))
    v = fwd(W, x)
    jax.block_until_ready(v)

    assert v.shape == (batch, num_caps, dim_caps)
    assert bool(jnp.all(jnp.isfinite(v)))

    v_ref = router_reference(W, x, num_routing)
    assert bool(jnp.allclose(v, v_ref, rtol=1e-2, atol=1e-4)), float(
        jnp.max(jnp.abs(v - v_ref)))

    print("KERNEL_OK")
</pallas_src>

<mosaic_0001>
module attributes {stable_mosaic.version = 11 : i64} {
  func.func @_router_kernel(%arg0: i32, %arg1: memref<32x8x8xf32, #tpu.memory_space<vmem>>, %arg2: memref<32x8x160xf32, #tpu.memory_space<vmem>>, %arg3: memref<160x10xf32, #tpu.memory_space<vmem>>, %arg4: memref<10x160xf32, #tpu.memory_space<vmem>>, %arg5: memref<8x256xf32, #tpu.memory_space<vmem>>, %arg6: memref<256x8xf32, #tpu.memory_space<vmem>>, %arg7: memref<8x160xf32, #tpu.memory_space<vmem>>) attributes {dimension_semantics = [#tpu.dimension_semantics<parallel>], iteration_bounds = array<i64: 1>, scalar_prefetch = 0 : i64, scratch_operands = 0 : i64, tpu.core_type = #tpu.core_type<tc>, window_params = [{transform_indices = @transform_0, window_bounds = array<i64: 32, 8, 8>}, {pipeline_mode = #tpu.pipeline_mode<synchronous>, transform_indices = @transform_1, window_bounds = array<i64: 32, 8, 160>}, {pipeline_mode = #tpu.pipeline_mode<synchronous>, transform_indices = @transform_2, window_bounds = array<i64: 160, 10>}, {pipeline_mode = #tpu.pipeline_mode<synchronous>, transform_indices = @transform_3, window_bounds = array<i64: 10, 160>}, {pipeline_mode = #tpu.pipeline_mode<synchronous>, transform_indices = @transform_4, window_bounds = array<i64: 8, 256>}, {pipeline_mode = #tpu.pipeline_mode<synchronous>, transform_indices = @transform_5, window_bounds = array<i64: 256, 8>}, {transform_indices = @transform_6, window_bounds = array<i64: 8, 160>}]} {
    %c0 = arith.constant 0 : index
    %c0_0 = arith.constant 0 : index
    %c0_1 = arith.constant 0 : index
    %0 = vector.load %arg1[%c0, %c0_0, %c0_1] : memref<32x8x8xf32, #tpu.memory_space<vmem>>, vector<32x8x8xf32>
    %c0_2 = arith.constant 0 : index
    %c0_3 = arith.constant 0 : index
    %c0_4 = arith.constant 0 : index
    %1 = vector.load %arg2[%c0_2, %c0_3, %c0_4] : memref<32x8x160xf32, #tpu.memory_space<vmem>>, vector<32x8x160xf32>
    %c0_5 = arith.constant 0 : index
    %c0_6 = arith.constant 0 : index
    %2 = vector.load %arg3[%c0_5, %c0_6] : memref<160x10xf32, #tpu.memory_space<vmem>>, vector<160x10xf32>
    %c0_7 = arith.constant 0 : index
    %c0_8 = arith.constant 0 : index
    %3 = vector.load %arg4[%c0_7, %c0_8] : memref<10x160xf32, #tpu.memory_space<vmem>>, vector<10x160xf32>
    %c0_9 = arith.constant 0 : index
    %c0_10 = arith.constant 0 : index
    %4 = vector.load %arg5[%c0_9, %c0_10] : memref<8x256xf32, #tpu.memory_space<vmem>>, vector<8x256xf32>
    %c0_11 = arith.constant 0 : index
    %c0_12 = arith.constant 0 : index
    %5 = vector.load %arg6[%c0_11, %c0_12] : memref<256x8xf32, #tpu.memory_space<vmem>>, vector<256x8xf32>
    "tpu.trace_start"() <{level = 10 : i32, message = "itk,ikm->itm"}> : () -> ()
    %cst = arith.constant dense<0.000000e+00> : vector<32x8x160xf32>
    %6 = tpu.matmul %0, %1, %cst {dimension_numbers = #tpu.dot_dimension_numbers<[2], [1], [1], [2], [0, 0, 0, 1, 1, 2], [0], [0]>} : vector<32x8x8xf32>, vector<32x8x160xf32>, vector<32x8x160xf32> -> vector<32x8x160xf32>
    "tpu.trace_stop"() : () -> ()
    %7 = vector.shape_cast %6 : vector<32x8x160xf32> to vector<256x160xf32>
    %cst_13 = arith.constant 0.000000e+00 : f32
    %8 = vector.broadcast %cst_13 : f32 to vector<256x10xf32>
    %cst_14 = arith.constant dense<0xFF800000> : vector<256xf32>
    %9 = vector.multi_reduction <maximumf>, %8, %cst_14 [1] : vector<256x10xf32> to vector<256xf32>
    %10 = vector.shape_cast %9 : vector<256xf32> to vector<256x1xf32>
    %11 = vector.broadcast %10 : vector<256x1xf32> to vector<256x10xf32>
    %12 = arith.subf %8, %11 : vector<256x10xf32>
    %13 = math.exp %12 : vector<256x10xf32>
    %cst_15 = arith.constant dense<0.000000e+00> : vector<256xf32>
    %14 = vector.multi_reduction <add>, %13, %cst_15 [1] : vector<256x10xf32> to vector<256xf32>
    %15 = vector.shape_cast %14 : vector<256xf32> to vector<256x1xf32>
    %16 = vector.broadcast %15 : vector<256x1xf32> to vector<256x10xf32>
    %17 = arith.divf %13, %16 : vector<256x10xf32>
    %cst_16 = arith.constant dense<0.000000e+00> : vector<256x160xf32>
    %18 = tpu.matmul %17, %3, %cst_16 {dimension_numbers = #tpu.dot_dimension_numbers<[1], [0], [0], [1], [0, 0, 1, 1], [], []>} : vector<256x10xf32>, vector<10x160xf32>, vector<256x160xf32> -> vector<256x160xf32>
    %19 = arith.mulf %18, %7 : vector<256x160xf32>
    %cst_17 = arith.constant dense<0.000000e+00> : vector<8x160xf32>
    %20 = tpu.matmul %4, %19, %cst_17 {dimension_numbers = #tpu.dot_dimension_numbers<[1], [0], [0], [1], [0, 0, 1, 1], [], []>} : vector<8x256xf32>, vector<256x160xf32>, vector<8x160xf32> -> vector<8x160xf32>
    %21 = arith.mulf %20, %20 : vector<8x160xf32>
    %cst_18 = arith.constant dense<0.000000e+00> : vector<8x10xf32>
    %22 = tpu.matmul %21, %2, %cst_18 {dimension_numbers = #tpu.dot_dimension_numbers<[1], [0], [0], [1], [0, 0, 1, 1], [], []>} : vector<8x160xf32>, vector<160x10xf32>, vector<8x10xf32> -> vector<8x10xf32>
    %cst_19 = arith.constant 1.000000e+00 : f32
    %23 = vector.broadcast %cst_19 : f32 to vector<8x10xf32>
    %24 = arith.addf %23, %22 : vector<8x10xf32>
    %25 = math.sqrt %22 : vector<8x10xf32>
    %cst_20 = arith.constant 9.99999993E-9 : f32
    %26 = vector.broadcast %cst_20 : f32 to vector<8x10xf32>
    %27 = arith.addf %25, %26 : vector<8x10xf32>
    %28 = arith.mulf %24, %27 : vector<8x10xf32>
    %29 = arith.divf %22, %28 : vector<8x10xf32>
    %cst_21 = arith.constant dense<0.000000e+00> : vector<8x160xf32>
    %30 = tpu.matmul %29, %3, %cst_21 {dimension_numbers = #tpu.dot_dimension_numbers<[1], [0], [0], [1], [0, 0, 1, 1], [], []>} : vector<8x10xf32>, vector<10x160xf32>, vector<8x160xf32> -> vector<8x160xf32>
    %31 = arith.mulf %20, %30 : vector<8x160xf32>
    %cst_22 = arith.constant dense<0.000000e+00> : vector<256x160xf32>
    %32 = tpu.matmul %5, %31, %cst_22 {dimension_numbers = #tpu.dot_dimension_numbers<[1], [0], [0], [1], [0, 0, 1, 1], [], []>} : vector<256x8xf32>, vector<8x160xf32>, vector<256x160xf32> -> vector<256x160xf32>
    %33 = arith.mulf %7, %32 : vector<256x160xf32>
    %cst_23 = arith.constant dense<0.000000e+00> : vector<256x10xf32>
    %34 = tpu.matmul %33, %2, %cst_23 {dimension_numbers = #tpu.dot_dimension_numbers<[1], [0], [0], [1], [0, 0, 1, 1], [], []>} : vector<256x160xf32>, vector<160x10xf32>, vector<256x10xf32> -> vector<256x10xf32>
    %35 = arith.addf %8, %34 : vector<256x10xf32>
    %cst_24 = arith.constant dense<0xFF800000> : vector<256xf32>
    %36 = vector.multi_reduction <maximumf>, %35, %cst_24 [1] : vector<256x10xf32> to vector<256xf32>
    %37 = vector.shape_cast %36 : vector<256xf32> to vector<256x1xf32>
    %38 = vector.broadcast %37 : vector<256x1xf32> to vector<256x10xf32>
    %39 = arith.subf %35, %38 : vector<256x10xf32>
    %40 = math.exp %39 : vector<256x10xf32>
    %cst_25 = arith.constant dense<0.000000e+00> : vector<256xf32>
    %41 = vector.multi_reduction <add>, %40, %cst_25 [1] : vector<256x10xf32> to vector<256xf32>
    %42 = vector.shape_cast %41 : vector<256xf32> to vector<256x1xf32>
    %43 = vector.broadcast %42 : vector<256x1xf32> to vector<256x10xf32>
    %44 = arith.divf %40, %43 : vector<256x10xf32>
    %cst_26 = arith.constant dense<0.000000e+00> : vector<256x160xf32>
    %45 = tpu.matmul %44, %3, %cst_26 {dimension_numbers = #tpu.dot_dimension_numbers<[1], [0], [0], [1], [0, 0, 1, 1], [], []>} : vector<256x10xf32>, vector<10x160xf32>, vector<256x160xf32> -> vector<256x160xf32>
    %46 = arith.mulf %45, %7 : vector<256x160xf32>
    %cst_27 = arith.constant dense<0.000000e+00> : vector<8x160xf32>
    %47 = tpu.matmul %4, %46, %cst_27 {dimension_numbers = #tpu.dot_dimension_numbers<[1], [0], [0], [1], [0, 0, 1, 1], [], []>} : vector<8x256xf32>, vector<256x160xf32>, vector<8x160xf32> -> vector<8x160xf32>
    %48 = arith.mulf %47, %47 : vector<8x160xf32>
    %cst_28 = arith.constant dense<0.000000e+00> : vector<8x10xf32>
    %49 = tpu.matmul %48, %2, %cst_28 {dimension_numbers = #tpu.dot_dimension_numbers<[1], [0], [0], [1], [0, 0, 1, 1], [], []>} : vector<8x160xf32>, vector<160x10xf32>, vector<8x10xf32> -> vector<8x10xf32>
    %cst_29 = arith.constant 1.000000e+00 : f32
    %50 = vector.broadcast %cst_29 : f32 to vector<8x10xf32>
    %51 = arith.addf %50, %49 : vector<8x10xf32>
    %52 = math.sqrt %49 : vector<8x10xf32>
    %cst_30 = arith.constant 9.99999993E-9 : f32
    %53 = vector.broadcast %cst_30 : f32 to vector<8x10xf32>
    %54 = arith.addf %52, %53 : vector<8x10xf32>
    %55 = arith.mulf %51, %54 : vector<8x10xf32>
    %56 = arith.divf %49, %55 : vector<8x10xf32>
    %cst_31 = arith.constant dense<0.000000e+00> : vector<8x160xf32>
    %57 = tpu.matmul %56, %3, %cst_31 {dimension_numbers = #tpu.dot_dimension_numbers<[1], [0], [0], [1], [0, 0, 1, 1], [], []>} : vector<8x10xf32>, vector<10x160xf32>, vector<8x160xf32> -> vector<8x160xf32>
    %58 = arith.mulf %47, %57 : vector<8x160xf32>
    %cst_32 = arith.constant dense<0.000000e+00> : vector<256x160xf32>
    %59 = tpu.matmul %5, %58, %cst_32 {dimension_numbers = #tpu.dot_dimension_numbers<[1], [0], [0], [1], [0, 0, 1, 1], [], []>} : vector<256x8xf32>, vector<8x160xf32>, vector<256x160xf32> -> vector<256x160xf32>
    %60 = arith.mulf %7, %59 : vector<256x160xf32>
    %cst_33 = arith.constant dense<0.000000e+00> : vector<256x10xf32>
    %61 = tpu.matmul %60, %2, %cst_33 {dimension_numbers = #tpu.dot_dimension_numbers<[1], [0], [0], [1], [0, 0, 1, 1], [], []>} : vector<256x160xf32>, vector<160x10xf32>, vector<256x10xf32> -> vector<256x10xf32>
    %62 = arith.addf %35, %61 : vector<256x10xf32>
    %cst_34 = arith.constant dense<0xFF800000> : vector<256xf32>
    %63 = vector.multi_reduction <maximumf>, %62, %cst_34 [1] : vector<256x10xf32> to vector<256xf32>
    %64 = vector.shape_cast %63 : vector<256xf32> to vector<256x1xf32>
    %65 = vector.broadcast %64 : vector<256x1xf32> to vector<256x10xf32>
    %66 = arith.subf %62, %65 : vector<256x10xf32>
    %67 = math.exp %66 : vector<256x10xf32>
    %cst_35 = arith.constant dense<0.000000e+00> : vector<256xf32>
    %68 = vector.multi_reduction <add>, %67, %cst_35 [1] : vector<256x10xf32> to vector<256xf32>
    %69 = vector.shape_cast %68 : vector<256xf32> to vector<256x1xf32>
    %70 = vector.broadcast %69 : vector<256x1xf32> to vector<256x10xf32>
    %71 = arith.divf %67, %70 : vector<256x10xf32>
    %cst_36 = arith.constant dense<0.000000e+00> : vector<256x160xf32>
    %72 = tpu.matmul %71, %3, %cst_36 {dimension_numbers = #tpu.dot_dimension_numbers<[1], [0], [0], [1], [0, 0, 1, 1], [], []>} : vector<256x10xf32>, vector<10x160xf32>, vector<256x160xf32> -> vector<256x160xf32>
    %73 = arith.mulf %72, %7 : vector<256x160xf32>
    %cst_37 = arith.constant dense<0.000000e+00> : vector<8x160xf32>
    %74 = tpu.matmul %4, %73, %cst_37 {dimension_numbers = #tpu.dot_dimension_numbers<[1], [0], [0], [1], [0, 0, 1, 1], [], []>} : vector<8x256xf32>, vector<256x160xf32>, vector<8x160xf32> -> vector<8x160xf32>
    %75 = arith.mulf %74, %74 : vector<8x160xf32>
    %cst_38 = arith.constant dense<0.000000e+00> : vector<8x10xf32>
    %76 = tpu.matmul %75, %2, %cst_38 {dimension_numbers = #tpu.dot_dimension_numbers<[1], [0], [0], [1], [0, 0, 1, 1], [], []>} : vector<8x160xf32>, vector<160x10xf32>, vector<8x10xf32> -> vector<8x10xf32>
    %cst_39 = arith.constant 1.000000e+00 : f32
    %77 = vector.broadcast %cst_39 : f32 to vector<8x10xf32>
    %78 = arith.addf %77, %76 : vector<8x10xf32>
    %79 = math.sqrt %76 : vector<8x10xf32>
    %cst_40 = arith.constant 9.99999993E-9 : f32
    %80 = vector.broadcast %cst_40 : f32 to vector<8x10xf32>
    %81 = arith.addf %79, %80 : vector<8x10xf32>
    %82 = arith.mulf %78, %81 : vector<8x10xf32>
    %83 = arith.divf %76, %82 : vector<8x10xf32>
    %cst_41 = arith.constant dense<0.000000e+00> : vector<8x160xf32>
    %84 = tpu.matmul %83, %3, %cst_41 {dimension_numbers = #tpu.dot_dimension_numbers<[1], [0], [0], [1], [0, 0, 1, 1], [], []>} : vector<8x10xf32>, vector<10x160xf32>, vector<8x160xf32> -> vector<8x160xf32>
    %85 = arith.mulf %74, %84 : vector<8x160xf32>
    %c0_42 = arith.constant 0 : index
    %c0_43 = arith.constant 0 : index
    %86 = vector.load %arg7[%c0_42, %c0_43] : memref<8x160xf32, #tpu.memory_space<vmem>>, vector<8x160xf32>
    tpu.vector_store %arg7[%c0_42, %c0_43], %85 {strides = array<i32>} : memref<8x160xf32, #tpu.memory_space<vmem>>, vector<8x160xf32>,
    return
  }
  func.func @transform_0(%arg0: i32) -> (i32, i32, i32) {
    %c0_i32 = arith.constant 0 : i32
    %c0_i32_0 = arith.constant 0 : i32
    %c0_i32_1 = arith.constant 0 : i32
    return %c0_i32, %arg0, %c0_i32_0 : i32, i32, i32
  }
  func.func @transform_1(%arg0: i32) -> (i32, i32, i32) {
    %c0_i32 = arith.constant 0 : i32
    %c0_i32_0 = arith.constant 0 : i32
    %c0_i32_1 = arith.constant 0 : i32
    %c0_i32_2 = arith.constant 0 : i32
    return %c0_i32, %c0_i32_0, %c0_i32_1 : i32, i32, i32
  }
  func.func @transform_2(%arg0: i32) -> (i32, i32) {
    %c0_i32 = arith.constant 0 : i32
    %c0_i32_0 = arith.constant 0 : i32
    %c0_i32_1 = arith.constant 0 : i32
    return %c0_i32, %c0_i32_0 : i32, i32
  }
  func.func @transform_3(%arg0: i32) -> (i32, i32) {
    %c0_i32 = arith.constant 0 : i32
    %c0_i32_0 = arith.constant 0 : i32
    %c0_i32_1 = arith.constant 0 : i32
    return %c0_i32, %c0_i32_0 : i32, i32
  }
  func.func @transform_4(%arg0: i32) -> (i32, i32) {
    %c0_i32 = arith.constant 0 : i32
    %c0_i32_0 = arith.constant 0 : i32
    %c0_i32_1 = arith.constant 0 : i32
    return %c0_i32, %c0_i32_0 : i32, i32
  }
  func.func @transform_5(%arg0: i32) -> (i32, i32) {
    %c0_i32 = arith.constant 0 : i32
    %c0_i32_0 = arith.constant 0 : i32
    %c0_i32_1 = arith.constant 0 : i32
    return %c0_i32, %c0_i32_0 : i32, i32
  }
  func.func @transform_6(%arg0: i32) -> (i32, i32) {
    %c0_i32 = arith.constant 0 : i32
    %c0_i32_0 = arith.constant 0 : i32
    return %arg0, %c0_i32 : i32, i32
  }
}

</mosaic_0001>

<bundles_post_ra>
// kernel: router_forward.1
= control target key start
LH: loop header
LB: loop body
LE: loop exit
PB: predicated region body
PF: predicated region fallthrough
CT: control target
= control target key end

     0   :  { %vm2546_vm0 = vcmask 80896   ;;  %v9942_v0 = vmov 0.0   ;;  %vm177_vm1 = vcmask 64512   ;;  %vm2555_vm2 = vcmask 1041408   ;;  %s9935_s1 = inlined_call_operand.vmem [shape: f32[32,8,160], index: 1, kind: input, shape index: {}]   ;;  %s9936_s0 = inlined_call_operand.vmem [shape: f32[32,8,8], index: 0, kind: input, shape index: {}]   ;;  %s9937_s3 = inlined_call_operand.vmem [shape: f32[10,160], index: 3, kind: input, shape index: {}]   ;;  %s9938_s4 = inlined_call_operand.vmem [shape: f32[8,256], index: 4, kind: input, shape index: {}]   ;;  %s9939_s2 = inlined_call_operand.vmem [shape: f32[160,10], index: 2, kind: input, shape index: {}]   ;;  %s9940_s5 = inlined_call_operand.vmem [shape: f32[256,8], index: 5, kind: input, shape index: {}]   ;;  %s9941_s6 = inlined_call_operand.vmem [shape: f32[8,160], index: 6, kind: output, shape index: {}]  }
   0x1   :  { %v2547_v1 = vsel %vm2546_vm0, 1.0, %v9942_v0  ;;  %v56_v2 = vld [vmem:[%s9935_s1 + $0x8] sm:$0xff]  ;;  %v55_v3 = vld [vmem:[%s9935_s1] sm:$0xff]  ;;  %245 = vmatprep.mubr.f32.mxu0 %v9942_v0  ;;  %319 = vmatprep.mubr.f32.mxu1 %v9942_v0  ;;  %v25_v8 = vld [vmem:[%s9936_s0 + $0x10] sm:$0xff]  ;;  %vm7524_vm3 = vmmov 1   ;;  %vm2956_vm5 = vcmask 261120  }
   0x2   :  { %v23_v4 = vld [vmem:[%s9936_s0] sm:$0xff]  ;;  %2548 = vadd.xlane.f32.xlu0 %v2547_v1  ;;  %181 = vmatprep.subr.mxu0 %v56_v2  ;;  %v60_v5 = vld [vmem:[%s9935_s1 + $0x28] sm:$0xff]  ;;  %v29_v14 = vld [vmem:[%s9936_s0 + $0x30] sm:$0xff] }
   0x3   :  { %v59_v6 = vld [vmem:[%s9935_s1 + $0x20] sm:$0xff]  ;;  %182 = vmatpush1.msra.mxu0 %v55_v3  ;;  %v64_v7 = vld [vmem:[%s9935_s1 + $0x48] sm:$0xff]  ;;  %v33_v20 = vld [vmem:[%s9936_s0 + $0x50] sm:$0xff]  ;;  %v10132_v3 = vmov 0 }
   0x4   :  { %6542 = vmatmul.mubr.msk.f32.vlgmr.msra.gmra.mrb[0].mxu0 %vm177_vm1, %v23_v4  ;;  %329 = vmatprep.subr.mxu0 %v60_v5  ;;  %v63_v9 = vld [vmem:[%s9935_s1 + $0x40] sm:$0xff]  ;;  %v68_v10 = vld [vmem:[%s9935_s1 + $0x68] sm:$0xff]  ;;  %v58_v26 = vld [vmem:[%s9935_s1 + $0x18] sm:$0xff] }
   0x5   :  { %330 = vmatpush1.msra.mxu0 %v59_v6  ;;  %393 = vmatprep.mubr.f32.mxu0 %v9942_v0  ;;  %v27_v11 = vld [vmem:[%s9936_s0 + $0x20] sm:$0xff]  ;;  %v72_v13 = vld [vmem:[%s9935_s1 + $0x88] sm:$0xff]  ;;  %v57_v27 = vld [vmem:[%s9935_s1 + $0x10] sm:$0xff] }
   0x6   :  { %477 = vmatprep.subr.mxu0 %v64_v7  ;;  %v67_v12 = vld [vmem:[%s9935_s1 + $0x60] sm:$0xff]  ;;  %v76_v16 = vld [vmem:[%s9935_s1 + $0xa8] sm:$0xff]  ;;  %255 = vmatprep.subr.mxu1 %v58_v26  ;;  %v37_v29 = vld [vmem:[%s9936_s0 + $0x70] sm:$0xff] }
   0x7   :  { %v71_v15 = vld [vmem:[%s9935_s1 + $0x80] sm:$0xff]  ;;  %v80_v19 = vld [vmem:[%s9935_s1 + $0xc8] sm:$0xff]  ;;  %256 = vmatpush1.msra.mxu1 %v57_v27  ;;  %v62_v35 = vld [vmem:[%s9935_s1 + $0x38] sm:$0xff] }
   0x8   :  { %6544 = vmatmul.mubr.msk.f32.vlgmr.msra.gmra.mrb[2].mxu0 %vm177_vm1, %v25_v8  ;;  %v31_v17 = vld [vmem:[%s9936_s0 + $0x40] sm:$0xff]  ;;  %v84_v22 = vld [vmem:[%s9935_s1 + $0xe8] sm:$0xff]  ;;  %v61_v36 = vld [vmem:[%s9935_s1 + $0x30] sm:$0xff]  ;;  %403 = vmatprep.subr.mxu1 %v62_v35 }
   0x9   :  { %478 = vmatpush1.msra.mxu0 %v63_v9  ;;  %541 = vmatprep.mubr.f32.mxu0 %v9942_v0  ;;  %v75_v18 = vld [vmem:[%s9935_s1 + $0xa0] sm:$0xff]  ;;  %v88_v25 = vld [vmem:[%s9935_s1 + $0x108] sm:$0xff]  ;;  %v26_v37 = vld [vmem:[%s9936_s0 + $0x18] sm:$0xff] }
   0xa   :  { %625 = vmatprep.subr.mxu0 %v68_v10  ;;  %v79_v21 = vld [vmem:[%s9935_s1 + $0xc0] sm:$0xff]  ;;  %v24_v28 = vld [vmem:[%s9936_s0 + $0x8] sm:$0xff]  ;;  %v41_v38 = vld [vmem:[%s9936_s0 + $0x90] sm:$0xff] }
   0xb   :  { %v35_v23 = vld [vmem:[%s9936_s0 + $0x60] sm:$0xff]  ;;  %v92_v31 = vld [vmem:[%s9935_s1 + $0x128] sm:$0xff]  ;;  %6543 = vmatmul.mubr.msk.f32.vlgmr.msra.gmra.mrb[0].mxu1 %vm177_vm1, %v24_v28  ;;  %v66_v44 = vld [vmem:[%s9935_s1 + $0x58] sm:$0xff] }
   0xc   :  { %6546 = vmatmul.mubr.msk.f32.vlgmr.msra.gmra.mrb[4].mxu0 %vm177_vm1, %v27_v11  ;;  %v83_v24 = vld [vmem:[%s9935_s1 + $0xe0] sm:$0xff]  ;;  %467 = vmatprep.mubr.f32.mxu1 %v9942_v0  ;;  %v96_v34 = vld [vmem:[%s9935_s1 + $0x148] sm:$0xff]  ;;  %v65_v45 = vld [vmem:[%s9935_s1 + $0x50] sm:$0xff] }
   0xd   :  { %626 = vmatpush1.msra.mxu0 %v67_v12  ;;  %689 = vmatprep.mubr.f32.mxu0 %v9942_v0  ;;  %v87_v30 = vld [vmem:[%s9935_s1 + $0x100] sm:$0xff]  ;;  %v100_v40 = vld [vmem:[%s9935_s1 + $0x168] sm:$0xff]  ;;  %v45_v47 = vld [vmem:[%s9936_s0 + $0xb0] sm:$0xff] }
   0xe   :  { %773 = vmatprep.subr.mxu0 %v72_v13  ;;  %v39_v32 = vld [vmem:[%s9936_s0 + $0x80] sm:$0xff]  ;;  %404 = vmatpush1.msra.mxu1 %v61_v36  ;;  %v104_v43 = vld [vmem:[%s9935_s1 + $0x188] sm:$0xff]  ;;  %v70_v53 = vld [vmem:[%s9935_s1 + $0x78] sm:$0xff] }
   0xf   :  { %v91_v33 = vld [vmem:[%s9935_s1 + $0x120] sm:$0xff]  ;;  %6545 = vmatmul.mubr.msk.f32.vlgmr.msra.gmra.mrb[2].mxu1 %vm177_vm1, %v26_v37  ;;  %551 = vmatprep.subr.mxu1 %v66_v44  ;;  %v28_v46 = vld [vmem:[%s9936_s0 + $0x28] sm:$0xff]  ;;  %v69_v54 = vld [vmem:[%s9935_s1 + $0x70] sm:$0xff] }
  0x10   :  { %6548 = vmatmul.mubr.msk.f32.vlgmr.msra.gmra.mrb[6].mxu0 %vm177_vm1, %v29_v14  ;;  %v95_v39 = vld [vmem:[%s9935_s1 + $0x140] sm:$0xff]  ;;  %615 = vmatprep.mubr.f32.mxu1 %v9942_v0  ;;  %v108_v49 = vld [vmem:[%s9935_s1 + $0x1a8] sm:$0xff]  ;;  %v30_v55 = vld [vmem:[%s9936_s0 + $0x38] sm:$0xff] }
  0x11   :  { %774 = vmatpush1.msra.mxu0 %v71_v15  ;;  %837 = vmatprep.mubr.f32.mxu0 %v9942_v0  ;;  %v43_v41 = vld [vmem:[%s9936_s0 + $0xa0] sm:$0xff]  ;;  %v112_v52 = vld [vmem:[%s9935_s1 + $0x1c8] sm:$0xff]  ;;  %v49_v56 = vld [vmem:[%s9936_s0 + $0xd0] sm:$0xff] }
  0x12   :  { %921 = vmatprep.subr.mxu0 %v76_v16  ;;  %v99_v42 = vld [vmem:[%s9935_s1 + $0x160] sm:$0xff]  ;;  %552 = vmatpush1.msra.mxu1 %v65_v45  ;;  %v116_v58 = vld [vmem:[%s9935_s1 + $0x1e8] sm:$0xff]  ;;  %v142_v60 = vld [vmem:[%s9937_s3 + $0x18] sm:$0x3] }
  0x13   :  { %v103_v48 = vld [vmem:[%s9935_s1 + $0x180] sm:$0xff]  ;;  %6547 = vmatmul.mubr.msk.f32.vlgmr.msra.gmra.mrb[4].mxu1 %vm177_vm1, %v28_v46  ;;  %699 = vmatprep.subr.mxu1 %v70_v53  ;;  %v140_v59 = vld [vmem:[%s9937_s3 + $0x8] sm:$0xff]  ;;  %v141_v2 = vld [vmem:[%s9937_s3 + $0x10] sm:$0x3] }
  0x14   :  { %6550 = vmatmul.mubr.msk.f32.vlgmr.msra.gmra.mrb[8].mxu0 %vm177_vm1, %v31_v17  ;;  %763 = vmatprep.mubr.f32.mxu1 %v9942_v0  ;;  %v47_v50 = vld [vmem:[%s9936_s0 + $0xc0] sm:$0xff]  ;;  %v7784_v63 = vpack.c.bf16 %v142_v60, %v140_v59  ;;  %vm7792_vm4 = vmpackc.low %vm2555_vm2, %vm7524_vm3  ;;  %v74_v4 = vld [vmem:[%s9935_s1 + $0x98] sm:$0xff] }
  0x15   :  { %922 = vmatpush1.msra.mxu0 %v75_v18  ;;  %985 = vmatprep.mubr.f32.mxu0 %v9942_v0  ;;  %v107_v51 = vld [vmem:[%s9935_s1 + $0x1a0] sm:$0xff]  ;;  %v10133_v3 = vsel %vm7792_vm4, 4294967295, %v10132_v3  ;;  %v73_v5 = vld [vmem:[%s9935_s1 + $0x90] sm:$0xff]  ;;  %v32_v6 = vld [vmem:[%s9936_s0 + $0x48] sm:$0xff] }
  0x16   :  { %1069 = vmatprep.subr.mxu0 %v80_v19  ;;  %v111_v57 = vld [vmem:[%s9935_s1 + $0x1c0] sm:$0xff]  ;;  %700 = vmatpush1.msra.mxu1 %v69_v54  ;;  %10131 = vst [vmem:[#allocation2_spill] sm:$0xff] %v7784_v63  ;;  %10134 = vst [vmem:[#allocation3_spill] sm:$0xff] %v10133_v3  ;;  %v53_v7 = vld [vmem:[%s9936_s0 + $0xf0] sm:$0xff] }
  0x17   :  { %6549 = vmatmul.mubr.msk.f32.vlgmr.msra.gmra.mrb[6].mxu1 %vm177_vm1, %v30_v55  ;;  %v51_v61 = vld [vmem:[%s9936_s0 + $0xe0] sm:$0xff]  ;;  %847 = vmatprep.subr.mxu1 %v74_v4  ;;  %v78_v9 = vld [vmem:[%s9935_s1 + $0xb8] sm:$0xff]  ;;  %v77_v10 = vld [vmem:[%s9935_s1 + $0xb0] sm:$0xff] }
  0x18   :  { %6552 = vmatmul.mubr.msk.f32.vlgmr.msra.gmra.mrb[10].mxu0 %vm177_vm1, %v33_v20  ;;  %911 = vmatprep.mubr.f32.mxu1 %v9942_v0  ;;  %v115_v62 = vld [vmem:[%s9935_s1 + $0x1e0] sm:$0xff]  ;;  %v34_v11 = vld [vmem:[%s9936_s0 + $0x58] sm:$0xff]  ;;  %v81_v13 = vld [vmem:[%s9935_s1 + $0xd0] sm:$0xff] }
  0x19   :  { %1070 = vmatpush1.msra.mxu0 %v79_v21  ;;  %1133 = vmatprep.mubr.f32.mxu0 %v9942_v0  ;;  %v139_v1 = vld [vmem:[%s9937_s3] sm:$0xff]  ;;  %v82_v12 = vld [vmem:[%s9935_s1 + $0xd8] sm:$0xff]  ;;  %v36_v14 = vld [vmem:[%s9936_s0 + $0x68] sm:$0xff] }
  0x1a   :  { %1217 = vmatprep.subr.mxu0 %v84_v22  ;;  %v7810_v8 = vpack.c.bf16 %v141_v2, %v139_v1  ;;  %848 = vmatpush1.msra.mxu1 %v73_v5  ;;  %v86_v15 = vld [vmem:[%s9935_s1 + $0xf8] sm:$0xff]  ;;  %v85_v16 = vld [vmem:[%s9935_s1 + $0xf0] sm:$0xff]  ;;  %v40_v20 = vld [vmem:[%s9936_s0 + $0x88] sm:$0xff] }
  0x1b   :  { %6551 = vmatmul.mubr.msk.f32.vlgmr.msra.gmra.mrb[8].mxu1 %vm177_vm1, %v32_v6  ;;  %995 = vmatprep.subr.mxu1 %v78_v9  ;;  %v38_v17 = vld [vmem:[%s9936_s0 + $0x78] sm:$0xff]  ;;  %v89_v19 = vld [vmem:[%s9935_s1 + $0x110] sm:$0xff]  ;;  %v44_v26 = vld [vmem:[%s9936_s0 + $0xa8] sm:$0xff] }
  0x1c   :  { %6554 = vmatmul.mubr.msk.f32.vlgmr.msra.gmra.mrb[12].mxu0 %vm177_vm1, %v35_v23  ;;  %10135 = vst [vmem:[#allocation4_spill] sm:$0xff] %v7810_v8  ;;  %1059 = vmatprep.mubr.f32.mxu1 %v9942_v0  ;;  %v90_v18 = vld [vmem:[%s9935_s1 + $0x118] sm:$0xff]  ;;  %v93_v22 = vld [vmem:[%s9935_s1 + $0x130] sm:$0xff] }
  0x1d   :  { %1218 = vmatpush1.msra.mxu0 %v83_v24  ;;  %1281 = vmatprep.mubr.f32.mxu0 %v9942_v0  ;;  %v94_v21 = vld [vmem:[%s9935_s1 + $0x138] sm:$0xff]  ;;  %v101_v28 = vld [vmem:[%s9935_s1 + $0x170] sm:$0xff] }
  0x1e   :  { %1365 = vmatprep.subr.mxu0 %v88_v25  ;;  %996 = vmatpush1.msra.mxu1 %v77_v10  ;;  %v42_v23 = vld [vmem:[%s9936_s0 + $0x98] sm:$0xff]  ;;  %v97_v25 = vld [vmem:[%s9935_s1 + $0x150] sm:$0xff] }
  0x1f   :  { %6553 = vmatmul.mubr.msk.f32.vlgmr.msra.gmra.mrb[10].mxu1 %vm177_vm1, %v34_v11  ;;  %1143 = vmatprep.subr.mxu1 %v82_v12  ;;  %v98_v24 = vld [vmem:[%s9935_s1 + $0x158] sm:$0xff]  ;;  %v113_v37 = vld [vmem:[%s9935_s1 + $0x1d0] sm:$0xff] }
  0x20   :  { %6556 = vmatmul.mubr.msk.f32.vlgmr.msra.gmra.mrb[14].mxu0 %vm177_vm1, %v37_v29  ;;  %1207 = vmatprep.mubr.f32.mxu1 %v9942_v0  ;;  %v102_v27 = vld [vmem:[%s9935_s1 + $0x178] sm:$0xff] }
  0x21   :  { %1366 = vmatpush1.msra.mxu0 %v87_v30  ;;  %1429 = vmatprep.mubr.f32.mxu0 %v9942_v0  ;;  %v46_v29 = vld [vmem:[%s9936_s0 + $0xb8] sm:$0xff] }
  0x22   :  { %1513 = vmatprep.subr.mxu0 %v92_v31  ;;  %1144 = vmatpush1.msra.mxu1 %v81_v13  ;;  %v106_v30 = vld [vmem:[%s9935_s1 + $0x198] sm:$0xff]  ;;  %v105_v31 = vld [vmem:[%s9935_s1 + $0x190] sm:$0xff] }
  0x23   :  { %6555 = vmatmul.mubr.msk.f32.vlgmr.msra.gmra.mrb[12].mxu1 %vm177_vm1, %v36_v14  ;;  %1291 = vmatprep.subr.mxu1 %v86_v15  ;;  %v50_v35 = vld [vmem:[%s9936_s0 + $0xd8] sm:$0xff] }
  0x24   :  { %6558 = vmatmul.mubr.msk.f32.vlgmr.msra.gmra.mrb[16].mxu0 %vm177_vm1, %v39_v32  ;;  %1355 = vmatprep.mubr.f32.mxu1 %v9942_v0  ;;  %v48_v32 = vld [vmem:[%s9936_s0 + $0xc8] sm:$0xff]  ;;  %v114_v36 = vld [vmem:[%s9935_s1 + $0x1d8] sm:$0xff] }
  0x25   :  { %1514 = vmatpush1.msra.mxu0 %v91_v33  ;;  %1577 = vmatprep.mubr.f32.mxu0 %v9942_v0  ;;  %v110_v33 = vld [vmem:[%s9935_s1 + $0x1b8] sm:$0xff] }
  0x26   :  { %1661 = vmatprep.subr.mxu0 %v96_v34  ;;  %1292 = vmatpush1.msra.mxu1 %v85_v16  ;;  %v109_v34 = vld [vmem:[%s9935_s1 + $0x1b0] sm:$0xff] }
  0x27   :  { %6557 = vmatmul.mubr.msk.f32.vlgmr.msra.gmra.mrb[14].mxu1 %vm177_vm1, %v38_v17  ;;  %1439 = vmatprep.subr.mxu1 %v90_v18 }
  0x28   :  { %6560 = vmatmul.mubr.msk.f32.vlgmr.msra.gmra.mrb[18].mxu0 %vm177_vm1, %v41_v38  ;;  %1503 = vmatprep.mubr.f32.mxu1 %v9942_v0  ;;  %v52_v38 = vld [vmem:[%s9936_s0 + $0xe8] sm:$0xff] }
  0x29   :  { %1662 = vmatpush1.msra.mxu0 %v95_v39  ;;  %1725 = vmatprep.mubr.f32.mxu0 %v9942_v0 }
  0x2a   :  { %1809 = vmatprep.subr.mxu0 %v100_v40  ;;  %1440 = vmatpush1.msra.mxu1 %v89_v19  ;;  %v118_v40 = vld [vmem:[%s9935_s1 + $0x1f8] sm:$0xff] }
  0x2b   :  { %6559 = vmatmul.mubr.msk.f32.vlgmr.msra.gmra.mrb[16].mxu1 %vm177_vm1, %v40_v20  ;;  %1587 = vmatprep.subr.mxu1 %v94_v21 }
  0x2c   :  { %6562 = vmatmul.mubr.msk.f32.vlgmr.msra.gmra.mrb[20].mxu0 %vm177_vm1, %v43_v41  ;;  %1651 = vmatprep.mubr.f32.mxu1 %v9942_v0  ;;  %v117_v41 = vld [vmem:[%s9935_s1 + $0x1f0] sm:$0xff] }
  0x2d   :  { %1810 = vmatpush1.msra.mxu0 %v99_v42  ;;  %1873 = vmatprep.mubr.f32.mxu0 %v9942_v0  ;;  %v54_v42 = vld [vmem:[%s9936_s0 + $0xf8] sm:$0xff] }
  0x2e   :  { %1957 = vmatprep.subr.mxu0 %v104_v43  ;;  %1588 = vmatpush1.msra.mxu1 %v93_v22 }
  0x2f   :  { %6561 = vmatmul.mubr.msk.f32.vlgmr.msra.gmra.mrb[18].mxu1 %vm177_vm1, %v42_v23  ;;  %1735 = vmatprep.subr.mxu1 %v98_v24 }
  0x30   :  { %6564 = vmatmul.mubr.msk.f32.vlgmr.msra.gmra.mrb[22].mxu0 %vm177_vm1, %v45_v47  ;;  %1799 = vmatprep.mubr.f32.mxu1 %v9942_v0 }
  0x31   :  { %1958 = vmatpush1.msra.mxu0 %v103_v48  ;;  %2021 = vmatprep.mubr.f32.mxu0 %v9942_v0 }
  0x32   :  { %2105 = vmatprep.subr.mxu0 %v108_v49  ;;  %1736 = vmatpush1.msra.mxu1 %v97_v25 }
  0x33   :  { %6563 = vmatmul.mubr.msk.f32.vlgmr.msra.gmra.mrb[20].mxu1 %vm177_vm1, %v44_v26  ;;  %1883 = vmatprep.subr.mxu1 %v102_v27 }
  0x34   :  { %6566 = vmatmul.mubr.msk.f32.vlgmr.msra.gmra.mrb[24].mxu0 %vm177_vm1, %v47_v50  ;;  %1947 = vmatprep.mubr.f32.mxu1 %v9942_v0 }
  0x35   :  { %2106 = vmatpush1.msra.mxu0 %v107_v51  ;;  %2169 = vmatprep.mubr.f32.mxu0 %v9942_v0 }
  0x36   :  { %2253 = vmatprep.subr.mxu0 %v112_v52  ;;  %1884 = vmatpush1.msra.mxu1 %v101_v28 }
  0x37   :  { %6565 = vmatmul.mubr.msk.f32.vlgmr.msra.gmra.mrb[22].mxu1 %vm177_vm1, %v46_v29  ;;  %2031 = vmatprep.subr.mxu1 %v106_v30 }
  0x38   :  { %6568 = vmatmul.mubr.msk.f32.vlgmr.msra.gmra.mrb[26].mxu0 %vm177_vm1, %v49_v56  ;;  %2095 = vmatprep.mubr.f32.mxu1 %v9942_v0 }
  0x39   :  { %2254 = vmatpush1.msra.mxu0 %v111_v57  ;;  %2317 = vmatprep.mubr.f32.mxu0 %v9942_v0 }
  0x3a   :  { %2401 = vmatprep.subr.mxu0 %v116_v58  ;;  %2032 = vmatpush1.msra.mxu1 %v105_v31 }
  0x3b   :  { %6567 = vmatmul.mubr.msk.f32.vlgmr.msra.gmra.mrb[24].mxu1 %vm177_vm1, %v48_v32  ;;  %2179 = vmatprep.subr.mxu1 %v110_v33 }
  0x3c   :  { %6570 = vmatmul.mubr.msk.f32.vlgmr.msra.gmra.mrb[28].mxu0 %vm177_vm1, %v51_v61  ;;  %2243 = vmatprep.mubr.f32.mxu1 %v9942_v0 }
  0x3d   :  { %2402 = vmatpush1.msra.mxu0 %v115_v62  ;;  %2465 = vmatprep.mubr.f32.mxu0 %v9942_v0 }
  0x3e   :  { %6818 = vmatprep.subr.msk.bf16.mxu0 %vm7792_vm4, %v7784_v63  ;;  %2180 = vmatpush1.msra.mxu1 %v109_v34 }
  0x3f   :  { %6569 = vmatmul.mubr.msk.f32.vlgmr.msra.gmra.mrb[26].mxu1 %vm177_vm1, %v50_v35  ;;  %2327 = vmatprep.subr.mxu1 %v114_v36 }
  0x40   :  { %6572 = vmatmul.mubr.msk.f32.vlgmr.msra.gmra.mrb[30].mxu0 %vm177_vm1, %v53_v7  ;;  %2391 = vmatprep.mubr.f32.mxu1 %v9942_v0 }
  0x41   :  { %6821 = vmatpush1.bf16.msk.msra.mxu0 %vm7792_vm4, %v7810_v8  ;;  %2626 = vmatprep.mubr.f32.mxu0 %v9942_v0 }
  0x42   :  { %2328 = vmatpush1.msra.mxu1 %v113_v37 }
  0x43   :  { %6571 = vmatmul.mubr.msk.f32.vlgmr.msra.gmra.mrb[28].mxu1 %vm177_vm1, %v52_v38  ;;  %2475 = vmatprep.subr.mxu1 %v118_v40 }
  0x44   :  { %2539 = vmatprep.mubr.f32.mxu1 %v9942_v0  ;;  %2476 = vmatpush1.msra.mxu1 %v117_v41 }
  0x47   :  { %6573 = vmatmul.mubr.msk.f32.vlgmr.msra.gmra.mrb[30].mxu1 %vm177_vm1, %v54_v42 }
  0x8f   :  { %v2549_v39 = vpop.xlane.xlu0 %2548 }
  0x90   :  { %7217 = vrcp.f32 %v2549_v39 }
  0x9a   :  { %v7942_v43 = vpop.eup %7217 }
  0x9b   :  { %6576 = vmatmul.mubr.msk.f32.vlgmr.msra.gmra.mrb[32].mxu0 %vm2546_vm0, %v7942_v43 }
  0x9c   :  { %2632 = vmatprep.mubr.f32.mxu0 %v9942_v0 }
  0x9f   :  { %6577 = vmatmul.mubr.msk.f32.gmra.mrb[34].mxu0 %vm2546_vm0, %v7942_v43 }
  0xa0   :  { %2638 = vmatprep.mubr.f32.mxu0 %v9942_v0 }
  0xa3   :  { %6578 = vmatmul.mubr.msk.f32.gmra.mrb[36].mxu0 %vm2546_vm0, %v7942_v43 }
  0xa4   :  { %2644 = vmatprep.mubr.f32.mxu0 %v9942_v0 }
  0xa7   :  { %6579 = vmatmul.mubr.msk.f32.gmra.mrb[38].mxu0 %vm2546_vm0, %v7942_v43 }
  0xa8   :  { %2650 = vmatprep.mubr.f32.mxu0 %v9942_v0 }
  0xab   :  { %6580 = vmatmul.mubr.msk.f32.gmra.mrb[40].mxu0 %vm2546_vm0, %v7942_v43 }
  0xac   :  { %2656 = vmatprep.mubr.f32.mxu0 %v9942_v0 }
  0xaf   :  { %6581 = vmatmul.mubr.msk.f32.gmra.mrb[42].mxu0 %vm2546_vm0, %v7942_v43 }
  0xb0   :  { %2662 = vmatprep.mubr.f32.mxu0 %v9942_v0 }
  0xb3   :  { %6582 = vmatmul.mubr.msk.f32.gmra.mrb[44].mxu0 %vm2546_vm0, %v7942_v43 }
  0xb4   :  { %2668 = vmatprep.mubr.f32.mxu0 %v9942_v0 }
  0xb7   :  { %6583 = vmatmul.mubr.msk.f32.gmra.mrb[46].mxu0 %vm2546_vm0, %v7942_v43 }
  0xb8   :  { %2674 = vmatprep.mubr.f32.mxu0 %v9942_v0 }
  0xbb   :  { %6584 = vmatmul.mubr.msk.f32.gmra.mrb[48].mxu0 %vm2546_vm0, %v7942_v43 }
  0xbc   :  { %2680 = vmatprep.mubr.f32.mxu0 %v9942_v0 }
  0xbf   :  { %6585 = vmatmul.mubr.msk.f32.gmra.mrb[50].mxu0 %vm2546_vm0, %v7942_v43 }
  0xc0   :  { %2686 = vmatprep.mubr.f32.mxu0 %v9942_v0 }
  0xc3   :  { %6586 = vmatmul.mubr.msk.f32.gmra.mrb[52].mxu0 %vm2546_vm0, %v7942_v43 }
  0xc4   :  { %2692 = vmatprep.mubr.f32.mxu0 %v9942_v0 }
  0xc7   :  { %6587 = vmatmul.mubr.msk.f32.gmra.mrb[54].mxu0 %vm2546_vm0, %v7942_v43 }
  0xc8   :  { %2698 = vmatprep.mubr.f32.mxu0 %v9942_v0 }
  0xcb   :  { %6588 = vmatmul.mubr.msk.f32.gmra.mrb[56].mxu0 %vm2546_vm0, %v7942_v43 }
  0xcc   :  { %2704 = vmatprep.mubr.f32.mxu0 %v9942_v0 }
  0xcf   :  { %6589 = vmatmul.mubr.msk.f32.gmra.mrb[58].mxu0 %vm2546_vm0, %v7942_v43 }
  0xd0   :  { %2710 = vmatprep.mubr.f32.mxu0 %v9942_v0 }
  0xd3   :  { %6590 = vmatmul.mubr.msk.f32.gmra.mrb[60].mxu0 %vm2546_vm0, %v7942_v43 }
  0xd4   :  { %2716 = vmatprep.mubr.f32.mxu0 %v9942_v0 }
  0xd7   :  { %6591 = vmatmul.mubr.msk.f32.gmra.mrb[62].mxu0 %vm2546_vm0, %v7942_v43  ;;  %v7991_v44 = vpop.f32.mrb[0].mxu0 }
  0xd8   :  { %10136 = vst [vmem:[#allocation5_spill] sm:$0xff] %v7991_v44  ;;  %2722 = vmatprep.mubr.f32.mxu0 %v9942_v0  ;;  %v7994_v45 = vpop.f32.mrb[1].mxu0 }
  0xd9   :  { %10137 = vst [vmem:[#allocation6_spill] sm:$0xff] %v7994_v45 }
  0xdb   :  { %6592 = vmatmul.mubr.msk.f32.gmra.mrb[64].mxu0 %vm2546_vm0, %v7942_v43  ;;  %v7998_v46 = vpop.f32.mrb[2].mxu0 }
  0xdc   :  { %10138 = vst [vmem:[#allocation7_spill] sm:$0xff] %v7998_v46  ;;  %2728 = vmatprep.mubr.f32.mxu0 %v9942_v0  ;;  %v8001_v47 = vpop.f32.mrb[3].mxu0 }
  0xdd   :  { %10139 = vst [vmem:[#allocation8_spill] sm:$0xff] %v8001_v47 }
  0xde   :  { %v8038_v58 = vpop.f32.mrb[0].mxu1 }
  0xdf   :  { %6593 = vmatmul.mubr.msk.f32.gmra.mrb[66].mxu0 %vm2546_vm0, %v7942_v43  ;;  %v8005_v48 = vpop.f32.mrb[4].mxu0  ;;  %v8044_v60 = vpop.f32.mrb[1].mxu1 }
  0xe0   :  { %10140 = vst [vmem:[#allocation9_spill] sm:$0xff] %v8005_v48  ;;  %2734 = vmatprep.mubr.f32.mxu0 %v9942_v0  ;;  %v8008_v49 = vpop.f32.mrb[5].mxu0 }
  0xe1   :  { %10141 = vst [vmem:[#allocation10_spill] sm:$0xff] %v8008_v49 }
  0xe2   :  { %v8056_v2 = vpop.f32.mrb[2].mxu1 }
  0xe3   :  { %6594 = vmatmul.mubr.msk.f32.gmra.mrb[68].mxu0 %vm2546_vm0, %v7942_v43  ;;  %v8012_v50 = vpop.f32.mrb[6].mxu0  ;;  %10154 = vst [vmem:[#allocation23_spill] sm:$0xff] %v8056_v2  ;;  %v8062_v5 = vpop.f32.mrb[3].mxu1 }
  0xe4   :  { %10142 = vst [vmem:[#allocation11_spill] sm:$0xff] %v8012_v50  ;;  %2740 = vmatprep.mubr.f32.mxu0 %v9942_v0  ;;  %v8015_v51 = vpop.f32.mrb[7].mxu0  ;;  %10156 = vst [vmem:[#allocation25_spill] sm:$0xff] %v8062_v5 }
  0xe5   :  { %10143 = vst [vmem:[#allocation12_spill] sm:$0xff] %v8015_v51 }
  0xe6   :  { %v8074_v10 = vpop.f32.mrb[4].mxu1 }
  0xe7   :  { %6595 = vmatmul.mubr.msk.f32.gmra.mrb[70].mxu0 %vm2546_vm0, %v7942_v43  ;;  %v8019_v52 = vpop.f32.mrb[8].mxu0  ;;  %10160 = vst [vmem:[#allocation29_spill] sm:$0xff] %v8074_v10  ;;  %v8080_v12 = vpop.f32.mrb[5].mxu1 }
  0xe8   :  { %10144 = vst [vmem:[#allocation13_spill] sm:$0xff] %v8019_v52  ;;  %2746 = vmatprep.mubr.f32.mxu0 %v9942_v0  ;;  %v8022_v53 = vpop.f32.mrb[9].mxu0  ;;  %10162 = vst [vmem:[#allocation31_spill] sm:$0xff] %v8080_v12 }
  0xe9   :  { %10145 = vst [vmem:[#allocation14_spill] sm:$0xff] %v8022_v53 }
  0xea   :  { %v8092_v16 = vpop.f32.mrb[6].mxu1 }
  0xeb   :  { %6596 = vmatmul.mubr.msk.f32.gmra.mrb[72].mxu0 %vm2546_vm0, %v7942_v43  ;;  %v8026_v54 = vpop.f32.mrb[10].mxu0  ;;  %10166 = vst [vmem:[#allocation35_spill] sm:$0xff] %v8092_v16  ;;  %v8098_v18 = vpop.f32.mrb[7].mxu1 }
  0xec   :  { %10146 = vst [vmem:[#allocation15_spill] sm:$0xff] %v8026_v54  ;;  %2752 = vmatprep.mubr.f32.mxu0 %v9942_v0  ;;  %v8029_v55 = vpop.f32.mrb[11].mxu0  ;;  %10168 = vst [vmem:[#allocation37_spill] sm:$0xff] %v8098_v18 }
  0xed   :  { %10147 = vst [vmem:[#allocation16_spill] sm:$0xff] %v8029_v55 }
  0xee   :  { %v8110_v22 = vpop.f32.mrb[8].mxu1 }
  0xef   :  { %6597 = vmatmul.mubr.msk.f32.gmra.mrb[74].mxu0 %vm2546_vm0, %v7942_v43  ;;  %v8033_v56 = vpop.f32.mrb[12].mxu0  ;;  %10172 = vst [vmem:[#allocation41_spill] sm:$0xff] %v8110_v22  ;;  %v8116_v24 = vpop.f32.mrb[9].mxu1 }
  0xf0   :  { %10148 = vst [vmem:[#allocation17_spill] sm:$0xff] %v8033_v56  ;;  %2758 = vmatprep.mubr.f32.mxu0 %v9942_v0  ;;  %v8036_v57 = vpop.f32.mrb[13].mxu0  ;;  %10174 = vst [vmem:[#allocation43_spill] sm:$0xff] %v8116_v24 }
  0xf1   :  { %10149 = vst [vmem:[#allocation18_spill] sm:$0xff] %v8036_v57 }
  0xf2   :  { %v8123_v26 = vpop.f32.mrb[10].mxu1 }
  0xf3   :  { %6598 = vmatmul.mubr.msk.f32.gmra.mrb[76].mxu0 %vm2546_vm0, %v7942_v43  ;;  %v8042_v59 = vpop.f32.mrb[14].mxu0  ;;  %10176 = vst [vmem:[#allocation45_spill] sm:$0xff] %v8123_v26  ;;  %v8125_v27 = vpop.f32.mrb[11].mxu1 }
  0xf4   :  { %10150 = vst [vmem:[#allocation19_spill] sm:$0xff] %v8042_v59  ;;  %2764 = vmatprep.mubr.f32.mxu0 %v9942_v0  ;;  %v8047_v61 = vpop.f32.mrb[15].mxu0  ;;  %10177 = vst [vmem:[#allocation46_spill] sm:$0xff] %v8125_v27 }
  0xf5   :  { %10151 = vst [vmem:[#allocation20_spill] sm:$0xff] %v8047_v61 }
  0xf6   :  { %v8127_v28 = vpop.f32.mrb[12].mxu1 }
  0xf7   :  { %6599 = vmatmul.mubr.msk.f32.gmra.mrb[78].mxu0 %vm2546_vm0, %v7942_v43  ;;  %v8051_v62 = vpop.f32.mrb[16].mxu0  ;;  %10178 = vst [vmem:[#allocation47_spill] sm:$0xff] %v8127_v28  ;;  %v8129_v29 = vpop.f32.mrb[13].mxu1 }
  0xf8   :  { %10152 = vst [vmem:[#allocation21_spill] sm:$0xff] %v8051_v62  ;;  %2770 = vmatprep.mubr.f32.mxu0 %v9942_v0  ;;  %v8054_v1 = vpop.f32.mrb[17].mxu0  ;;  %10179 = vst [vmem:[#allocation48_spill] sm:$0xff] %v8129_v29 }
  0xf9   :  { %10153 = vst [vmem:[#allocation22_spill] sm:$0xff] %v8054_v1 }
  0xfa   :  { %v8131_v30 = vpop.f32.mrb[14].mxu1 }
  0xfb   :  { %6600 = vmatmul.mubr.msk.f32.gmra.mrb[80].mxu0 %vm2546_vm0, %v7942_v43  ;;  %v8060_v4 = vpop.f32.mrb[18].mxu0  ;;  %10180 = vst [vmem:[#allocation49_spill] sm:$0xff] %v8131_v30  ;;  %v8133_v31 = vpop.f32.mrb[15].mxu1 }
  0xfc   :  { %10155 = vst [vmem:[#allocation24_spill] sm:$0xff] %v8060_v4  ;;  %2776 = vmatprep.mubr.f32.mxu0 %v9942_v0  ;;  %v8065_v6 = vpop.f32.mrb[19].mxu0  ;;  %10181 = vst [vmem:[#allocation50_spill] sm:$0xff] %v8133_v31 }
  0xfd   :  { %10157 = vst [vmem:[#allocation26_spill] sm:$0xff] %v8065_v6 }
  0xfe   :  { %v8135_v32 = vpop.f32.mrb[16].mxu1 }
  0xff   :  { %6601 = vmatmul.mubr.msk.f32.gmra.mrb[82].mxu0 %vm2546_vm0, %v7942_v43  ;;  %v8069_v7 = vpop.f32.mrb[20].mxu0  ;;  %10182 = vst [vmem:[#allocation51_spill] sm:$0xff] %v8135_v32  ;;  %v8137_v33 = vpop.f32.mrb[17].mxu1 }
 0x100   :  { %10158 = vst [vmem:[#allocation27_spill] sm:$0xff] %v8069_v7  ;;  %2782 = vmatprep.mubr.f32.mxu0 %v9942_v0  ;;  %v8072_v9 = vpop.f32.mrb[21].mxu0  ;;  %10183 = vst [vmem:[#allocation52_spill] sm:$0xff] %v8137_v33 }
 0x101   :  { %10159 = vst [vmem:[#allocation28_spill] sm:$0xff] %v8072_v9 }
 0x102   :  { %v8139_v34 = vpop.f32.mrb[18].mxu1 }
 0x103   :  { %6602 = vmatmul.mubr.msk.f32.gmra.mrb[84].mxu0 %vm2546_vm0, %v7942_v43  ;;  %v8078_v11 = vpop.f32.mrb[22].mxu0  ;;  %10184 = vst [vmem:[#allocation53_spill] sm:$0xff] %v8139_v34  ;;  %v8141_v35 = vpop.f32.mrb[19].mxu1 }
 0x104   :  { %10161 = vst [vmem:[#allocation30_spill] sm:$0xff] %v8078_v11  ;;  %2788 = vmatprep.mubr.f32.mxu0 %v9942_v0  ;;  %v8083_v13 = vpop.f32.mrb[23].mxu0  ;;  %10185 = vst [vmem:[#allocation54_spill] sm:$0xff] %v8141_v35 }
 0x105   :  { %10163 = vst [vmem:[#allocation32_spill] sm:$0xff] %v8083_v13 }
 0x106   :  { %v8143_v36 = vpop.f32.mrb[20].mxu1 }
 0x107   :  { %6603 = vmatmul.mubr.msk.f32.gmra.mrb[86].mxu0 %vm2546_vm0, %v7942_v43  ;;  %v8087_v14 = vpop.f32.mrb[24].mxu0  ;;  %10186 = vst [vmem:[#allocation55_spill] sm:$0xff] %v8143_v36  ;;  %v8145_v37 = vpop.f32.mrb[21].mxu1 }
 0x108   :  { %10164 = vst [vmem:[#allocation33_spill] sm:$0xff] %v8087_v14  ;;  %2794 = vmatprep.mubr.f32.mxu0 %v9942_v0  ;;  %v8090_v15 = vpop.f32.mrb[25].mxu0  ;;  %10187 = vst [vmem:[#allocation56_spill] sm:$0xff] %v8145_v37 }
 0x109   :  { %10165 = vst [vmem:[#allocation34_spill] sm:$0xff] %v8090_v15 }
 0x10a   :  { %v8147_v38 = vpop.f32.mrb[22].mxu1 }
 0x10b   :  { %6604 = vmatmul.mubr.msk.f32.gmra.mrb[88].mxu0 %vm2546_vm0, %v7942_v43  ;;  %v8096_v17 = vpop.f32.mrb[26].mxu0  ;;  %10188 = vst [vmem:[#allocation57_spill] sm:$0xff] %v8147_v38  ;;  %v8149_v39 = vpop.f32.mrb[23].mxu1 }
 0x10c   :  { %10167 = vst [vmem:[#allocation36_spill] sm:$0xff] %v8096_v17  ;;  %2800 = vmatprep.mubr.f32.mxu0 %v9942_v0  ;;  %v8101_v19 = vpop.f32.mrb[27].mxu0  ;;  %10189 = vst [vmem:[#allocation58_spill] sm:$0xff] %v8149_v39 }
 0x10d   :  { %10169 = vst [vmem:[#allocation38_spill] sm:$0xff] %v8101_v19 }
 0x10e   :  { %v8151_v40 = vpop.f32.mrb[24].mxu1 }
 0x10f   :  { %6605 = vmatmul.mubr.msk.f32.gmra.mrb[90].mxu0 %vm2546_vm0, %v7942_v43  ;;  %v8105_v20 = vpop.f32.mrb[28].mxu0  ;;  %10190 = vst [vmem:[#allocation59_spill] sm:$0xff] %v8151_v40  ;;  %v8153_v41 = vpop.f32.mrb[25].mxu1 }
 0x110   :  { %10170 = vst [vmem:[#allocation39_spill] sm:$0xff] %v8105_v20  ;;  %2806 = vmatprep.mubr.f32.mxu0 %v9942_v0  ;;  %v8108_v21 = vpop.f32.mrb[29].mxu0  ;;  %10191 = vst [vmem:[#allocation60_spill] sm:$0xff] %v8153_v41 }
 0x111   :  { %10171 = vst [vmem:[#allocation40_spill] sm:$0xff] %v8108_v21 }
 0x112   :  { %v8155_v42 = vpop.f32.mrb[26].mxu1 }
 0x113   :  { %6606 = vmatmul.mubr.msk.f32.gmra.mrb[92].mxu0 %vm2546_vm0, %v7942_v43  ;;  %v8114_v23 = vpop.f32.mrb[30].mxu0  ;;  %10192 = vst [vmem:[#allocation61_spill] sm:$0xff] %v8155_v42  ;;  %v144_v42 = vld [vmem:[%s9938_s4 + $0x8] sm:$0xff] }
 0x114   :  { %10173 = vst [vmem:[#allocation42_spill] sm:$0xff] %v8114_v23  ;;  %2812 = vmatprep.mubr.f32.mxu0 %v9942_v0  ;;  %v8119_v25 = vpop.f32.mrb[31].mxu0  ;;  %2947 = vmatprep.mubr.f32.mxu1 %v144_v42 }
 0x115   :  { %10175 = vst [vmem:[#allocation44_spill] sm:$0xff] %v8119_v25 }
 0x117   :  { %6607 = vmatmul.mubr.msk.f32.gmra.mrb[94].mxu0 %vm2546_vm0, %v7942_v43  ;;  %v8157_v43 = vpop.f32.mrb[27].mxu1 }
 0x118   :  { %10193 = vst [vmem:[#allocation62_spill] sm:$0xff] %v8157_v43  ;;  %v8159_v0 = vpop.f32.mrb[28].mxu1 }
 0x119   :  { %10194 = vst [vmem:[#allocation63_spill] sm:$0xff] %v8159_v0  ;;  %v8161_v8 = vpop.f32.mrb[29].mxu1 }
 0x11a   :  { %10195 = vst [vmem:[#allocation64_spill] sm:$0xff] %v8161_v8  ;;  %v8163_v3 = vpop.f32.mrb[30].mxu1 }
 0x11b   :  { %10196 = vst [vmem:[#allocation65_spill] sm:$0xff] %v8163_v3  ;;  %v8165_v63 = vpop.f32.mrb[31].mxu1 }
 0x11c   :  { %10197 = vst [vmem:[#allocation66_spill] sm:$0xff] %v8165_v63  ;;  %v119_v63 = vld [vmem:[%s9939_s2] sm:$0xff] }
 0x16e   :  { %v2628_v25 = vpop.f32.mrb[32].mxu0 }
 0x16f   :  { %v2819_v23 = vmul.f32 %v2628_v25, %v7991_v44  ;;  %v2630_v21 = vpop.f32.mrb[33].mxu0  ;;  %v9986_v25 = vmov 0.0|0.0  }
 0x170   :  { %v2820_v20 = vmul.f32 %v2630_v21, %v7994_v45  ;;  %v120_v21 = vld [vmem:[%s9939_s2 + $0x8] sm:$0xff]  ;;  %6922 = vmatprep.subr.bf16.mxu0 %v9986_v25 }
 0x171   :  { %v8181_v17 = vpack.c.bf16 %v120_v21, %v119_v63  ;;  %v123_v21 = vld [vmem:[%s9939_s2 + $0x20] sm:$0xff] }
 0x172   :  { %v2634_v19 = vpop.f32.mrb[34].mxu0 }
 0x173   :  { %v2821_v43 = vmul.f32 %v2634_v19, %v8038_v58  ;;  %v2636_v0 = vpop.f32.mrb[35].mxu0  ;;  %10198 = vst [vmem:[#allocation67_spill] sm:$0xff] %v8181_v17  ;;  %6924 = vmatpush1.bf16.msra.mxu0 %v8181_v17 }
 0x174   :  { %v2822_v8 = vmul.f32 %v2636_v0, %v8044_v60  ;;  %v121_v0 = vld [vmem:[%s9939_s2 + $0x10] sm:$0xff]  ;;  %6925 = vmatprep.subr.bf16.mxu0 %v9986_v25 }
 0x175   :  { %v6824_v3 = vpack.c.bf16 %v2821_v43, %v2819_v23  ;;  %v122_v23 = vld [vmem:[%s9939_s2 + $0x18] sm:$0xff] }
 0x176   :  { %v6822_v45 = vpack.c.bf16 %v2822_v8, %v2820_v20  ;;  %v2640_v44 = vpop.f32.mrb[36].mxu0  ;;  %v8193_v8 = vpack.c.bf16 %v122_v23, %v121_v0 }
 0x177   :  { %v2823_v19 = vmul.f32 %v2640_v44, %v7998_v46  ;;  %v2642_v42 = vpop.f32.mrb[37].mxu0  ;;  %v125_v46 = vld [vmem:[%s9939_s2 + $0x30] sm:$0xff] }
 0x178   :  { %v2824_v43 = vmul.f32 %v2642_v42, %v8001_v47  ;;  %6823 = vmatprep.subr.bf16.mxu1 %v6822_v45  ;;  %10199 = vst [vmem:[#allocation68_spill] sm:$0xff] %v8193_v8  ;;  %v124_v42 = vld [vmem:[%s9939_s2 + $0x28] sm:$0xff]  ;;  %6927 = vmatpush1.bf16.msra.mxu0 %v8193_v8 }
 0x179   :  { %6825 = vmatpush1.bf16.msra.mxu1 %v6824_v3  ;;  %6928 = vmatprep.subr.bf16.mxu0 %v9986_v25  ;;  %v8205_v47 = vpack.c.bf16 %v124_v42, %v123_v21  ;;  %v127_v42 = vld [vmem:[%s9939_s2 + $0x40] sm:$0xff] }
 0x17a   :  { %v2646_v63 = vpop.f32.mrb[38].mxu0 }
 0x17b   :  { %v2825_v44 = vmul.f32 %v2646_v63, %v8056_v2  ;;  %v2648_v20 = vpop.f32.mrb[39].mxu0  ;;  %10200 = vst [vmem:[#allocation69_spill] sm:$0xff] %v8205_v47 }
 0x17c   :  { %v2826_v45 = vmul.f32 %v2648_v20, %v8062_v5  ;;  %v126_v20 = vld [vmem:[%s9939_s2 + $0x38] sm:$0xff]  ;;  %6930 = vmatpush1.bf16.msra.mxu0 %v8205_v47 }
 0x17d   :  { %v6828_v3 = vpack.c.bf16 %v2825_v44, %v2823_v19  ;;  %6931 = vmatprep.subr.bf16.mxu0 %v9986_v25 }
 0x17e   :  { %v6826_v0 = vpack.c.bf16 %v2826_v45, %v2824_v43  ;;  %v2652_v23 = vpop.f32.mrb[40].mxu0  ;;  %v8217_v43 = vpack.c.bf16 %v126_v20, %v125_v46 }
 0x17f   :  { %v2827_v63 = vmul.f32 %v2652_v23, %v8005_v48  ;;  %v2654_v2 = vpop.f32.mrb[41].mxu0 }
 0x180   :  { %v2828_v5 = vmul.f32 %v2654_v2, %v8008_v49  ;;  %6827 = vmatprep.subr.bf16.mxu1 %v6826_v0  ;;  %10201 = vst [vmem:[#allocation70_spill] sm:$0xff] %v8217_v43  ;;  %v128_v2 = vld [vmem:[%s9939_s2 + $0x48] sm:$0xff]  ;;  %6933 = vmatpush1.bf16.msra.mxu0 %v8217_v43 }
 0x181   :  { %6829 = vmatpush1.bf16.msra.mxu1 %v6828_v3  ;;  %6934 = vmatprep.subr.bf16.mxu0 %v9986_v25  ;;  %v8229_v23 = vpack.c.bf16 %v128_v2, %v127_v42  ;;  %v131_v2 = vld [vmem:[%s9939_s2 + $0x60] sm:$0xff] }
 0x182   :  { %v2658_v19 = vpop.f32.mrb[42].mxu0 }
 0x183   :  { %v2829_v44 = vmul.f32 %v2658_v19, %v8074_v10  ;;  %v2660_v21 = vpop.f32.mrb[43].mxu0  ;;  %10202 = vst [vmem:[#allocation71_spill] sm:$0xff] %v8229_v23  ;;  %v129_v10 = vld [vmem:[%s9939_s2 + $0x50] sm:$0xff] }
 0x184   :  { %v2830_v45 = vmul.f32 %v2660_v21, %v8080_v12  ;;  %v130_v21 = vld [vmem:[%s9939_s2 + $0x58] sm:$0xff]  ;;  %6936 = vmatpush1.bf16.msra.mxu0 %v8229_v23 }
 0x185   :  { %v6832_v3 = vpack.c.bf16 %v2829_v44, %v2827_v63  ;;  %6937 = vmatprep.subr.bf16.mxu0 %v9986_v25  ;;  %v8241_v63 = vpack.c.bf16 %v130_v21, %v129_v10 }
 0x186   :  { %v6830_v46 = vpack.c.bf16 %v2830_v45, %v2828_v5  ;;  %v2664_v0 = vpop.f32.mrb[44].mxu0  ;;  %v132_v45 = vld [vmem:[%s9939_s2 + $0x68] sm:$0xff] }
 0x187   :  { %v2831_v20 = vmul.f32 %v2664_v0, %v8012_v50  ;;  %v2666_v19 = vpop.f32.mrb[45].mxu0  ;;  %10203 = vst [vmem:[#allocation72_spill] sm:$0xff] %v8241_v63 }
 0x188   :  { %v2832_v12 = vmul.f32 %v2666_v19, %v8015_v51  ;;  %6831 = vmatprep.subr.bf16.mxu1 %v6830_v46  ;;  %6939 = vmatpush1.bf16.msra.mxu0 %v8241_v63  ;;  %v8253_v19 = vpack.c.bf16 %v132_v45, %v131_v2  ;;  %v135_v45 = vld [vmem:[%s9939_s2 + $0x80] sm:$0xff] }
 0x189   :  { %6833 = vmatpush1.bf16.msra.mxu1 %v6832_v3  ;;  %6940 = vmatprep.subr.bf16.mxu0 %v9986_v25 }
 0x18a   :  { %v2670_v5 = vpop.f32.mrb[46].mxu0  ;;  %10204 = vst [vmem:[#allocation73_spill] sm:$0xff] %v8253_v19 }
 0x18b   :  { %v2833_v44 = vmul.f32 %v2670_v5, %v8092_v16  ;;  %v2672_v42 = vpop.f32.mrb[47].mxu0  ;;  %v133_v16 = vld [vmem:[%s9939_s2 + $0x70] sm:$0xff] }
 0x18c   :  { %v2834_v46 = vmul.f32 %v2672_v42, %v8098_v18  ;;  %v134_v42 = vld [vmem:[%s9939_s2 + $0x78] sm:$0xff]  ;;  %6942 = vmatpush1.bf16.msra.mxu0 %v8253_v19 }
 0x18d   :  { %v6836_v3 = vpack.c.bf16 %v2833_v44, %v2831_v20  ;;  %6943 = vmatprep.subr.bf16.mxu0 %v9986_v25  ;;  %v8265_v20 = vpack.c.bf16 %v134_v42, %v133_v16 }
 0x18e   :  { %v6834_v10 = vpack.c.bf16 %v2834_v46, %v2832_v12  ;;  %v2676_v0 = vpop.f32.mrb[48].mxu0  ;;  %v136_v46 = vld [vmem:[%s9939_s2 + $0x88] sm:$0xff] }
 0x18f   :  { %v2835_v21 = vmul.f32 %v2676_v0, %v8019_v52  ;;  %v2678_v5 = vpop.f32.mrb[49].mxu0  ;;  %10205 = vst [vmem:[#allocation74_spill] sm:$0xff] %v8265_v20 }
 0x190   :  { %v2836_v18 = vmul.f32 %v2678_v5, %v8022_v53  ;;  %6835 = vmatprep.subr.bf16.mxu1 %v6834_v10  ;;  %6945 = vmatpush1.bf16.msra.mxu0 %v8265_v20  ;;  %v8277_v5 = vpack.c.bf16 %v136_v46, %v135_v45 }
 0x191   :  { %6837 = vmatpush1.bf16.msra.mxu1 %v6836_v3  ;;  %6946 = vmatprep.subr.bf16.mxu0 %v9986_v25 }
 0x192   :  { %v2682_v12 = vpop.f32.mrb[50].mxu0  ;;  %10206 = vst [vmem:[#allocation75_spill] sm:$0xff] %v8277_v5 }
 0x193   :  { %v2837_v44 = vmul.f32 %v2682_v12, %v8110_v22  ;;  %v2684_v2 = vpop.f32.mrb[51].mxu0 }
 0x194   :  { %v2838_v10 = vmul.f32 %v2684_v2, %v8116_v24  ;;  %6948 = vmatpush1.bf16.msra.mxu0 %v8277_v5 }
 0x195   :  { %v6840_v3 = vpack.c.bf16 %v2837_v44, %v2835_v21  ;;  %6949 = vmatprep.subr.bf16.mxu0 %v9986_v25 }
 0x196   :  { %v6838_v16 = vpack.c.bf16 %v2838_v10, %v2836_v18  ;;  %v2688_v0 = vpop.f32.mrb[52].mxu0 }
 0x197   :  { %v2839_v42 = vmul.f32 %v2688_v0, %v8026_v54  ;;  %v2690_v12 = vpop.f32.mrb[53].mxu0 }
 0x198   :  { %v2840_v22 = vmul.f32 %v2690_v12, %v8029_v55  ;;  %6839 = vmatprep.subr.bf16.mxu1 %v6838_v16 }
 0x199   :  { %6841 = vmatpush1.bf16.msra.mxu1 %v6840_v3 }
 0x19a   :  { %v2694_v2 = vpop.f32.mrb[54].mxu0 }
 0x19b   :  { %v2841_v21 = vmul.f32 %v2694_v2, %v8123_v26  ;;  %v2696_v44 = vpop.f32.mrb[55].mxu0 }
 0x19c   :  { %v2842_v18 = vmul.f32 %v2696_v44, %v8125_v27 }
 0x19d   :  { %v6844_v10 = vpack.c.bf16 %v2841_v21, %v2839_v42 }
 0x19e   :  { %v6842_v45 = vpack.c.bf16 %v2842_v18, %v2840_v22  ;;  %v2700_v46 = vpop.f32.mrb[56].mxu0 }
 0x19f   :  { %v2843_v0 = vmul.f32 %v2700_v46, %v8033_v56  ;;  %v2702_v54 = vpop.f32.mrb[57].mxu0 }
 0x1a0   :  { %v2844_v12 = vmul.f32 %v2702_v54, %v8036_v57  ;;  %6843 = vmatprep.subr.bf16.mxu1 %v6842_v45 }
 0x1a1   :  { %6845 = vmatpush1.bf16.msra.mxu1 %v6844_v10 }
 0x1a2   :  { %v2706_v16 = vpop.f32.mrb[58].mxu0 }
 0x1a3   :  { %v2845_v3 = vmul.f32 %v2706_v16, %v8127_v28  ;;  %v2708_v25 = vpop.f32.mrb[59].mxu0 }
 0x1a4   :  { %v2846_v55 = vmul.f32 %v2708_v25, %v8129_v29 }
 0x1a5   :  { %v6848_v2 = vpack.c.bf16 %v2845_v3, %v2843_v0 }
 0x1a6   :  { %v6846_v26 = vpack.c.bf16 %v2846_v55, %v2844_v12  ;;  %v2712_v24 = vpop.f32.mrb[60].mxu0 }
 0x1a7   :  { %v2847_v42 = vmul.f32 %v2712_v24, %v8042_v59  ;;  %v2714_v22 = vpop.f32.mrb[61].mxu0 }
 0x1a8   :  { %v2848_v21 = vmul.f32 %v2714_v22, %v8047_v61  ;;  %6847 = vmatprep.subr.bf16.mxu1 %v6846_v26 }
 0x1a9   :  { %6849 = vmatpush1.bf16.msra.mxu1 %v6848_v2 }
 0x1aa   :  { %v2718_v44 = vpop.f32.mrb[62].mxu0 }
 0x1ab   :  { %v2849_v54 = vmul.f32 %v2718_v44, %v8131_v30  ;;  %v2720_v18 = vpop.f32.mrb[63].mxu0 }
 0x1ac   :  { %v2850_v10 = vmul.f32 %v2720_v18, %v8133_v31 }
 0x1ad   :  { %v6852_v45 = vpack.c.bf16 %v2849_v54, %v2847_v42 }
 0x1ae   :  { %v6850_v46 = vpack.c.bf16 %v2850_v10, %v2848_v21  ;;  %v2724_v16 = vpop.f32.mrb[64].mxu0 }
 0x1af   :  { %v2851_v25 = vmul.f32 %v2724_v16, %v8051_v62  ;;  %v2726_v55 = vpop.f32.mrb[65].mxu0 }
 0x1b0   :  { %v2852_v0 = vmul.f32 %v2726_v55, %v8054_v1  ;;  %6851 = vmatprep.subr.bf16.mxu1 %v6850_v46 }
 0x1b1   :  { %6853 = vmatpush1.bf16.msra.mxu1 %v6852_v45 }
 0x1b2   :  { %v2730_v24 = vpop.f32.mrb[66].mxu0 }
 0x1b3   :  { %v2853_v26 = vmul.f32 %v2730_v24, %v8135_v32  ;;  %v2732_v12 = vpop.f32.mrb[67].mxu0 }
 0x1b4   :  { %v2854_v3 = vmul.f32 %v2732_v12, %v8137_v33 }
 0x1b5   :  { %v6856_v2 = vpack.c.bf16 %v2853_v26, %v2851_v25 }
 0x1b6   :  { %v6854_v22 = vpack.c.bf16 %v2854_v3, %v2852_v0  ;;  %v2736_v44 = vpop.f32.mrb[68].mxu0 }
 0x1b7   :  { %v2855_v42 = vmul.f32 %v2736_v44, %v8060_v4  ;;  %v2738_v21 = vpop.f32.mrb[69].mxu0 }
 0x1b8   :  { %v2856_v54 = vmul.f32 %v2738_v21, %v8065_v6  ;;  %6855 = vmatprep.subr.bf16.mxu1 %v6854_v22 }
 0x1b9   :  { %6857 = vmatpush1.bf16.msra.mxu1 %v6856_v2 }
 0x1ba   :  { %v2742_v18 = vpop.f32.mrb[70].mxu0 }
 0x1bb   :  { %v2857_v10 = vmul.f32 %v2742_v18, %v8139_v34  ;;  %v2744_v45 = vpop.f32.mrb[71].mxu0 }
 0x1bc   :  { %v2858_v46 = vmul.f32 %v2744_v45, %v8141_v35 }
 0x1bd   :  { %v6860_v16 = vpack.c.bf16 %v2857_v10, %v2855_v42 }
 0x1be   :  { %v6858_v55 = vpack.c.bf16 %v2858_v46, %v2856_v54  ;;  %v2748_v24 = vpop.f32.mrb[72].mxu0 }
 0x1bf   :  { %v2859_v25 = vmul.f32 %v2748_v24, %v8069_v7  ;;  %v2750_v0 = vpop.f32.mrb[73].mxu0 }
 0x1c0   :  { %v2860_v26 = vmul.f32 %v2750_v0, %v8072_v9  ;;  %6859 = vmatprep.subr.bf16.mxu1 %v6858_v55 }
 0x1c1   :  { %6861 = vmatpush1.bf16.msra.mxu1 %v6860_v16 }
 0x1c2   :  { %v2754_v12 = vpop.f32.mrb[74].mxu0 }
 0x1c3   :  { %v2861_v3 = vmul.f32 %v2754_v12, %v8143_v36  ;;  %v2756_v2 = vpop.f32.mrb[75].mxu0 }
 0x1c4   :  { %v2862_v22 = vmul.f32 %v2756_v2, %v8145_v37 }
 0x1c5   :  { %v6864_v44 = vpack.c.bf16 %v2861_v3, %v2859_v25 }
 0x1c6   :  { %v6862_v21 = vpack.c.bf16 %v2862_v22, %v2860_v26  ;;  %v2760_v18 = vpop.f32.mrb[76].mxu0 }
 0x1c7   :  { %v2863_v42 = vmul.f32 %v2760_v18, %v8078_v11  ;;  %v2762_v54 = vpop.f32.mrb[77].mxu0 }
 0x1c8   :  { %v2864_v10 = vmul.f32 %v2762_v54, %v8083_v13  ;;  %6863 = vmatprep.subr.bf16.mxu1 %v6862_v21 }
 0x1c9   :  { %6865 = vmatpush1.bf16.msra.mxu1 %v6864_v44 }
 0x1ca   :  { %v2766_v45 = vpop.f32.mrb[78].mxu0 }
 0x1cb   :  { %v2865_v46 = vmul.f32 %v2766_v45, %v8147_v38  ;;  %v2768_v16 = vpop.f32.mrb[79].mxu0 }
 0x1cc   :  { %v2866_v55 = vmul.f32 %v2768_v16, %v8149_v39  ;;  %v10207_v16 = vld [vmem:[#allocation36_spill] sm:$0xff] }
 0x1cd   :  { %v6868_v24 = vpack.c.bf16 %v2865_v46, %v2863_v42  ;;  %v10208_v46 = vld [vmem:[#allocation38_spill] sm:$0xff] }
 0x1ce   :  { %v6866_v0 = vpack.c.bf16 %v2866_v55, %v2864_v10  ;;  %v2772_v12 = vpop.f32.mrb[80].mxu0 }
 0x1cf   :  { %v2867_v25 = vmul.f32 %v2772_v12, %v8087_v14  ;;  %v2774_v26 = vpop.f32.mrb[81].mxu0 }
 0x1d0   :  { %v2868_v3 = vmul.f32 %v2774_v26, %v8090_v15  ;;  %6867 = vmatprep.subr.bf16.mxu1 %v6866_v0  ;;  %v10209_v26 = vld [vmem:[#allocation61_spill] sm:$0xff]  ;;  %v10210_v15 = vld [vmem:[#allocation62_spill] sm:$0xff] }
 0x1d1   :  { %6869 = vmatpush1.bf16.msra.mxu1 %v6868_v24 }
 0x1d2   :  { %v2778_v2 = vpop.f32.mrb[82].mxu0 }
 0x1d3   :  { %v2869_v22 = vmul.f32 %v2778_v2, %v8151_v40  ;;  %v2780_v44 = vpop.f32.mrb[83].mxu0 }
 0x1d4   :  { %v2870_v21 = vmul.f32 %v2780_v44, %v8153_v41  ;;  %v10211_v44 = vld [vmem:[#allocation39_spill] sm:$0xff] }
 0x1d5   :  { %v6872_v18 = vpack.c.bf16 %v2869_v22, %v2867_v25  ;;  %v10212_v22 = vld [vmem:[#allocation40_spill] sm:$0xff] }
 0x1d6   :  { %v6870_v54 = vpack.c.bf16 %v2870_v21, %v2868_v3  ;;  %v2784_v45 = vpop.f32.mrb[84].mxu0 }
 0x1d7   :  { %v2871_v42 = vmul.f32 %v2784_v45, %v10207_v16  ;;  %v2786_v10 = vpop.f32.mrb[85].mxu0 }
 0x1d8   :  { %v2872_v55 = vmul.f32 %v2786_v10, %v10208_v46  ;;  %6871 = vmatprep.subr.bf16.mxu1 %v6870_v54  ;;  %v10213_v10 = vld [vmem:[#allocation63_spill] sm:$0xff]  ;;  %v10214_v46 = vld [vmem:[#allocation64_spill] sm:$0xff] }
 0x1d9   :  { %6873 = vmatpush1.bf16.msra.mxu1 %v6872_v18 }
 0x1da   :  { %v2790_v12 = vpop.f32.mrb[86].mxu0 }
 0x1db   :  { %v2873_v0 = vmul.f32 %v2790_v12, %v10209_v26  ;;  %v2792_v24 = vpop.f32.mrb[87].mxu0 }
 0x1dc   :  { %v2874_v14 = vmul.f32 %v2792_v24, %v10210_v15  ;;  %v10215_v24 = vld [vmem:[#allocation42_spill] sm:$0xff] }
 0x1dd   :  { %v6876_v2 = vpack.c.bf16 %v2873_v0, %v2871_v42 }
 0x1de   :  { %v6874_v40 = vpack.c.bf16 %v2874_v14, %v2872_v55  ;;  %v2796_v39 = vpop.f32.mrb[88].mxu0  ;;  %v10216_v55 = vld [vmem:[#allocation44_spill] sm:$0xff] }
 0x1df   :  { %v2875_v25 = vmul.f32 %v2796_v39, %v10211_v44  ;;  %v2798_v3 = vpop.f32.mrb[89].mxu0 }
 0x1e0   :  { %v2876_v21 = vmul.f32 %v2798_v3, %v10212_v22  ;;  %6875 = vmatprep.subr.bf16.mxu1 %v6874_v40  ;;  %v10217_v3 = vld [vmem:[#allocation65_spill] sm:$0xff]  ;;  %v10218_v22 = vld [vmem:[#allocation66_spill] sm:$0xff] }
 0x1e1   :  { %6877 = vmatpush1.bf16.msra.mxu1 %v6876_v2 }
 0x1e2   :  { %v2802_v45 = vpop.f32.mrb[90].mxu0 }
 0x1e3   :  { %v2877_v54 = vmul.f32 %v2802_v45, %v10213_v10  ;;  %v2804_v18 = vpop.f32.mrb[91].mxu0 }
 0x1e4   :  { %v2878_v16 = vmul.f32 %v2804_v18, %v10214_v46 }
 0x1e5   :  { %v6880_v12 = vpack.c.bf16 %v2877_v54, %v2875_v25 }
 0x1e6   :  { %v6878_v26 = vpack.c.bf16 %v2878_v16, %v2876_v21  ;;  %v2808_v41 = vpop.f32.mrb[92].mxu0  ;;  %v143_v16 = vld [vmem:[%s9938_s4] sm:$0xff] }
 0x1e7   :  { %v2879_v42 = vmul.f32 %v2808_v41, %v10215_v24  ;;  %v2810_v14 = vpop.f32.mrb[93].mxu0  ;;  %v10219_v41 = vmov 0.0|0.0   ;;  %v10221_v21 = vld [vmem:[#allocation2_spill] sm:$0xff] }
 0x1e8   :  { %v2880_v0 = vmul.f32 %v2810_v14, %v10216_v55  ;;  %6879 = vmatprep.subr.bf16.mxu1 %v6878_v26  ;;  %v137_v26 = vld [vmem:[%s9939_s2 + $0x90] sm:$0xff] }
 0x1e9   :  { %6881 = vmatpush1.bf16.msra.mxu1 %v6880_v12  ;;  %v10223_v14 = vld [vmem:[#allocation4_spill] sm:$0xff] }
 0x1ea   :  { %v2814_v39 = vpop.f32.mrb[94].mxu0 }
 0x1eb   :  { %v2881_v40 = vmul.f32 %v2814_v39, %v10217_v3  ;;  %v2816_v2 = vpop.f32.mrb[95].mxu0 }
 0x1ec   :  { %v2882_v44 = vmul.f32 %v2816_v2, %v10218_v22 }
 0x1ed   :  { %v6884_v45 = vpack.c.bf16 %v2881_v40, %v2879_v42 }
 0x1ee   :  { %v6882_v10 = vpack.c.bf16 %v2882_v44, %v2880_v0  ;;  %v138_v44 = vld [vmem:[%s9939_s2 + $0x98] sm:$0xff]  ;;  %v10224_v0 = vmov 0.0  }
 0x1ef   :  { %v8353_v25 = vpack.c.bf16 %v138_v44, %v137_v26 }
 0x1f0   :  { %6883 = vmatprep.subr.bf16.mxu1 %v6882_v10 }
 0x1f1   :  { %6885 = vmatpush1.bf16.msra.mxu1 %v6884_v45  ;;  %10220 = vst [vmem:[#allocation76_spill] sm:$0xff] %v8353_v25  ;;  %6951 = vmatpush1.bf16.msra.mxu0 %v8353_v25 }
 0x1f2   :  { %6886 = vmatprep.subr.bf16.mxu1 %v10219_v41 }
 0x1f4   :  { %2948 = vmatmul.mubr.f32.vlgmr.msra.gmra.mrb[32].mxu1 %v143_v16 }
 0x1f5   :  { %6888 = vmatpush1.bf16.msra.mxu1 %v8181_v17 }
 0x1f6   :  { %6889 = vmatprep.subr.bf16.mxu1 %v10219_v41 }
 0x1f9   :  { %6891 = vmatpush1.bf16.msra.mxu1 %v8193_v8 }
 0x1fa   :  { %6892 = vmatprep.subr.bf16.mxu1 %v10219_v41 }
 0x1fd   :  { %6894 = vmatpush1.bf16.msra.mxu1 %v8205_v47 }
 0x1fe   :  { %6895 = vmatprep.subr.bf16.mxu1 %v10219_v41 }
 0x201   :  { %6897 = vmatpush1.bf16.msra.mxu1 %v8217_v43 }
 0x202   :  { %6898 = vmatprep.subr.bf16.mxu1 %v10219_v41 }
 0x205   :  { %6900 = vmatpush1.bf16.msra.mxu1 %v8229_v23 }
 0x206   :  { %6901 = vmatprep.subr.bf16.mxu1 %v10219_v41 }
 0x209   :  { %6903 = vmatpush1.bf16.msra.mxu1 %v8241_v63 }
 0x20a   :  { %6904 = vmatprep.subr.bf16.mxu1 %v10219_v41 }
 0x20d   :  { %6906 = vmatpush1.bf16.msra.mxu1 %v8253_v19 }
 0x20e   :  { %6907 = vmatprep.subr.bf16.mxu1 %v10219_v41 }
 0x211   :  { %6909 = vmatpush1.bf16.msra.mxu1 %v8265_v20 }
 0x212   :  { %6910 = vmatprep.subr.bf16.mxu1 %v10219_v41 }
 0x215   :  { %6912 = vmatpush1.bf16.msra.mxu1 %v8277_v5 }
 0x216   :  { %6913 = vmatprep.subr.bf16.mxu1 %v10219_v41 }
 0x219   :  { %6915 = vmatpush1.bf16.msra.mxu1 %v8353_v25 }
 0x21a   :  { %6918 = vmatprep.subr.msk.bf16.mxu1 %vm7792_vm4, %v10221_v21 }
 0x2c7   :  { %v2949_v54 = vpop.f32.mrb[32].mxu1 }
 0x2c8   :  { %v2951_v18 = vpop.f32.mrb[33].mxu1  ;;  %v2954_v42 = vmul.f32 %v2949_v54, %v2949_v54 }
 0x2c9   :  { %v2955_v12 = vmul.f32 %v2951_v18, %v2951_v18 }
 0x2cb   :  { %6608 = vmatprep.mubr.msk.f32.mxu1 %vm2956_vm5, %v2955_v12 }
 0x2cc   :  { %3025 = vmatmul.mubr.f32.vlgmr.msra.gmra.mrb[34].mxu1 %v2954_v42 }
 0x2cd   :  { %6921 = vmatpush1.bf16.msk.msra.mxu1 %vm7792_vm4, %v10223_v14  ;;  %3109 = vmatprep.mubr.f32.mxu1 %v10224_v0 }
 0x39f   :  { %v3026_v39 = vpop.f32.mrb[34].mxu1 }
 0x3a0   :  { %7219 = vrsqrt.f32 %v3026_v39  ;;  %v3028_v40 = vpop.f32.mrb[35].mxu1  ;;  %vm3033_vm6 = vcmp.eq.f32.partialorder %v3026_v39, inf  ;;  %v3036_v16 = vand.u32 2147483648, %v3026_v39  ;;  %vm3035_vm7 = vcmp.eq.f32.partialorder %v3026_v39, 0.0 }
 0x3a1   :  { %v3030_v22 = vadd.f32 1.0, %v3026_v39 }
 0x3aa   :  { %v7220_v2 = vpop.eup %7219 }
 0x3ab   :  { %v3032_v45 = vmul.f32 %v7220_v2, %v3026_v39  ;;  %v145_v2 = vld [vmem:[%s9940_s5] sm:$0xff] }
 0x3ad   :  { %v3034_v26 = vsel %vm3033_vm6, %v3026_v39, %v3032_v45  ;;  %v155_v45 = vld [vmem:[%s9940_s5 + $0x50] sm:$0xff] }
 0x3ae   :  { %v3037_v44 = vsel %vm3035_vm7, %v3036_v16, %v3034_v26  ;;  %v156_v16 = vld [vmem:[%s9940_s5 + $0x58] sm:$0xff]  ;;  %v157_v26 = vld [vmem:[%s9940_s5 + $0x60] sm:$0xff] }
 0x3af   :  { %v3038_v3 = vadd.f32 1e-08, %v3037_v44  ;;  %v158_v44 = vld [vmem:[%s9940_s5 + $0x68] sm:$0xff] }
 0x3b1   :  { %v3039_v12 = vmul.f32 %v3038_v3, %v3030_v22  ;;  %v146_v22 = vld [vmem:[%s9940_s5 + $0x8] sm:$0xff] }
 0x3b2   :  { %v150_v3 = vld [vmem:[%s9940_s5 + $0x28] sm:$0xff] }
 0x3b3   :  { %7221 = vrcp.f32 %v3039_v12  ;;  %v159_v12 = vld [vmem:[%s9940_s5 + $0x70] sm:$0xff] }
 0x3bd   :  { %v7222_v42 = vpop.eup %7221 }
 0x3be   :  { %v3041_v55 = vmul.f32 %v7222_v42, %v3026_v39  ;;  %v154_v39 = vld [vmem:[%s9940_s5 + $0x48] sm:$0xff]  ;;  %v160_v42 = vld [vmem:[%s9940_s5 + $0x78] sm:$0xff] }
 0x3c0   :  { %6611 = vmatmul.mubr.msk.f32.vlgmr.msra.gmra.mrb[36].mxu1 %vm2546_vm0, %v3041_v55  ;;  %v149_v55 = vld [vmem:[%s9940_s5 + $0x20] sm:$0xff] }
 0x3c1   :  { %3278 = vmatprep.mubr.f32.mxu1 %v10224_v0 }
 0x493   :  { %v3111_v14 = vpop.f32.mrb[36].mxu1 }
 0x494   :  { %v3116_v24 = vmul.f32 %v3111_v14, %v2949_v54  ;;  %v3113_v40 = vpop.f32.mrb[37].mxu1  ;;  %v151_v54 = vld [vmem:[%s9940_s5 + $0x30] sm:$0xff]  ;;  %v153_v14 = vld [vmem:[%s9940_s5 + $0x40] sm:$0xff] }
 0x495   :  { %v3117_v46 = vmul.f32 %v3113_v40, %v2951_v18  ;;  %v152_v18 = vld [vmem:[%s9940_s5 + $0x38] sm:$0xff]  ;;  %v161_v40 = vld [vmem:[%s9940_s5 + $0x80] sm:$0xff] }
 0x497   :  { %3214 = vmatprep.subr.mxu1 %v3117_v46  ;;  %v147_v46 = vld [vmem:[%s9940_s5 + $0x10] sm:$0xff] }
 0x498   :  { %3215 = vmatpush1.msra.mxu1 %v3116_v24  ;;  %v148_v24 = vld [vmem:[%s9940_s5 + $0x18] sm:$0xff] }
 0x499   :  { %6612 = vmatmul.mubr.msk.f32.vlgmr.msra.gmra.mrb[38].mxu1 %vm177_vm1, %v145_v2  ;;  %7194 = vmatprep.subr.bf16.mxu1 %v10219_v41  ;;  %v162_v2 = vld [vmem:[%s9940_s5 + $0x88] sm:$0xff] }
 0x49a   :  { %3284 = vmatprep.mubr.f32.mxu1 %v10224_v0  ;;  %7204 = vmatpush1.bf16.msra.mxu1 %v8181_v17 }
 0x49b   :  { %7195 = vmatprep.subr.bf16.mxu1 %v10219_v41 }
 0x49d   :  { %6613 = vmatmul.mubr.msk.f32.gmra.mrb[40].mxu1 %vm177_vm1, %v146_v22  ;;  %v163_v22 = vld [vmem:[%s9940_s5 + $0x90] sm:$0xff] }
 0x49e   :  { %3290 = vmatprep.mubr.f32.mxu1 %v10224_v0  ;;  %7205 = vmatpush1.bf16.msra.mxu1 %v8193_v8 }
 0x49f   :  { %7196 = vmatprep.subr.bf16.mxu1 %v10219_v41 }
 0x4a1   :  { %6614 = vmatmul.mubr.msk.f32.gmra.mrb[42].mxu1 %vm177_vm1, %v147_v46  ;;  %v164_v46 = vld [vmem:[%s9940_s5 + $0x98] sm:$0xff] }
 0x4a2   :  { %3296 = vmatprep.mubr.f32.mxu1 %v10224_v0  ;;  %7206 = vmatpush1.bf16.msra.mxu1 %v8205_v47 }
 0x4a3   :  { %7197 = vmatprep.subr.bf16.mxu1 %v10219_v41 }
 0x4a5   :  { %6615 = vmatmul.mubr.msk.f32.gmra.mrb[44].mxu1 %vm177_vm1, %v148_v24  ;;  %v165_v24 = vld [vmem:[%s9940_s5 + $0xa0] sm:$0xff] }
 0x4a6   :  { %3302 = vmatprep.mubr.f32.mxu1 %v10224_v0  ;;  %7207 = vmatpush1.bf16.msra.mxu1 %v8217_v43 }
 0x4a7   :  { %7198 = vmatprep.subr.bf16.mxu1 %v10219_v41 }
 0x4a9   :  { %6616 = vmatmul.mubr.msk.f32.gmra.mrb[46].mxu1 %vm177_vm1, %v149_v55  ;;  %v166_v55 = vld [vmem:[%s9940_s5 + $0xa8] sm:$0xff] }
 0x4aa   :  { %3308 = vmatprep.mubr.f32.mxu1 %v10224_v0  ;;  %7208 = vmatpush1.bf16.msra.mxu1 %v8229_v23 }
 0x4ab   :  { %7199 = vmatprep.subr.bf16.mxu1 %v10219_v41 }
 0x4ad   :  { %6617 = vmatmul.mubr.msk.f32.gmra.mrb[48].mxu1 %vm177_vm1, %v150_v3  ;;  %v167_v3 = vld [vmem:[%s9940_s5 + $0xb0] sm:$0xff] }
 0x4ae   :  { %3314 = vmatprep.mubr.f32.mxu1 %v10224_v0  ;;  %7209 = vmatpush1.bf16.msra.mxu1 %v8241_v63 }
 0x4af   :  { %7200 = vmatprep.subr.bf16.mxu1 %v10219_v41 }
 0x4b1   :  { %6618 = vmatmul.mubr.msk.f32.gmra.mrb[50].mxu1 %vm177_vm1, %v151_v54  ;;  %v168_v54 = vld [vmem:[%s9940_s5 + $0xb8] sm:$0xff] }
 0x4b2   :  { %3320 = vmatprep.mubr.f32.mxu1 %v10224_v0  ;;  %7210 = vmatpush1.bf16.msra.mxu1 %v8253_v19 }
 0x4b3   :  { %7201 = vmatprep.subr.bf16.mxu1 %v10219_v41 }
 0x4b5   :  { %6619 = vmatmul.mubr.msk.f32.gmra.mrb[52].mxu1 %vm177_vm1, %v152_v18  ;;  %v169_v18 = vld [vmem:[%s9940_s5 + $0xc0] sm:$0xff] }
 0x4b6   :  { %3326 = vmatprep.mubr.f32.mxu1 %v10224_v0  ;;  %7211 = vmatpush1.bf16.msra.mxu1 %v8265_v20 }
 0x4b7   :  { %7202 = vmatprep.subr.bf16.mxu1 %v10219_v41 }
 0x4b9   :  { %6620 = vmatmul.mubr.msk.f32.gmra.mrb[54].mxu1 %vm177_vm1, %v153_v14  ;;  %v170_v14 = vld [vmem:[%s9940_s5 + $0xc8] sm:$0xff] }
 0x4ba   :  { %3332 = vmatprep.mubr.f32.mxu1 %v10224_v0  ;;  %7212 = vmatpush1.bf16.msra.mxu1 %v8277_v5 }
 0x4bb   :  { %7203 = vmatprep.subr.bf16.mxu1 %v10219_v41 }
 0x4bd   :  { %6621 = vmatmul.mubr.msk.f32.gmra.mrb[56].mxu1 %vm177_vm1, %v154_v39  ;;  %v171_v39 = vld [vmem:[%s9940_s5 + $0xd0] sm:$0xff] }
 0x4be   :  { %3338 = vmatprep.mubr.f32.mxu1 %v10224_v0  ;;  %7213 = vmatpush1.bf16.msra.mxu1 %v8353_v25 }
 0x4bf   :  { %6954 = vmatprep.subr.msk.bf16.mxu1 %vm7792_vm4, %v10221_v21 }
 0x4c1   :  { %6622 = vmatmul.mubr.msk.f32.gmra.mrb[58].mxu1 %vm177_vm1, %v155_v45  ;;  %v172_v45 = vld [vmem:[%s9940_s5 + $0xd8] sm:$0xff] }
 0x4c2   :  { %3344 = vmatprep.mubr.f32.mxu1 %v10224_v0 }
 0x4c5   :  { %6623 = vmatmul.mubr.msk.f32.gmra.mrb[60].mxu1 %vm177_vm1, %v156_v16  ;;  %v173_v16 = vld [vmem:[%s9940_s5 + $0xe0] sm:$0xff] }
 0x4c6   :  { %3350 = vmatprep.mubr.f32.mxu1 %v10224_v0 }
 0x4c9   :  { %6624 = vmatmul.mubr.msk.f32.gmra.mrb[62].mxu1 %vm177_vm1, %v157_v26  ;;  %v174_v26 = vld [vmem:[%s9940_s5 + $0xe8] sm:$0xff] }
 0x4ca   :  { %3356 = vmatprep.mubr.f32.mxu1 %v10224_v0 }
 0x4cd   :  { %6625 = vmatmul.mubr.msk.f32.gmra.mrb[64].mxu1 %vm177_vm1, %v158_v44  ;;  %v175_v44 = vld [vmem:[%s9940_s5 + $0xf0] sm:$0xff] }
 0x4ce   :  { %3362 = vmatprep.mubr.f32.mxu1 %v10224_v0 }
 0x4d1   :  { %6626 = vmatmul.mubr.msk.f32.gmra.mrb[66].mxu1 %vm177_vm1, %v159_v12  ;;  %v176_v12 = vld [vmem:[%s9940_s5 + $0xf8] sm:$0xff] }
 0x4d2   :  { %3368 = vmatprep.mubr.f32.mxu1 %v10224_v0 }
 0x4d5   :  { %6627 = vmatmul.mubr.msk.f32.gmra.mrb[68].mxu1 %vm177_vm1, %v160_v42 }
 0x4d6   :  { %3374 = vmatprep.mubr.f32.mxu1 %v10224_v0 }
 0x4d9   :  { %6628 = vmatmul.mubr.msk.f32.gmra.mrb[70].mxu1 %vm177_vm1, %v161_v40  ;;  %v10225_v40 = vld [vmem:[#allocation5_spill] sm:$0xff] }
 0x4da   :  { %3380 = vmatprep.mubr.f32.mxu1 %v10224_v0 }
 0x4dd   :  { %6629 = vmatmul.mubr.msk.f32.gmra.mrb[72].mxu1 %vm177_vm1, %v162_v2 }
 0x4de   :  { %3386 = vmatprep.mubr.f32.mxu1 %v10224_v0 }
 0x4e1   :  { %6630 = vmatmul.mubr.msk.f32.gmra.mrb[74].mxu1 %vm177_vm1, %v163_v22 }
 0x4e2   :  { %3392 = vmatprep.mubr.f32.mxu1 %v10224_v0 }
 0x4e5   :  { %6631 = vmatmul.mubr.msk.f32.gmra.mrb[76].mxu1 %vm177_vm1, %v164_v46  ;;  %v10226_v46 = vld [vmem:[#allocation6_spill] sm:$0xff] }
 0x4e6   :  { %3398 = vmatprep.mubr.f32.mxu1 %v10224_v0 }
 0x4e9   :  { %6632 = vmatmul.mubr.msk.f32.gmra.mrb[78].mxu1 %vm177_vm1, %v165_v24 }
 0x4ea   :  { %3404 = vmatprep.mubr.f32.mxu1 %v10224_v0 }
 0x4ed   :  { %6633 = vmatmul.mubr.msk.f32.gmra.mrb[80].mxu1 %vm177_vm1, %v166_v55 }
 0x4ee   :  { %3410 = vmatprep.mubr.f32.mxu1 %v10224_v0 }
 0x4f1   :  { %6634 = vmatmul.mubr.msk.f32.gmra.mrb[82].mxu1 %vm177_vm1, %v167_v3 }
 0x4f2   :  { %3416 = vmatprep.mubr.f32.mxu1 %v10224_v0 }
 0x4f5   :  { %6635 = vmatmul.mubr.msk.f32.gmra.mrb[84].mxu1 %vm177_vm1, %v168_v54 }
 0x4f6   :  { %3422 = vmatprep.mubr.f32.mxu1 %v10224_v0 }
 0x4f9   :  { %6636 = vmatmul.mubr.msk.f32.gmra.mrb[86].mxu1 %vm177_vm1, %v169_v18 }
 0x4fa   :  { %3428 = vmatprep.mubr.f32.mxu1 %v10224_v0 }
 0x4fd   :  { %6637 = vmatmul.mubr.msk.f32.gmra.mrb[88].mxu1 %vm177_vm1, %v170_v14 }
 0x4fe   :  { %3434 = vmatprep.mubr.f32.mxu1 %v10224_v0 }
 0x501   :  { %6638 = vmatmul.mubr.msk.f32.gmra.mrb[90].mxu1 %vm177_vm1, %v171_v39  ;;  %v10227_v39 = vld [vmem:[#allocation7_spill] sm:$0xff] }
 0x502   :  { %3440 = vmatprep.mubr.f32.mxu1 %v10224_v0 }
 0x505   :  { %6639 = vmatmul.mubr.msk.f32.gmra.mrb[92].mxu1 %vm177_vm1, %v172_v45 }
 0x506   :  { %3446 = vmatprep.mubr.f32.mxu1 %v10224_v0 }
 0x509   :  { %6640 = vmatmul.mubr.msk.f32.gmra.mrb[94].mxu1 %vm177_vm1, %v173_v16 }
 0x50a   :  { %3452 = vmatprep.mubr.f32.mxu1 %v10224_v0 }
 0x50d   :  { %6641 = vmatmul.mubr.msk.f32.gmra.mrb[96].mxu1 %vm177_vm1, %v174_v26  ;;  %v10228_v26 = vld [vmem:[#allocation8_spill] sm:$0xff] }
 0x50e   :  { %3458 = vmatprep.mubr.f32.mxu1 %v10224_v0 }
 0x511   :  { %6642 = vmatmul.mubr.msk.f32.gmra.mrb[98].mxu1 %vm177_vm1, %v175_v44 }
 0x512   :  { %3464 = vmatprep.mubr.f32.mxu1 %v10224_v0 }
 0x515   :  { %6643 = vmatmul.mubr.msk.f32.gmra.mrb[100].mxu1 %vm177_vm1, %v176_v12 }
 0x56c   :  { %v3280_v42 = vpop.f32.mrb[38].mxu1 }
 0x56d   :  { %v3471_v2 = vmul.f32 %v3280_v42, %v10225_v40  ;;  %v3282_v22 = vpop.f32.mrb[39].mxu1  ;;  %v10229_v42 = vld [vmem:[#allocation23_spill] sm:$0xff] }
 0x56e   :  { %v3472_v24 = vmul.f32 %v3282_v22, %v10226_v46 }
 0x570   :  { %v3286_v55 = vpop.f32.mrb[40].mxu1  ;;  %6644 = vmatprep.mubr.msk.f32.mxu0 %vm2956_vm5, %v3472_v24 }
 0x571   :  { %v3473_v3 = vmul.f32 %v3286_v55, %v8038_v58  ;;  %v3288_v54 = vpop.f32.mrb[41].mxu1  ;;  %3696 = vmatmul.mubr.f32.vlgmr.msra.gmra.mrb[96].mxu0 %v3471_v2  ;;  %v10230_v55 = vld [vmem:[#allocation25_spill] sm:$0xff] }
 0x572   :  { %v3474_v18 = vmul.f32 %v3288_v54, %v8044_v60 }
 0x574   :  { %v3292_v14 = vpop.f32.mrb[42].mxu1  ;;  %6645 = vmatprep.mubr.msk.f32.mxu0 %vm2956_vm5, %v3474_v18 }
 0x575   :  { %v3475_v45 = vmul.f32 %v3292_v14, %v10227_v39  ;;  %v3294_v16 = vpop.f32.mrb[43].mxu1  ;;  %3701 = vmatmul.mubr.f32.gmra.mrb[98].mxu0 %v3473_v3 }
 0x576   :  { %v3476_v44 = vmul.f32 %v3294_v16, %v10228_v26  ;;  %v10231_v16 = vld [vmem:[#allocation29_spill] sm:$0xff] }
 0x578   :  { %v3298_v12 = vpop.f32.mrb[44].mxu1  ;;  %6646 = vmatprep.mubr.msk.f32.mxu0 %vm2956_vm5, %v3476_v44 }
 0x579   :  { %v3477_v22 = vmul.f32 %v3298_v12, %v10229_v42  ;;  %v3300_v24 = vpop.f32.mrb[45].mxu1  ;;  %3706 = vmatmul.mubr.f32.gmra.mrb[100].mxu0 %v3475_v45  ;;  %v10232_v12 = vld [vmem:[#allocation31_spill] sm:$0xff] }
 0x57a   :  { %v3478_v2 = vmul.f32 %v3300_v24, %v10230_v55 }
 0x57c   :  { %v3304_v21 = vpop.f32.mrb[46].mxu1  ;;  %6647 = vmatprep.mubr.msk.f32.mxu0 %vm2956_vm5, %v3478_v2 }
 0x57d   :  { %v3479_v54 = vmul.f32 %v3304_v21, %v8005_v48  ;;  %v3306_v18 = vpop.f32.mrb[47].mxu1  ;;  %3711 = vmatmul.mubr.f32.gmra.mrb[102].mxu0 %v3477_v22 }
 0x57e   :  { %v3480_v3 = vmul.f32 %v3306_v18, %v8008_v49  ;;  %v10233_v18 = vld [vmem:[#allocation35_spill] sm:$0xff] }
 0x580   :  { %v3310_v14 = vpop.f32.mrb[48].mxu1  ;;  %6648 = vmatprep.mubr.msk.f32.mxu0 %vm2956_vm5, %v3480_v3 }
 0x581   :  { %v3481_v44 = vmul.f32 %v3310_v14, %v10231_v16  ;;  %v3312_v26 = vpop.f32.mrb[49].mxu1  ;;  %3716 = vmatmul.mubr.f32.gmra.mrb[104].mxu0 %v3479_v54  ;;  %v10234_v14 = vld [vmem:[#allocation37_spill] sm:$0xff] }
 0x582   :  { %v3482_v45 = vmul.f32 %v3312_v26, %v10232_v12 }
 0x584   :  { %v3316_v42 = vpop.f32.mrb[50].mxu1  ;;  %6649 = vmatprep.mubr.msk.f32.mxu0 %vm2956_vm5, %v3482_v45 }
 0x585   :  { %v3483_v24 = vmul.f32 %v3316_v42, %v8012_v50  ;;  %v3318_v2 = vpop.f32.mrb[51].mxu1  ;;  %3721 = vmatmul.mubr.f32.gmra.mrb[106].mxu0 %v3481_v44 }
 0x586   :  { %v3484_v21 = vmul.f32 %v3318_v2, %v8015_v51  ;;  %v10235_v2 = vld [vmem:[#allocation41_spill] sm:$0xff] }
 0x588   :  { %v3322_v22 = vpop.f32.mrb[52].mxu1  ;;  %6650 = vmatprep.mubr.msk.f32.mxu0 %vm2956_vm5, %v3484_v21 }
 0x589   :  { %v3485_v3 = vmul.f32 %v3322_v22, %v10233_v18  ;;  %v3324_v49 = vpop.f32.mrb[53].mxu1  ;;  %3726 = vmatmul.mubr.f32.gmra.mrb[108].mxu0 %v3483_v24  ;;  %v10236_v22 = vld [vmem:[#allocation43_spill] sm:$0xff] }
 0x58a   :  { %v3486_v54 = vmul.f32 %v3324_v49, %v10234_v14  ;;  %v10237_v49 = vld [vmem:[#allocation15_spill] sm:$0xff] }
 0x58c   :  { %v3328_v16 = vpop.f32.mrb[54].mxu1  ;;  %6651 = vmatprep.mubr.msk.f32.mxu0 %vm2956_vm5, %v3486_v54 }
 0x58d   :  { %v3487_v26 = vmul.f32 %v3328_v16, %v8019_v52  ;;  %v3330_v45 = vpop.f32.mrb[55].mxu1  ;;  %3731 = vmatmul.mubr.f32.gmra.mrb[110].mxu0 %v3485_v3  ;;  %v10238_v16 = vld [vmem:[#allocation16_spill] sm:$0xff] }
 0x58e   :  { %v3488_v42 = vmul.f32 %v3330_v45, %v8022_v53  ;;  %v10239_v45 = vld [vmem:[#allocation45_spill] sm:$0xff] }
 0x590   :  { %v3334_v44 = vpop.f32.mrb[56].mxu1  ;;  %6652 = vmatprep.mubr.msk.f32.mxu0 %vm2956_vm5, %v3488_v42 }
 0x591   :  { %v3489_v21 = vmul.f32 %v3334_v44, %v10235_v2  ;;  %v3336_v51 = vpop.f32.mrb[57].mxu1  ;;  %3736 = vmatmul.mubr.f32.gmra.mrb[112].mxu0 %v3487_v26 }
 0x592   :  { %v3490_v24 = vmul.f32 %v3336_v51, %v10236_v22 }
 0x594   :  { %v3340_v18 = vpop.f32.mrb[58].mxu1  ;;  %6653 = vmatprep.mubr.msk.f32.mxu0 %vm2956_vm5, %v3490_v24 }
 0x595   :  { %v3491_v54 = vmul.f32 %v3340_v18, %v10237_v49  ;;  %v3342_v14 = vpop.f32.mrb[59].mxu1  ;;  %3741 = vmatmul.mubr.f32.gmra.mrb[114].mxu0 %v3489_v21 }
 0x596   :  { %v3492_v3 = vmul.f32 %v3342_v14, %v10238_v16 }
 0x598   :  { %v3346_v52 = vpop.f32.mrb[60].mxu1  ;;  %6654 = vmatprep.mubr.msk.f32.mxu0 %vm2956_vm5, %v3492_v3 }
 0x599   :  { %v3493_v42 = vmul.f32 %v3346_v52, %v10239_v45  ;;  %v3348_v53 = vpop.f32.mrb[61].mxu1  ;;  %3746 = vmatmul.mubr.f32.gmra.mrb[116].mxu0 %v3491_v54 }
 0x59a   :  { %v3494_v26 = vmul.f32 %v3348_v53, %v8125_v27 }
 0x59c   :  { %v3352_v44 = vpop.f32.mrb[62].mxu1  ;;  %6655 = vmatprep.mubr.msk.f32.mxu0 %vm2956_vm5, %v3494_v26 }
 0x59d   :  { %v3495_v51 = vmul.f32 %v3352_v44, %v8033_v56  ;;  %v3354_v24 = vpop.f32.mrb[63].mxu1  ;;  %3751 = vmatmul.mubr.f32.gmra.mrb[118].mxu0 %v3493_v42 }
 0x59e   :  { %v3496_v18 = vmul.f32 %v3354_v24, %v8036_v57 }
 0x5a0   :  { %v3358_v21 = vpop.f32.mrb[64].mxu1  ;;  %6656 = vmatprep.mubr.msk.f32.mxu0 %vm2956_vm5, %v3496_v18 }
 0x5a1   :  { %v3497_v14 = vmul.f32 %v3358_v21, %v8127_v28  ;;  %v3360_v3 = vpop.f32.mrb[65].mxu1  ;;  %3756 = vmatmul.mubr.f32.gmra.mrb[120].mxu0 %v3495_v51 }
 0x5a2   :  { %v3498_v52 = vmul.f32 %v3360_v3, %v8129_v29 }
 0x5a4   :  { %v3364_v54 = vpop.f32.mrb[66].mxu1  ;;  %6657 = vmatprep.mubr.msk.f32.mxu0 %vm2956_vm5, %v3498_v52 }
 0x5a5   :  { %v3499_v53 = vmul.f32 %v3364_v54, %v8042_v59  ;;  %v3366_v26 = vpop.f32.mrb[67].mxu1  ;;  %3761 = vmatmul.mubr.f32.gmra.mrb[122].mxu0 %v3497_v14 }
 0x5a6   :  { %v3500_v42 = vmul.f32 %v3366_v26, %v8047_v61 }
 0x5a8   :  { %v3370_v44 = vpop.f32.mrb[68].mxu1  ;;  %6658 = vmatprep.mubr.msk.f32.mxu0 %vm2956_vm5, %v3500_v42 }
 0x5a9   :  { %v3501_v24 = vmul.f32 %v3370_v44, %v8131_v30  ;;  %v3372_v18 = vpop.f32.mrb[69].mxu1  ;;  %3766 = vmatmul.mubr.f32.gmra.mrb[124].mxu0 %v3499_v53 }
 0x5aa   :  { %v3502_v51 = vmul.f32 %v3372_v18, %v8133_v31 }
 0x5ac   :  { %v3376_v21 = vpop.f32.mrb[70].mxu1  ;;  %6659 = vmatprep.mubr.msk.f32.mxu0 %vm2956_vm5, %v3502_v51 }
 0x5ad   :  { %v3503_v3 = vmul.f32 %v3376_v21, %v8051_v62  ;;  %v3378_v52 = vpop.f32.mrb[71].mxu1  ;;  %3771 = vmatmul.mubr.f32.gmra.mrb[126].mxu0 %v3501_v24 }
 0x5ae   :  { %v3504_v14 = vmul.f32 %v3378_v52, %v8054_v1 }
 0x5b0   :  { %v3382_v54 = vpop.f32.mrb[72].mxu1  ;;  %6660 = vmatprep.mubr.msk.f32.mxu0 %vm2956_vm5, %v3504_v14 }
 0x5b1   :  { %v3505_v26 = vmul.f32 %v3382_v54, %v8135_v32  ;;  %v3384_v42 = vpop.f32.mrb[73].mxu1  ;;  %3776 = vmatmul.mubr.f32.gmra.mrb[128].mxu0 %v3503_v3 }
 0x5b2   :  { %v3506_v53 = vmul.f32 %v3384_v42, %v8137_v33 }
 0x5b4   :  { %v3388_v44 = vpop.f32.mrb[74].mxu1  ;;  %6661 = vmatprep.mubr.msk.f32.mxu0 %vm2956_vm5, %v3506_v53 }
 0x5b5   :  { %v3507_v18 = vmul.f32 %v3388_v44, %v8060_v4  ;;  %v3390_v51 = vpop.f32.mrb[75].mxu1  ;;  %3781 = vmatmul.mubr.f32.gmra.mrb[130].mxu0 %v3505_v26 }
 0x5b6   :  { %v3508_v24 = vmul.f32 %v3390_v51, %v8065_v6 }
 0x5b8   :  { %v3394_v21 = vpop.f32.mrb[76].mxu1  ;;  %6662 = vmatprep.mubr.msk.f32.mxu0 %vm2956_vm5, %v3508_v24 }
 0x5b9   :  { %v3509_v52 = vmul.f32 %v3394_v21, %v8139_v34  ;;  %v3396_v14 = vpop.f32.mrb[77].mxu1  ;;  %3786 = vmatmul.mubr.f32.gmra.mrb[132].mxu0 %v3507_v18 }
 0x5ba   :  { %v3510_v3 = vmul.f32 %v3396_v14, %v8141_v35 }
 0x5bc   :  { %v3400_v54 = vpop.f32.mrb[78].mxu1  ;;  %6663 = vmatprep.mubr.msk.f32.mxu0 %vm2956_vm5, %v3510_v3 }
 0x5bd   :  { %v3511_v42 = vmul.f32 %v3400_v54, %v8069_v7  ;;  %v3402_v53 = vpop.f32.mrb[79].mxu1  ;;  %3791 = vmatmul.mubr.f32.gmra.mrb[134].mxu0 %v3509_v52 }
 0x5be   :  { %v3512_v26 = vmul.f32 %v3402_v53, %v8072_v9 }
 0x5c0   :  { %v3406_v44 = vpop.f32.mrb[80].mxu1  ;;  %6664 = vmatprep.mubr.msk.f32.mxu0 %vm2956_vm5, %v3512_v26 }
 0x5c1   :  { %v3513_v51 = vmul.f32 %v3406_v44, %v8143_v36  ;;  %v3408_v24 = vpop.f32.mrb[81].mxu1  ;;  %3796 = vmatmul.mubr.f32.gmra.mrb[136].mxu0 %v3511_v42  ;;  %v10240_v44 = vld [vmem:[#allocation58_spill] sm:$0xff] }
 0x5c2   :  { %v3514_v18 = vmul.f32 %v3408_v24, %v8145_v37  ;;  %v10241_v24 = vld [vmem:[#allocation33_spill] sm:$0xff] }
 0x5c4   :  { %v3412_v21 = vpop.f32.mrb[82].mxu1  ;;  %6665 = vmatprep.mubr.msk.f32.mxu0 %vm2956_vm5, %v3514_v18 }
 0x5c5   :  { %v3515_v14 = vmul.f32 %v3412_v21, %v8078_v11  ;;  %v3414_v3 = vpop.f32.mrb[83].mxu1  ;;  %3801 = vmatmul.mubr.f32.gmra.mrb[138].mxu0 %v3513_v51  ;;  %v10242_v21 = vld [vmem:[#allocation34_spill] sm:$0xff] }
 0x5c6   :  { %v3516_v52 = vmul.f32 %v3414_v3, %v8083_v13  ;;  %v10243_v3 = vld [vmem:[#allocation59_spill] sm:$0xff] }
 0x5c8   :  { %v3418_v54 = vpop.f32.mrb[84].mxu1  ;;  %6666 = vmatprep.mubr.msk.f32.mxu0 %vm2956_vm5, %v3516_v52 }
 0x5c9   :  { %v3517_v53 = vmul.f32 %v3418_v54, %v8147_v38  ;;  %v3420_v26 = vpop.f32.mrb[85].mxu1  ;;  %3806 = vmatmul.mubr.f32.gmra.mrb[140].mxu0 %v3515_v14  ;;  %v10244_v54 = vld [vmem:[#allocation60_spill] sm:$0xff] }
 0x5ca   :  { %v3518_v42 = vmul.f32 %v3420_v26, %v10240_v44  ;;  %v10245_v26 = vld [vmem:[#allocation36_spill] sm:$0xff] }
 0x5cc   :  { %v3424_v36 = vpop.f32.mrb[86].mxu1  ;;  %6667 = vmatprep.mubr.msk.f32.mxu0 %vm2956_vm5, %v3518_v42 }
 0x5cd   :  { %v3519_v18 = vmul.f32 %v3424_v36, %v10241_v24  ;;  %v3426_v37 = vpop.f32.mrb[87].mxu1  ;;  %3811 = vmatmul.mubr.f32.gmra.mrb[142].mxu0 %v3517_v53  ;;  %v10246_v36 = vld [vmem:[#allocation38_spill] sm:$0xff] }
 0x5ce   :  { %v3520_v51 = vmul.f32 %v3426_v37, %v10242_v21  ;;  %v10247_v37 = vld [vmem:[#allocation61_spill] sm:$0xff] }
 0x5d0   :  { %v3430_v11 = vpop.f32.mrb[88].mxu1  ;;  %6668 = vmatprep.mubr.msk.f32.mxu0 %vm2956_vm5, %v3520_v51 }
 0x5d1   :  { %v3521_v52 = vmul.f32 %v3430_v11, %v10243_v3  ;;  %v3432_v13 = vpop.f32.mrb[89].mxu1  ;;  %3816 = vmatmul.mubr.f32.gmra.mrb[144].mxu0 %v3519_v18 }
 0x5d2   :  { %v3522_v14 = vmul.f32 %v3432_v13, %v10244_v54  ;;  %v10248_v13 = vld [vmem:[#allocation39_spill] sm:$0xff] }
 0x5d4   :  { %v3436_v38 = vpop.f32.mrb[90].mxu1  ;;  %6669 = vmatprep.mubr.msk.f32.mxu0 %vm2956_vm5, %v3522_v14 }
 0x5d5   :  { %v3523_v42 = vmul.f32 %v3436_v38, %v10245_v26  ;;  %v3438_v44 = vpop.f32.mrb[91].mxu1  ;;  %3821 = vmatmul.mubr.f32.gmra.mrb[146].mxu0 %v3521_v52  ;;  %v10249_v38 = vld [vmem:[#allocation40_spill] sm:$0xff] }
 0x5d6   :  { %v3524_v53 = vmul.f32 %v3438_v44, %v10246_v36  ;;  %v10250_v44 = vld [vmem:[#allocation63_spill] sm:$0xff] }
 0x5d8   :  { %v3442_v24 = vpop.f32.mrb[92].mxu1  ;;  %6670 = vmatprep.mubr.msk.f32.mxu0 %vm2956_vm5, %v3524_v53 }
 0x5d9   :  { %v3525_v51 = vmul.f32 %v3442_v24, %v10247_v37  ;;  %v3444_v21 = vpop.f32.mrb[93].mxu1  ;;  %3826 = vmatmul.mubr.f32.gmra.mrb[148].mxu0 %v3523_v42  ;;  %v10251_v24 = vld [vmem:[#allocation64_spill] sm:$0xff] }
 0x5da   :  { %v3526_v11 = vmul.f32 %v3444_v21, %v10210_v15  ;;  %v10252_v21 = vld [vmem:[#allocation42_spill] sm:$0xff] }
 0x5dc   :  { %v3448_v18 = vpop.f32.mrb[94].mxu1  ;;  %6671 = vmatprep.mubr.msk.f32.mxu0 %vm2956_vm5, %v3526_v11 }
 0x5dd   :  { %v3527_v14 = vmul.f32 %v3448_v18, %v10248_v13  ;;  %v3450_v54 = vpop.f32.mrb[95].mxu1  ;;  %3831 = vmatmul.mubr.f32.gmra.mrb[150].mxu0 %v3525_v51  ;;  %v10253_v18 = vld [vmem:[#allocation44_spill] sm:$0xff] }
 0x5de   :  { %v3528_v52 = vmul.f32 %v3450_v54, %v10249_v38  ;;  %v7487_v54 = vld [vmem:[%s9938_s4 + $0x8] sm:$0xff] }
 0x5e0   :  { %v3454_v26 = vpop.f32.mrb[96].mxu1  ;;  %6672 = vmatprep.mubr.msk.f32.mxu0 %vm2956_vm5, %v3528_v52 }
 0x5e1   :  { %v3529_v53 = vmul.f32 %v3454_v26, %v10250_v44  ;;  %v3456_v36 = vpop.f32.mrb[97].mxu1  ;;  %3836 = vmatmul.mubr.f32.gmra.mrb[152].mxu0 %v3527_v14  ;;  %v10254_v26 = vld [vmem:[#allocation65_spill] sm:$0xff]  ;;  %v10256_v44 = vld [vmem:[#allocation4_spill] sm:$0xff] }
 0x5e2   :  { %v3530_v42 = vmul.f32 %v3456_v36, %v10251_v24  ;;  %v10255_v24 = vld [vmem:[#allocation66_spill] sm:$0xff] }
 0x5e4   :  { %v3460_v37 = vpop.f32.mrb[98].mxu1  ;;  %6673 = vmatprep.mubr.msk.f32.mxu0 %vm2956_vm5, %v3530_v42 }
 0x5e5   :  { %v3531_v11 = vmul.f32 %v3460_v37, %v10252_v21  ;;  %v3462_v15 = vpop.f32.mrb[99].mxu1  ;;  %3841 = vmatmul.mubr.f32.gmra.mrb[154].mxu0 %v3529_v53 }
 0x5e6   :  { %v3532_v51 = vmul.f32 %v3462_v15, %v10253_v18  ;;  %4689 = vmatprep.mubr.f32.mxu0 %v7487_v54 }
 0x5e8   :  { %v3466_v52 = vpop.f32.mrb[100].mxu1  ;;  %6674 = vmatprep.mubr.msk.f32.mxu1 %vm2956_vm5, %v3532_v51 }
 0x5e9   :  { %v3533_v14 = vmul.f32 %v3466_v52, %v10254_v26  ;;  %v3468_v36 = vpop.f32.mrb[101].mxu1  ;;  %3846 = vmatmul.mubr.f32.vlgmr.msra.gmra.mrb[102].mxu1 %v3531_v11 }
 0x5ea   :  { %v3534_v42 = vmul.f32 %v3468_v36, %v10255_v24  ;;  %6957 = vmatpush1.bf16.msk.msra.mxu1 %vm7792_vm4, %v10256_v44 }
 0x5eb   :  { %7058 = vmatprep.subr.bf16.mxu1 %v10219_v41 }
 0x5ec   :  { %6675 = vmatprep.mubr.msk.f32.mxu1 %vm2956_vm5, %v3534_v42 }
 0x5ed   :  { %3851 = vmatmul.mubr.f32.gmra.mrb[104].mxu1 %v3533_v14 }
 0x5ee   :  { %4368 = vmatprep.mubr.f32.mxu1 %v10224_v0 }
 0x644   :  { %v8653_v15 = vpop.f32.mrb[96].mxu0 }
 0x645   :  { %10257 = vst [vmem:[#allocation5_spill] sm:$0xff] %v8653_v15  ;;  %v3699_v37 = vpop.f32.mrb[97].mxu0  ;;  %v3856_v53 = vsel %vm2546_vm0, %v8653_v15, -inf }
 0x646   :  { %3857 = vmax.xlane.f32.xlu0 %v3856_v53 }
 0x648   :  { %v8657_v11 = vpop.f32.mrb[98].mxu0 }
 0x649   :  { %10258 = vst [vmem:[#allocation6_spill] sm:$0xff] %v8657_v11  ;;  %v3704_v51 = vpop.f32.mrb[99].mxu0  ;;  %v3859_v54 = vsel %vm2546_vm0, %v8657_v11, -inf }
 0x64a   :  { %3860 = vmax.xlane.f32.xlu1 %v3859_v54 }
 0x64c   :  { %v8661_v52 = vpop.f32.mrb[100].mxu0 }
 0x64d   :  { %10259 = vst [vmem:[#allocation7_spill] sm:$0xff] %v8661_v52  ;;  %v3709_v36 = vpop.f32.mrb[101].mxu0  ;;  %v3862_v14 = vsel %vm2546_vm0, %v8661_v52, -inf }
 0x64e   :  { %3863 = vmax.xlane.f32.xlu1 %v3862_v14 }
 0x650   :  { %v8665_v42 = vpop.f32.mrb[102].mxu0 }
 0x651   :  { %10260 = vst [vmem:[#allocation25_spill] sm:$0xff] %v8665_v42  ;;  %v3714_v37 = vpop.f32.mrb[103].mxu0  ;;  %v3865_v53 = vsel %vm2546_vm0, %v8665_v42, -inf }
 0x652   :  { %3866 = vmax.xlane.f32.xlu0 %v3865_v53 }
 0x654   :  { %v8669_v44 = vpop.f32.mrb[104].mxu0 }
 0x655   :  { %10261 = vst [vmem:[#allocation77_spill] sm:$0xff] %v8669_v44  ;;  %v3719_v51 = vpop.f32.mrb[105].mxu0  ;;  %v3868_v54 = vsel %vm2546_vm0, %v8669_v44, -inf }
 0x656   :  { %3869 = vmax.xlane.f32.xlu1 %v3868_v54 }
 0x658   :  { %v8673_v10 = vpop.f32.mrb[106].mxu0 }
 0x659   :  { %10262 = vst [vmem:[#allocation78_spill] sm:$0xff] %v8673_v10  ;;  %v3724_v36 = vpop.f32.mrb[107].mxu0  ;;  %v3871_v14 = vsel %vm2546_vm0, %v8673_v10, -inf }
 0x65a   :  { %3872 = vmax.xlane.f32.xlu0 %v3871_v14 }
 0x65c   :  { %v8677_v24 = vpop.f32.mrb[108].mxu0 }
 0x65d   :  { %10263 = vst [vmem:[#allocation79_spill] sm:$0xff] %v8677_v24  ;;  %v3729_v37 = vpop.f32.mrb[109].mxu0  ;;  %v3874_v53 = vsel %vm2546_vm0, %v8677_v24, -inf }
 0x65e   :  { %3875 = vmax.xlane.f32.xlu1 %v3874_v53 }
 0x660   :  { %v8681_v26 = vpop.f32.mrb[110].mxu0 }
 0x661   :  { %10264 = vst [vmem:[#allocation80_spill] sm:$0xff] %v8681_v26  ;;  %v3734_v51 = vpop.f32.mrb[111].mxu0  ;;  %v3877_v54 = vsel %vm2546_vm0, %v8681_v26, -inf }
 0x662   :  { %3878 = vmax.xlane.f32.xlu0 %v3877_v54 }
 0x664   :  { %v8685_v18 = vpop.f32.mrb[112].mxu0 }
 0x665   :  { %10265 = vst [vmem:[#allocation81_spill] sm:$0xff] %v8685_v18  ;;  %v3739_v36 = vpop.f32.mrb[113].mxu0  ;;  %v3880_v14 = vsel %vm2546_vm0, %v8685_v18, -inf }
 0x666   :  { %3881 = vmax.xlane.f32.xlu1 %v3880_v14 }
 0x668   :  { %v8689_v21 = vpop.f32.mrb[114].mxu0 }
 0x669   :  { %10266 = vst [vmem:[#allocation82_spill] sm:$0xff] %v8689_v21  ;;  %v3744_v37 = vpop.f32.mrb[115].mxu0  ;;  %v3883_v53 = vsel %vm2546_vm0, %v8689_v21, -inf }
 0x66a   :  { %3884 = vmax.xlane.f32.xlu0 %v3883_v53 }
 0x66c   :  { %v8693_v38 = vpop.f32.mrb[116].mxu0 }
 0x66d   :  { %10267 = vst [vmem:[#allocation83_spill] sm:$0xff] %v8693_v38  ;;  %v3749_v51 = vpop.f32.mrb[117].mxu0  ;;  %v3886_v54 = vsel %vm2546_vm0, %v8693_v38, -inf }
 0x66e   :  { %3887 = vmax.xlane.f32.xlu1 %v3886_v54 }
 0x670   :  { %v8697_v13 = vpop.f32.mrb[118].mxu0 }
 0x671   :  { %10268 = vst [vmem:[#allocation84_spill] sm:$0xff] %v8697_v13  ;;  %v3754_v36 = vpop.f32.mrb[119].mxu0  ;;  %v3889_v14 = vsel %vm2546_vm0, %v8697_v13, -inf }
 0x672   :  { %3890 = vmax.xlane.f32.xlu0 %v3889_v14 }
 0x674   :  { %v8701_v3 = vpop.f32.mrb[120].mxu0 }
 0x675   :  { %10269 = vst [vmem:[#allocation85_spill] sm:$0xff] %v8701_v3  ;;  %v3759_v37 = vpop.f32.mrb[121].mxu0  ;;  %v3892_v53 = vsel %vm2546_vm0, %v8701_v3, -inf }
 0x676   :  { %3893 = vmax.xlane.f32.xlu1 %v3892_v53 }
 0x678   :  { %v8705_v9 = vpop.f32.mrb[122].mxu0 }
 0x679   :  { %10270 = vst [vmem:[#allocation86_spill] sm:$0xff] %v8705_v9  ;;  %v3764_v51 = vpop.f32.mrb[123].mxu0  ;;  %v3895_v54 = vsel %vm2546_vm0, %v8705_v9, -inf }
 0x67a   :  { %3896 = vmax.xlane.f32.xlu0 %v3895_v54 }
 0x67c   :  { %v8709_v7 = vpop.f32.mrb[124].mxu0 }
 0x67d   :  { %10271 = vst [vmem:[#allocation87_spill] sm:$0xff] %v8709_v7  ;;  %v3769_v36 = vpop.f32.mrb[125].mxu0  ;;  %v3898_v14 = vsel %vm2546_vm0, %v8709_v7, -inf }
 0x67e   :  { %3899 = vmax.xlane.f32.xlu1 %v3898_v14 }
 0x680   :  { %v8713_v35 = vpop.f32.mrb[126].mxu0 }
 0x681   :  { %10272 = vst [vmem:[#allocation88_spill] sm:$0xff] %v8713_v35  ;;  %v3774_v37 = vpop.f32.mrb[127].mxu0  ;;  %v3901_v53 = vsel %vm2546_vm0, %v8713_v35, -inf }
 0x682   :  { %3902 = vmax.xlane.f32.xlu0 %v3901_v53 }
 0x684   :  { %v8717_v34 = vpop.f32.mrb[128].mxu0 }
 0x685   :  { %10273 = vst [vmem:[#allocation89_spill] sm:$0xff] %v8717_v34  ;;  %v3779_v51 = vpop.f32.mrb[129].mxu0  ;;  %v3904_v54 = vsel %vm2546_vm0, %v8717_v34, -inf }
 0x686   :  { %3905 = vmax.xlane.f32.xlu1 %v3904_v54 }
 0x688   :  { %v8721_v6 = vpop.f32.mrb[130].mxu0 }
 0x689   :  { %10274 = vst [vmem:[#allocation90_spill] sm:$0xff] %v8721_v6  ;;  %v3784_v36 = vpop.f32.mrb[131].mxu0  ;;  %v3907_v14 = vsel %vm2546_vm0, %v8721_v6, -inf }
 0x68a   :  { %3908 = vmax.xlane.f32.xlu0 %v3907_v14 }
 0x68c   :  { %v8725_v4 = vpop.f32.mrb[132].mxu0 }
 0x68d   :  { %10275 = vst [vmem:[#allocation91_spill] sm:$0xff] %v8725_v4  ;;  %v3789_v37 = vpop.f32.mrb[133].mxu0  ;;  %v3910_v53 = vsel %vm2546_vm0, %v8725_v4, -inf }
 0x68e   :  { %3911 = vmax.xlane.f32.xlu1 %v3910_v53 }
 0x690   :  { %v8729_v33 = vpop.f32.mrb[134].mxu0 }
 0x691   :  { %10276 = vst [vmem:[#allocation92_spill] sm:$0xff] %v8729_v33  ;;  %v3794_v51 = vpop.f32.mrb[135].mxu0  ;;  %v3913_v54 = vsel %vm2546_vm0, %v8729_v33, -inf }
 0x692   :  { %3914 = vmax.xlane.f32.xlu0 %v3913_v54 }
 0x694   :  { %v8733_v32 = vpop.f32.mrb[136].mxu0 }
 0x695   :  { %10277 = vst [vmem:[#allocation93_spill] sm:$0xff] %v8733_v32  ;;  %v3799_v36 = vpop.f32.mrb[137].mxu0  ;;  %v3916_v14 = vsel %vm2546_vm0, %v8733_v32, -inf }
 0x696   :  { %3917 = vmax.xlane.f32.xlu1 %v3916_v14 }
 0x698   :  { %v8737_v1 = vpop.f32.mrb[138].mxu0 }
 0x699   :  { %10278 = vst [vmem:[#allocation94_spill] sm:$0xff] %v8737_v1  ;;  %v3804_v37 = vpop.f32.mrb[139].mxu0  ;;  %v3919_v53 = vsel %vm2546_vm0, %v8737_v1, -inf }
 0x69a   :  { %3920 = vmax.xlane.f32.xlu0 %v3919_v53 }
 0x69c   :  { %v8741_v62 = vpop.f32.mrb[140].mxu0 }
 0x69d   :  { %10279 = vst [vmem:[#allocation95_spill] sm:$0xff] %v8741_v62  ;;  %v3809_v51 = vpop.f32.mrb[141].mxu0  ;;  %v3922_v54 = vsel %vm2546_vm0, %v8741_v62, -inf }
 0x69e   :  { %3923 = vmax.xlane.f32.xlu1 %v3922_v54 }
 0x6a0   :  { %v8745_v31 = vpop.f32.mrb[142].mxu0 }
 0x6a1   :  { %10280 = vst [vmem:[#allocation96_spill] sm:$0xff] %v8745_v31  ;;  %v3814_v36 = vpop.f32.mrb[143].mxu0  ;;  %v3925_v14 = vsel %vm2546_vm0, %v8745_v31, -inf }
 0x6a2   :  { %3926 = vmax.xlane.f32.xlu1 %v3925_v14 }
 0x6a4   :  { %v8749_v30 = vpop.f32.mrb[144].mxu0 }
 0x6a5   :  { %10281 = vst [vmem:[#allocation97_spill] sm:$0xff] %v8749_v30  ;;  %v3819_v37 = vpop.f32.mrb[145].mxu0  ;;  %v3928_v53 = vsel %vm2546_vm0, %v8749_v30, -inf }
 0x6a6   :  { %3929 = vmax.xlane.f32.xlu1 %v3928_v53 }
 0x6a8   :  { %v8753_v61 = vpop.f32.mrb[146].mxu0 }
 0x6a9   :  { %10282 = vst [vmem:[#allocation98_spill] sm:$0xff] %v8753_v61  ;;  %v3824_v51 = vpop.f32.mrb[147].mxu0  ;;  %v3931_v54 = vsel %vm2546_vm0, %v8753_v61, -inf }
 0x6aa   :  { %3932 = vmax.xlane.f32.xlu1 %v3931_v54 }
 0x6ac   :  { %v8757_v59 = vpop.f32.mrb[148].mxu0 }
 0x6ad   :  { %10283 = vst [vmem:[#allocation99_spill] sm:$0xff] %v8757_v59  ;;  %v3829_v36 = vpop.f32.mrb[149].mxu0  ;;  %v3934_v14 = vsel %vm2546_vm0, %v8757_v59, -inf }
 0x6ae   :  { %3935 = vmax.xlane.f32.xlu1 %v3934_v14 }
 0x6b0   :  { %v8761_v29 = vpop.f32.mrb[150].mxu0 }
 0x6b1   :  { %10284 = vst [vmem:[#allocation100_spill] sm:$0xff] %v8761_v29  ;;  %v3834_v37 = vpop.f32.mrb[151].mxu0  ;;  %v3937_v53 = vsel %vm2546_vm0, %v8761_v29, -inf }
 0x6b2   :  { %3938 = vmax.xlane.f32.xlu1 %v3937_v53 }
 0x6b4   :  { %v8765_v28 = vpop.f32.mrb[152].mxu0 }
 0x6b5   :  { %10285 = vst [vmem:[#allocation101_spill] sm:$0xff] %v8765_v28  ;;  %v3839_v51 = vpop.f32.mrb[153].mxu0  ;;  %v3940_v54 = vsel %vm2546_vm0, %v8765_v28, -inf }
 0x6b6   :  { %3941 = vmax.xlane.f32.xlu1 %v3940_v54 }
 0x6b8   :  { %v8769_v57 = vpop.f32.mrb[154].mxu0 }
 0x6b9   :  { %10286 = vst [vmem:[#allocation102_spill] sm:$0xff] %v8769_v57  ;;  %v3844_v36 = vpop.f32.mrb[155].mxu0  ;;  %v3943_v14 = vsel %vm2546_vm0, %v8769_v57, -inf }
 0x6ba   :  { %3944 = vmax.xlane.f32.xlu1 %v3943_v14 }
 0x6bc   :  { %v8773_v56 = vpop.f32.mrb[102].mxu1 }
 0x6bd   :  { %10287 = vst [vmem:[#allocation103_spill] sm:$0xff] %v8773_v56  ;;  %v3849_v37 = vpop.f32.mrb[103].mxu1  ;;  %v3946_v53 = vsel %vm2546_vm0, %v8773_v56, -inf }
 0x6be   :  { %3947 = vmax.xlane.f32.xlu1 %v3946_v53 }
 0x6c0   :  { %v8777_v27 = vpop.f32.mrb[104].mxu1 }
 0x6c1   :  { %10288 = vst [vmem:[#allocation104_spill] sm:$0xff] %v8777_v27  ;;  %v3854_v51 = vpop.f32.mrb[105].mxu1  ;;  %v3949_v54 = vsel %vm2546_vm0, %v8777_v27, -inf }
 0x6c2   :  { %3950 = vmax.xlane.f32.xlu1 %v3949_v54 }
 0x6d3   :  { %v3858_v45 = vpop.xlane.xlu0 %3857 }
 0x6d4   :  { %v3952_v36 = vsub.f32 %v8653_v15, %v3858_v45 }
 0x6d6   :  { %v3984_v16 = vmul.f32 1.442695, %v3952_v36 }
 0x6d7   :  { %v3861_v49 = vpop.xlane.xlu1 %3860 }
 0x6d8   :  { %7223 = vpow2.f32 %v3984_v16  ;;  %v3953_v14 = vsub.f32 %v8657_v11, %v3861_v49  ;;  %v10318_v11 = vld [vmem:[#allocation52_spill] sm:$0xff] }
 0x6da   :  { %v3986_v37 = vmul.f32 1.442695, %v3953_v14 }
 0x6db   :  { %v3864_v22 = vpop.xlane.xlu1 %3863 }
 0x6dc   :  { %7225 = vpow2.f32 %v3986_v37  ;;  %v3954_v53 = vsub.f32 %v8661_v52, %v3864_v22 }
 0x6de   :  { %v3988_v2 = vmul.f32 1.442695, %v3954_v53 }
 0x6df   :  { %v3867_v50 = vpop.xlane.xlu0 %3866 }
 0x6e0   :  { %7227 = vpow2.f32 %v3988_v2  ;;  %v3955_v51 = vsub.f32 %v8665_v42, %v3867_v50 }
 0x6e2   :  { %v8785_v12 = vpop.eup %7223  ;;  %v3990_v54 = vmul.f32 1.442695, %v3955_v51 }
 0x6e3   :  { %v3870_v48 = vpop.xlane.xlu1 %3869  ;;  %v4048_v45 = vsel %vm2546_vm0, %v8785_v12, 0.0 }
 0x6e4   :  { %7229 = vpow2.f32 %v3990_v54  ;;  %v3956_v49 = vsub.f32 %v8669_v44, %v3870_v48  ;;  %4049 = vadd.xlane.f32.xlu0 %v4048_v45 }
 0x6e6   :  { %v8790_v16 = vpop.eup %7225  ;;  %v3992_v36 = vmul.f32 1.442695, %v3956_v49 }
 0x6e7   :  { %v3873_v22 = vpop.xlane.xlu0 %3872  ;;  %v4051_v2 = vsel %vm2546_vm0, %v8790_v16, 0.0 }
 0x6e8   :  { %7231 = vpow2.f32 %v3992_v36  ;;  %v3957_v50 = vsub.f32 %v8673_v10, %v3873_v22  ;;  %4052 = vadd.xlane.f32.xlu0 %v4051_v2 }
 0x6ea   :  { %v8795_v14 = vpop.eup %7227  ;;  %v3994_v37 = vmul.f32 1.442695, %v3957_v50 }
 0x6eb   :  { %v3876_v53 = vpop.xlane.xlu1 %3875  ;;  %v4054_v51 = vsel %vm2546_vm0, %v8795_v14, 0.0 }
 0x6ec   :  { %7233 = vpow2.f32 %v3994_v37  ;;  %v3958_v48 = vsub.f32 %v8677_v24, %v3876_v53  ;;  %4055 = vadd.xlane.f32.xlu0 %v4054_v51 }
 0x6ee   :  { %v8800_v54 = vpop.eup %7229  ;;  %v3996_v45 = vmul.f32 1.442695, %v3958_v48 }
 0x6ef   :  { %v3879_v49 = vpop.xlane.xlu0 %3878  ;;  %v4057_v36 = vsel %vm2546_vm0, %v8800_v54, 0.0 }
 0x6f0   :  { %7235 = vpow2.f32 %v3996_v45  ;;  %v3959_v22 = vsub.f32 %v8681_v26, %v3879_v49  ;;  %4058 = vadd.xlane.f32.xlu0 %v4057_v36 }
 0x6f2   :  { %v8805_v2 = vpop.eup %7231  ;;  %v3998_v50 = vmul.f32 1.442695, %v3959_v22 }
 0x6f3   :  { %v3882_v10 = vpop.xlane.xlu1 %3881  ;;  %v4060_v37 = vsel %vm2546_vm0, %v8805_v2, 0.0 }
 0x6f4   :  { %7237 = vpow2.f32 %v3998_v50  ;;  %v3960_v53 = vsub.f32 %v8685_v18, %v3882_v10  ;;  %4061 = vadd.xlane.f32.xlu0 %v4060_v37 }
 0x6f6   :  { %v8810_v51 = vpop.eup %7233  ;;  %v4000_v48 = vmul.f32 1.442695, %v3960_v53 }
 0x6f7   :  { %v3885_v24 = vpop.xlane.xlu0 %3884  ;;  %v4063_v45 = vsel %vm2546_vm0, %v8810_v51, 0.0 }
 0x6f8   :  { %7239 = vpow2.f32 %v4000_v48  ;;  %v3961_v49 = vsub.f32 %v8689_v21, %v3885_v24  ;;  %4064 = vadd.xlane.f32.xlu0 %v4063_v45 }
 0x6fa   :  { %v8815_v36 = vpop.eup %7235  ;;  %v4002_v22 = vmul.f32 1.442695, %v3961_v49 }
 0x6fb   :  { %v3888_v26 = vpop.xlane.xlu1 %3887  ;;  %v4066_v50 = vsel %vm2546_vm0, %v8815_v36, 0.0 }
 0x6fc   :  { %7241 = vpow2.f32 %v4002_v22  ;;  %v3962_v10 = vsub.f32 %v8693_v38, %v3888_v26  ;;  %4067 = vadd.xlane.f32.xlu0 %v4066_v50 }
 0x6fe   :  { %v8820_v37 = vpop.eup %7237  ;;  %v4004_v53 = vmul.f32 1.442695, %v3962_v10 }
 0x6ff   :  { %v3891_v18 = vpop.xlane.xlu0 %3890  ;;  %v4069_v48 = vsel %vm2546_vm0, %v8820_v37, 0.0 }
 0x700   :  { %7243 = vpow2.f32 %v4004_v53  ;;  %v3963_v24 = vsub.f32 %v8697_v13, %v3891_v18  ;;  %4070 = vadd.xlane.f32.xlu0 %v4069_v48 }
 0x702   :  { %v8825_v45 = vpop.eup %7239  ;;  %v4006_v49 = vmul.f32 1.442695, %v3963_v24 }
 0x703   :  { %v3894_v21 = vpop.xlane.xlu1 %3893  ;;  %v4072_v22 = vsel %vm2546_vm0, %v8825_v45, 0.0 }
 0x704   :  { %7245 = vpow2.f32 %v4006_v49  ;;  %v3964_v26 = vsub.f32 %v8701_v3, %v3894_v21  ;;  %4073 = vadd.xlane.f32.xlu0 %v4072_v22 }
 0x706   :  { %v8830_v50 = vpop.eup %7241  ;;  %v4008_v10 = vmul.f32 1.442695, %v3964_v26 }
 0x707   :  { %v3897_v38 = vpop.xlane.xlu0 %3896  ;;  %v4075_v53 = vsel %vm2546_vm0, %v8830_v50, 0.0 }
 0x708   :  { %7247 = vpow2.f32 %v4008_v10  ;;  %v3965_v18 = vsub.f32 %v8705_v9, %v3897_v38  ;;  %4076 = vadd.xlane.f32.xlu0 %v4075_v53 }
 0x70a   :  { %v8835_v48 = vpop.eup %7243  ;;  %v4010_v24 = vmul.f32 1.442695, %v3965_v18 }
 0x70b   :  { %v3900_v13 = vpop.xlane.xlu1 %3899  ;;  %v4078_v49 = vsel %vm2546_vm0, %v8835_v48, 0.0 }
 0x70c   :  { %7249 = vpow2.f32 %v4010_v24  ;;  %v3966_v21 = vsub.f32 %v8709_v7, %v3900_v13  ;;  %4079 = vadd.xlane.f32.xlu1 %v4078_v49 }
 0x70e   :  { %v8840_v22 = vpop.eup %7245  ;;  %v4012_v26 = vmul.f32 1.442695, %v3966_v21 }
 0x70f   :  { %v3903_v3 = vpop.xlane.xlu0 %3902  ;;  %v4081_v10 = vsel %vm2546_vm0, %v8840_v22, 0.0 }
 0x710   :  { %7251 = vpow2.f32 %v4012_v26  ;;  %v3967_v38 = vsub.f32 %v8713_v35, %v3903_v3  ;;  %4082 = vadd.xlane.f32.xlu0 %v4081_v10 }
 0x712   :  { %v8845_v53 = vpop.eup %7247  ;;  %v4014_v18 = vmul.f32 1.442695, %v3967_v38 }
 0x713   :  { %v3906_v9 = vpop.xlane.xlu1 %3905  ;;  %v4084_v24 = vsel %vm2546_vm0, %v8845_v53, 0.0 }
 0x714   :  { %7253 = vpow2.f32 %v4014_v18  ;;  %v3968_v13 = vsub.f32 %v8717_v34, %v3906_v9  ;;  %4085 = vadd.xlane.f32.xlu1 %v4084_v24 }
 0x716   :  { %v8850_v49 = vpop.eup %7249  ;;  %v4016_v21 = vmul.f32 1.442695, %v3968_v13 }
 0x717   :  { %v3909_v7 = vpop.xlane.xlu0 %3908  ;;  %v4087_v26 = vsel %vm2546_vm0, %v8850_v49, 0.0 }
 0x718   :  { %7255 = vpow2.f32 %v4016_v21  ;;  %v3969_v3 = vsub.f32 %v8721_v6, %v3909_v7  ;;  %4088 = vadd.xlane.f32.xlu0 %v4087_v26 }
 0x71a   :  { %v8855_v10 = vpop.eup %7251  ;;  %v4018_v38 = vmul.f32 1.442695, %v3969_v3 }
 0x71b   :  { %v3912_v35 = vpop.xlane.xlu1 %3911  ;;  %v4090_v18 = vsel %vm2546_vm0, %v8855_v10, 0.0 }
 0x71c   :  { %7257 = vpow2.f32 %v4018_v38  ;;  %v3970_v9 = vsub.f32 %v8725_v4, %v3912_v35  ;;  %4091 = vadd.xlane.f32.xlu1 %v4090_v18 }
 0x71e   :  { %v8860_v24 = vpop.eup %7253  ;;  %v4020_v13 = vmul.f32 1.442695, %v3970_v9 }
 0x71f   :  { %v3915_v34 = vpop.xlane.xlu0 %3914  ;;  %v4093_v21 = vsel %vm2546_vm0, %v8860_v24, 0.0 }
 0x720   :  { %7259 = vpow2.f32 %v4020_v13  ;;  %v3971_v7 = vsub.f32 %v8729_v33, %v3915_v34  ;;  %4094 = vadd.xlane.f32.xlu0 %v4093_v21 }
 0x722   :  { %v8865_v26 = vpop.eup %7255  ;;  %v4022_v3 = vmul.f32 1.442695, %v3971_v7 }
 0x723   :  { %v3918_v6 = vpop.xlane.xlu1 %3917  ;;  %v4096_v38 = vsel %vm2546_vm0, %v8865_v26, 0.0 }
 0x724   :  { %7261 = vpow2.f32 %v4022_v3  ;;  %v3972_v35 = vsub.f32 %v8733_v32, %v3918_v6  ;;  %4097 = vadd.xlane.f32.xlu1 %v4096_v38 }
 0x726   :  { %v8870_v18 = vpop.eup %7257  ;;  %v4024_v9 = vmul.f32 1.442695, %v3972_v35 }
 0x727   :  { %v3921_v4 = vpop.xlane.xlu0 %3920  ;;  %v4099_v13 = vsel %vm2546_vm0, %v8870_v18, 0.0 }
 0x728   :  { %7263 = vpow2.f32 %v4024_v9  ;;  %v3973_v34 = vsub.f32 %v8737_v1, %v3921_v4  ;;  %4100 = vadd.xlane.f32.xlu0 %v4099_v13 }
 0x72a   :  { %v8875_v21 = vpop.eup %7259  ;;  %v4026_v7 = vmul.f32 1.442695, %v3973_v34 }
 0x72b   :  { %v3924_v33 = vpop.xlane.xlu1 %3923  ;;  %v4102_v3 = vsel %vm2546_vm0, %v8875_v21, 0.0 }
 0x72c   :  { %7265 = vpow2.f32 %v4026_v7  ;;  %v3974_v6 = vsub.f32 %v8741_v62, %v3924_v33  ;;  %4103 = vadd.xlane.f32.xlu1 %v4102_v3 }
 0x72e   :  { %v8880_v38 = vpop.eup %7261  ;;  %v4028_v35 = vmul.f32 1.442695, %v3974_v6 }
 0x72f   :  { %v3927_v32 = vpop.xlane.xlu1 %3926  ;;  %v4105_v9 = vsel %vm2546_vm0, %v8880_v38, 0.0 }
 0x730   :  { %7267 = vpow2.f32 %v4028_v35  ;;  %v3975_v4 = vsub.f32 %v8745_v31, %v3927_v32  ;;  %4106 = vadd.xlane.f32.xlu0 %v4105_v9 }
 0x732   :  { %v8885_v13 = vpop.eup %7263  ;;  %v4030_v34 = vmul.f32 1.442695, %v3975_v4 }
 0x733   :  { %v3930_v1 = vpop.xlane.xlu1 %3929  ;;  %v4108_v7 = vsel %vm2546_vm0, %v8885_v13, 0.0 }
 0x734   :  { %7269 = vpow2.f32 %v4030_v34  ;;  %v3976_v33 = vsub.f32 %v8749_v30, %v3930_v1  ;;  %4109 = vadd.xlane.f32.xlu1 %v4108_v7 }
 0x736   :  { %v8890_v3 = vpop.eup %7265  ;;  %v4032_v6 = vmul.f32 1.442695, %v3976_v33 }
 0x737   :  { %v3933_v62 = vpop.xlane.xlu1 %3932  ;;  %v4111_v35 = vsel %vm2546_vm0, %v8890_v3, 0.0 }
 0x738   :  { %7271 = vpow2.f32 %v4032_v6  ;;  %v3977_v32 = vsub.f32 %v8753_v61, %v3933_v62  ;;  %4112 = vadd.xlane.f32.xlu0 %v4111_v35 }
 0x73a   :  { %v8895_v9 = vpop.eup %7267  ;;  %v4034_v4 = vmul.f32 1.442695, %v3977_v32 }
 0x73b   :  { %v3936_v31 = vpop.xlane.xlu1 %3935  ;;  %v4114_v34 = vsel %vm2546_vm0, %v8895_v9, 0.0 }
 0x73c   :  { %7273 = vpow2.f32 %v4034_v4  ;;  %v3978_v1 = vsub.f32 %v8757_v59, %v3936_v31  ;;  %4115 = vadd.xlane.f32.xlu1 %v4114_v34 }
 0x73e   :  { %v8900_v7 = vpop.eup %7269  ;;  %v4036_v33 = vmul.f32 1.442695, %v3978_v1 }
 0x73f   :  { %v3939_v30 = vpop.xlane.xlu1 %3938  ;;  %v4117_v6 = vsel %vm2546_vm0, %v8900_v7, 0.0 }
 0x740   :  { %7275 = vpow2.f32 %v4036_v33  ;;  %v3979_v62 = vsub.f32 %v8761_v29, %v3939_v30  ;;  %4118 = vadd.xlane.f32.xlu0 %v4117_v6 }
 0x742   :  { %v8905_v35 = vpop.eup %7271  ;;  %v4038_v32 = vmul.f32 1.442695, %v3979_v62 }
 0x743   :  { %v3942_v61 = vpop.xlane.xlu1 %3941  ;;  %v4120_v4 = vsel %vm2546_vm0, %v8905_v35, 0.0 }
 0x744   :  { %7277 = vpow2.f32 %v4038_v32  ;;  %v3980_v31 = vsub.f32 %v8765_v28, %v3942_v61  ;;  %4121 = vadd.xlane.f32.xlu1 %v4120_v4 }
 0x746   :  { %v8910_v34 = vpop.eup %7273  ;;  %v4040_v1 = vmul.f32 1.442695, %v3980_v31 }
 0x747   :  { %v3945_v59 = vpop.xlane.xlu1 %3944  ;;  %v4123_v33 = vsel %vm2546_vm0, %v8910_v34, 0.0 }
 0x748   :  { %7279 = vpow2.f32 %v4040_v1  ;;  %v3981_v30 = vsub.f32 %v8769_v57, %v3945_v59  ;;  %4124 = vadd.xlane.f32.xlu0 %v4123_v33 }
 0x74a   :  { %v8915_v6 = vpop.eup %7275  ;;  %v4042_v62 = vmul.f32 1.442695, %v3981_v30 }
 0x74b   :  { %v3948_v29 = vpop.xlane.xlu1 %3947  ;;  %v4126_v32 = vsel %vm2546_vm0, %v8915_v6, 0.0 }
 0x74c   :  { %7281 = vpow2.f32 %v4042_v62  ;;  %v3982_v61 = vsub.f32 %v8773_v56, %v3948_v29  ;;  %4127 = vadd.xlane.f32.xlu1 %v4126_v32 }
 0x74e   :  { %v8920_v4 = vpop.eup %7277  ;;  %v4044_v31 = vmul.f32 1.442695, %v3982_v61 }
 0x74f   :  { %v3951_v28 = vpop.xlane.xlu1 %3950  ;;  %v4129_v1 = vsel %vm2546_vm0, %v8920_v4, 0.0 }
 0x750   :  { %7283 = vpow2.f32 %v4044_v31  ;;  %v3983_v59 = vsub.f32 %v8777_v27, %v3951_v28  ;;  %4130 = vadd.xlane.f32.xlu0 %v4129_v1 }
 0x752   :  { %v8925_v33 = vpop.eup %7279  ;;  %v4046_v30 = vmul.f32 1.442695, %v3983_v59 }
 0x753   :  { %v4132_v62 = vsel %vm2546_vm0, %v8925_v33, 0.0 }
 0x754   :  { %7285 = vpow2.f32 %v4046_v30  ;;  %4133 = vadd.xlane.f32.xlu1 %v4132_v62 }
 0x756   :  { %v8929_v29 = vpop.eup %7281 }
 0x757   :  { %v4135_v32 = vsel %vm2546_vm0, %v8929_v29, 0.0 }
 0x758   :  { %4136 = vadd.xlane.f32.xlu0 %v4135_v32 }
 0x75a   :  { %v8933_v61 = vpop.eup %7283 }
 0x75b   :  { %v4138_v28 = vsel %vm2546_vm0, %v8933_v61, 0.0 }
 0x75c   :  { %4139 = vadd.xlane.f32.xlu1 %v4138_v28 }
 0x75e   :  { %v8937_v31 = vpop.eup %7285 }
 0x75f   :  { %v4141_v1 = vsel %vm2546_vm0, %v8937_v31, 0.0 }
 0x760   :  { %4142 = vadd.xlane.f32.xlu0 %v4141_v1 }
 0x771   :  { %v4050_v59 = vpop.xlane.xlu0 %4049 }
 0x772   :  { %7287 = vrcp.f32 %v4050_v59 }
 0x775   :  { %v4053_v30 = vpop.xlane.xlu0 %4052 }
 0x776   :  { %7289 = vrcp.f32 %v4053_v30 }
 0x779   :  { %v4056_v62 = vpop.xlane.xlu0 %4055 }
 0x77a   :  { %7291 = vrcp.f32 %v4056_v62 }
 0x77c   :  { %v7288_v27 = vpop.eup %7287 }
 0x77d   :  { %v4145_v32 = vmul.f32 %v7288_v27, %v8785_v12  ;;  %v4059_v56 = vpop.xlane.xlu0 %4058 }
 0x77e   :  { %7293 = vrcp.f32 %v4059_v56 }
 0x77f   :  { %6678 = vmatmul.mubr.msk.f32.vlgmr.msra.gmra.mrb[106].mxu1 %vm2546_vm0, %v4145_v32 }
 0x780   :  { %v7290_v28 = vpop.eup %7289  ;;  %4374 = vmatprep.mubr.f32.mxu1 %v10224_v0  ;;  %7060 = vmatpush1.bf16.msra.mxu1 %v8181_v17 }
 0x781   :  { %v4062_v57 = vpop.xlane.xlu0 %4061  ;;  %v4147_v1 = vmul.f32 %v7290_v28, %v8790_v16  ;;  %7061 = vmatprep.subr.bf16.mxu1 %v10219_v41 }
 0x782   :  { %7295 = vrcp.f32 %v4062_v57 }
 0x783   :  { %6679 = vmatmul.mubr.msk.f32.gmra.mrb[108].mxu1 %vm2546_vm0, %v4147_v1 }
 0x784   :  { %v7292_v59 = vpop.eup %7291  ;;  %4380 = vmatprep.mubr.f32.mxu1 %v10224_v0  ;;  %7063 = vmatpush1.bf16.msra.mxu1 %v8193_v8 }
 0x785   :  { %v4065_v56 = vpop.xlane.xlu0 %4064  ;;  %v4149_v27 = vmul.f32 %v7292_v59, %v8795_v14  ;;  %7064 = vmatprep.subr.bf16.mxu1 %v10219_v41 }
 0x786   :  { %7297 = vrcp.f32 %v4065_v56 }
 0x787   :  { %6680 = vmatmul.mubr.msk.f32.gmra.mrb[110].mxu1 %vm2546_vm0, %v4149_v27 }
 0x788   :  { %v7294_v12 = vpop.eup %7293  ;;  %4386 = vmatprep.mubr.f32.mxu1 %v10224_v0  ;;  %7066 = vmatpush1.bf16.msra.mxu1 %v8205_v47 }
 0x789   :  { %v4068_v57 = vpop.xlane.xlu0 %4067  ;;  %v4151_v16 = vmul.f32 %v7294_v12, %v8800_v54  ;;  %7067 = vmatprep.subr.bf16.mxu1 %v10219_v41 }
 0x78a   :  { %7299 = vrcp.f32 %v4068_v57 }
 0x78b   :  { %6681 = vmatmul.mubr.msk.f32.gmra.mrb[112].mxu1 %vm2546_vm0, %v4151_v16 }
 0x78c   :  { %v7296_v30 = vpop.eup %7295  ;;  %4392 = vmatprep.mubr.f32.mxu1 %v10224_v0  ;;  %7069 = vmatpush1.bf16.msra.mxu1 %v8217_v43 }
 0x78d   :  { %v4071_v14 = vpop.xlane.xlu0 %4070  ;;  %v4153_v62 = vmul.f32 %v7296_v30, %v8805_v2  ;;  %7070 = vmatprep.subr.bf16.mxu1 %v10219_v41 }
 0x78e   :  { %7301 = vrcp.f32 %v4071_v14 }
 0x78f   :  { %6682 = vmatmul.mubr.msk.f32.gmra.mrb[114].mxu1 %vm2546_vm0, %v4153_v62 }
 0x790   :  { %v7298_v32 = vpop.eup %7297  ;;  %4398 = vmatprep.mubr.f32.mxu1 %v10224_v0  ;;  %7072 = vmatpush1.bf16.msra.mxu1 %v8229_v23 }
 0x791   :  { %v4074_v54 = vpop.xlane.xlu0 %4073  ;;  %v4155_v28 = vmul.f32 %v7298_v32, %v8810_v51  ;;  %7073 = vmatprep.subr.bf16.mxu1 %v10219_v41 }
 0x792   :  { %7303 = vrcp.f32 %v4074_v54 }
 0x793   :  { %6683 = vmatmul.mubr.msk.f32.gmra.mrb[116].mxu1 %vm2546_vm0, %v4155_v28 }
 0x794   :  { %v7300_v1 = vpop.eup %7299  ;;  %4404 = vmatprep.mubr.f32.mxu1 %v10224_v0  ;;  %7075 = vmatpush1.bf16.msra.mxu1 %v8241_v63 }
 0x795   :  { %v4077_v2 = vpop.xlane.xlu0 %4076  ;;  %v4157_v59 = vmul.f32 %v7300_v1, %v8815_v36  ;;  %7076 = vmatprep.subr.bf16.mxu1 %v10219_v41 }
 0x796   :  { %7305 = vrcp.f32 %v4077_v2 }
 0x797   :  { %6684 = vmatmul.mubr.msk.f32.gmra.mrb[118].mxu1 %vm2546_vm0, %v4157_v59 }
 0x798   :  { %v7302_v56 = vpop.eup %7301  ;;  %4410 = vmatprep.mubr.f32.mxu1 %v10224_v0  ;;  %7078 = vmatpush1.bf16.msra.mxu1 %v8253_v19 }
 0x799   :  { %v4080_v51 = vpop.xlane.xlu1 %4079  ;;  %v4159_v27 = vmul.f32 %v7302_v56, %v8820_v37  ;;  %7079 = vmatprep.subr.bf16.mxu1 %v10219_v41 }
 0x79a   :  { %7307 = vrcp.f32 %v4080_v51 }
 0x79b   :  { %6685 = vmatmul.mubr.msk.f32.gmra.mrb[120].mxu1 %vm2546_vm0, %v4159_v27 }
 0x79c   :  { %v7304_v12 = vpop.eup %7303  ;;  %4416 = vmatprep.mubr.f32.mxu1 %v10224_v0  ;;  %7081 = vmatpush1.bf16.msra.mxu1 %v8265_v20 }
 0x79d   :  { %v4083_v36 = vpop.xlane.xlu0 %4082  ;;  %v4161_v57 = vmul.f32 %v7304_v12, %v8825_v45  ;;  %7082 = vmatprep.subr.bf16.mxu1 %v10219_v41 }
 0x79e   :  { %7309 = vrcp.f32 %v4083_v36 }
 0x79f   :  { %6686 = vmatmul.mubr.msk.f32.gmra.mrb[122].mxu1 %vm2546_vm0, %v4161_v57 }
 0x7a0   :  { %v7306_v16 = vpop.eup %7305  ;;  %4422 = vmatprep.mubr.f32.mxu1 %v10224_v0  ;;  %7084 = vmatpush1.bf16.msra.mxu1 %v8277_v5 }
 0x7a1   :  { %v4086_v37 = vpop.xlane.xlu1 %4085  ;;  %v4163_v30 = vmul.f32 %v7306_v16, %v8830_v50  ;;  %7085 = vmatprep.subr.bf16.mxu1 %v10219_v41 }
 0x7a2   :  { %7311 = vrcp.f32 %v4086_v37 }
 0x7a3   :  { %6687 = vmatmul.mubr.msk.f32.gmra.mrb[124].mxu1 %vm2546_vm0, %v4163_v30 }
 0x7a4   :  { %v7308_v14 = vpop.eup %7307  ;;  %4428 = vmatprep.mubr.f32.mxu1 %v10224_v0  ;;  %7087 = vmatpush1.bf16.msra.mxu1 %v8353_v25 }
 0x7a5   :  { %v4089_v45 = vpop.xlane.xlu0 %4088  ;;  %v4165_v62 = vmul.f32 %v7308_v14, %v8835_v48 }
 0x7a6   :  { %7313 = vrcp.f32 %v4089_v45 }
 0x7a7   :  { %6688 = vmatmul.mubr.msk.f32.gmra.mrb[126].mxu1 %vm2546_vm0, %v4165_v62 }
 0x7a8   :  { %v7310_v32 = vpop.eup %7309  ;;  %4434 = vmatprep.mubr.f32.mxu1 %v10224_v0 }
 0x7a9   :  { %v4092_v50 = vpop.xlane.xlu1 %4091  ;;  %v4167_v54 = vmul.f32 %v7310_v32, %v8840_v22 }
 0x7aa   :  { %7315 = vrcp.f32 %v4092_v50 }
 0x7ab   :  { %6689 = vmatmul.mubr.msk.f32.gmra.mrb[128].mxu1 %vm2546_vm0, %v4167_v54 }
 0x7ac   :  { %v7312_v28 = vpop.eup %7311  ;;  %4440 = vmatprep.mubr.f32.mxu1 %v10224_v0 }
 0x7ad   :  { %v4095_v1 = vpop.xlane.xlu0 %4094  ;;  %v4169_v2 = vmul.f32 %v7312_v28, %v8845_v53 }
 0x7ae   :  { %7317 = vrcp.f32 %v4095_v1 }
 0x7af   :  { %6690 = vmatmul.mubr.msk.f32.gmra.mrb[130].mxu1 %vm2546_vm0, %v4169_v2 }
 0x7b0   :  { %v7314_v48 = vpop.eup %7313  ;;  %4446 = vmatprep.mubr.f32.mxu1 %v10224_v0 }
 0x7b1   :  { %v4098_v59 = vpop.xlane.xlu1 %4097  ;;  %v4171_v56 = vmul.f32 %v7314_v48, %v8850_v49 }
 0x7b2   :  { %7319 = vrcp.f32 %v4098_v59 }
 0x7b3   :  { %6691 = vmatmul.mubr.msk.f32.gmra.mrb[132].mxu1 %vm2546_vm0, %v4171_v56 }
 0x7b4   :  { %v7316_v22 = vpop.eup %7315  ;;  %4452 = vmatprep.mubr.f32.mxu1 %v10224_v0 }
 0x7b5   :  { %v4101_v51 = vpop.xlane.xlu0 %4100  ;;  %v4173_v27 = vmul.f32 %v7316_v22, %v8855_v10 }
 0x7b6   :  { %7321 = vrcp.f32 %v4101_v51 }
 0x7b7   :  { %6692 = vmatmul.mubr.msk.f32.gmra.mrb[134].mxu1 %vm2546_vm0, %v4173_v27 }
 0x7b8   :  { %v7318_v53 = vpop.eup %7317  ;;  %4458 = vmatprep.mubr.f32.mxu1 %v10224_v0 }
 0x7b9   :  { %v4104_v12 = vpop.xlane.xlu1 %4103  ;;  %v4175_v36 = vmul.f32 %v7318_v53, %v8860_v24 }
 0x7ba   :  { %7323 = vrcp.f32 %v4104_v12 }
 0x7bb   :  { %6693 = vmatmul.mubr.msk.f32.gmra.mrb[136].mxu1 %vm2546_vm0, %v4175_v36 }
 0x7bc   :  { %v7320_v49 = vpop.eup %7319  ;;  %4464 = vmatprep.mubr.f32.mxu1 %v10224_v0 }
 0x7bd   :  { %v4107_v57 = vpop.xlane.xlu0 %4106  ;;  %v4177_v16 = vmul.f32 %v7320_v49, %v8865_v26 }
 0x7be   :  { %7325 = vrcp.f32 %v4107_v57 }
 0x7bf   :  { %6694 = vmatmul.mubr.msk.f32.gmra.mrb[138].mxu1 %vm2546_vm0, %v4177_v16 }
 0x7c0   :  { %v7322_v10 = vpop.eup %7321  ;;  %4470 = vmatprep.mubr.f32.mxu1 %v10224_v0 }
 0x7c1   :  { %v4110_v37 = vpop.xlane.xlu1 %4109  ;;  %v4179_v30 = vmul.f32 %v7322_v10, %v8870_v18 }
 0x7c2   :  { %7327 = vrcp.f32 %v4110_v37 }
 0x7c3   :  { %6695 = vmatmul.mubr.msk.f32.gmra.mrb[140].mxu1 %vm2546_vm0, %v4179_v30 }
 0x7c4   :  { %v7324_v24 = vpop.eup %7323  ;;  %4476 = vmatprep.mubr.f32.mxu1 %v10224_v0 }
 0x7c5   :  { %v4113_v14 = vpop.xlane.xlu0 %4112  ;;  %v4181_v45 = vmul.f32 %v7324_v24, %v8875_v21 }
 0x7c6   :  { %7329 = vrcp.f32 %v4113_v14 }
 0x7c7   :  { %6696 = vmatmul.mubr.msk.f32.gmra.mrb[142].mxu1 %vm2546_vm0, %v4181_v45 }
 0x7c8   :  { %v7326_v26 = vpop.eup %7325  ;;  %4482 = vmatprep.mubr.f32.mxu1 %v10224_v0 }
 0x7c9   :  { %v4116_v62 = vpop.xlane.xlu1 %4115  ;;  %v4183_v32 = vmul.f32 %v7326_v26, %v8880_v38 }
 0x7ca   :  { %7331 = vrcp.f32 %v4116_v62 }
 0x7cb   :  { %6697 = vmatmul.mubr.msk.f32.gmra.mrb[144].mxu1 %vm2546_vm0, %v4183_v32 }
 0x7cc   :  { %v7328_v18 = vpop.eup %7327  ;;  %4488 = vmatprep.mubr.f32.mxu1 %v10224_v0 }
 0x7cd   :  { %v4119_v50 = vpop.xlane.xlu0 %4118  ;;  %v4185_v54 = vmul.f32 %v7328_v18, %v8885_v13 }
 0x7ce   :  { %7333 = vrcp.f32 %v4119_v50 }
 0x7cf   :  { %6698 = vmatmul.mubr.msk.f32.gmra.mrb[146].mxu1 %vm2546_vm0, %v4185_v54 }
 0x7d0   :  { %v7330_v21 = vpop.eup %7329  ;;  %4494 = vmatprep.mubr.f32.mxu1 %v10224_v0 }
 0x7d1   :  { %v4122_v28 = vpop.xlane.xlu1 %4121  ;;  %v4187_v1 = vmul.f32 %v7330_v21, %v8890_v3 }
 0x7d2   :  { %7335 = vrcp.f32 %v4122_v28 }
 0x7d3   :  { %6699 = vmatmul.mubr.msk.f32.gmra.mrb[148].mxu1 %vm2546_vm0, %v4187_v1  ;;  %v10289_v1 = vld [vmem:[#allocation8_spill] sm:$0xff] }
 0x7d4   :  { %v7332_v38 = vpop.eup %7331  ;;  %4500 = vmatprep.mubr.f32.mxu1 %v10224_v0 }
 0x7d5   :  { %v4125_v2 = vpop.xlane.xlu0 %4124  ;;  %v4189_v48 = vmul.f32 %v7332_v38, %v8895_v9 }
 0x7d6   :  { %7337 = vrcp.f32 %v4125_v2 }
 0x7d7   :  { %6700 = vmatmul.mubr.msk.f32.gmra.mrb[150].mxu1 %vm2546_vm0, %v4189_v48  ;;  %v10290_v48 = vld [vmem:[#allocation23_spill] sm:$0xff] }
 0x7d8   :  { %v7334_v13 = vpop.eup %7333  ;;  %4506 = vmatprep.mubr.f32.mxu1 %v10224_v0 }
 0x7d9   :  { %v4128_v59 = vpop.xlane.xlu1 %4127  ;;  %v4191_v56 = vmul.f32 %v7334_v13, %v8900_v7 }
 0x7da   :  { %7339 = vrcp.f32 %v4128_v59 }
 0x7db   :  { %6701 = vmatmul.mubr.msk.f32.gmra.mrb[152].mxu1 %vm2546_vm0, %v4191_v56 }
 0x7dc   :  { %v7336_v3 = vpop.eup %7335  ;;  %4512 = vmatprep.mubr.f32.mxu1 %v10224_v0 }
 0x7dd   :  { %v4131_v22 = vpop.xlane.xlu0 %4130  ;;  %v4193_v51 = vmul.f32 %v7336_v3, %v8905_v35 }
 0x7de   :  { %7341 = vrcp.f32 %v4131_v22 }
 0x7df   :  { %6702 = vmatmul.mubr.msk.f32.gmra.mrb[154].mxu1 %vm2546_vm0, %v4193_v51 }
 0x7e0   :  { %v7338_v9 = vpop.eup %7337  ;;  %4518 = vmatprep.mubr.f32.mxu1 %v10224_v0 }
 0x7e1   :  { %v4134_v27 = vpop.xlane.xlu1 %4133  ;;  %v4195_v53 = vmul.f32 %v7338_v9, %v8910_v34  ;;  %v10291_v9 = vld [vmem:[#allocation9_spill] sm:$0xff] }
 0x7e2   :  { %7343 = vrcp.f32 %v4134_v27 }
 0x7e3   :  { %6703 = vmatmul.mubr.msk.f32.gmra.mrb[156].mxu1 %vm2546_vm0, %v4195_v53 }
 0x7e4   :  { %v7340_v7 = vpop.eup %7339  ;;  %4524 = vmatprep.mubr.f32.mxu1 %v10224_v0 }
 0x7e5   :  { %v4137_v12 = vpop.xlane.xlu0 %4136  ;;  %v4197_v36 = vmul.f32 %v7340_v7, %v8915_v6  ;;  %v10292_v7 = vld [vmem:[#allocation10_spill] sm:$0xff] }
 0x7e6   :  { %7345 = vrcp.f32 %v4137_v12 }
 0x7e7   :  { %6704 = vmatmul.mubr.msk.f32.gmra.mrb[158].mxu1 %vm2546_vm0, %v4197_v36 }
 0x7e8   :  { %v7342_v35 = vpop.eup %7341  ;;  %4530 = vmatprep.mubr.f32.mxu1 %v10224_v0 }
 0x7e9   :  { %v4140_v49 = vpop.xlane.xlu1 %4139  ;;  %v4199_v57 = vmul.f32 %v7342_v35, %v8920_v4  ;;  %v10293_v35 = vld [vmem:[#allocation29_spill] sm:$0xff] }
 0x7ea   :  { %7347 = vrcp.f32 %v4140_v49 }
 0x7eb   :  { %6705 = vmatmul.mubr.msk.f32.gmra.mrb[160].mxu1 %vm2546_vm0, %v4199_v57 }
 0x7ec   :  { %v7344_v34 = vpop.eup %7343  ;;  %4536 = vmatprep.mubr.f32.mxu1 %v10224_v0 }
 0x7ed   :  { %v4143_v16 = vpop.xlane.xlu0 %4142  ;;  %v4201_v10 = vmul.f32 %v7344_v34, %v8925_v33  ;;  %v10294_v34 = vld [vmem:[#allocation31_spill] sm:$0xff] }
 0x7ee   :  { %7349 = vrcp.f32 %v4143_v16 }
 0x7ef   :  { %6706 = vmatmul.mubr.msk.f32.gmra.mrb[162].mxu1 %vm2546_vm0, %v4201_v10 }
 0x7f0   :  { %v7346_v6 = vpop.eup %7345  ;;  %4542 = vmatprep.mubr.f32.mxu1 %v10224_v0 }
 0x7f1   :  { %v4203_v37 = vmul.f32 %v7346_v6, %v8929_v29 }
 0x7f3   :  { %6707 = vmatmul.mubr.msk.f32.gmra.mrb[164].mxu1 %vm2546_vm0, %v4203_v37 }
 0x7f4   :  { %v7348_v4 = vpop.eup %7347  ;;  %4548 = vmatprep.mubr.f32.mxu1 %v10224_v0 }
 0x7f5   :  { %v4205_v30 = vmul.f32 %v7348_v4, %v8933_v61  ;;  %v10295_v4 = vld [vmem:[#allocation11_spill] sm:$0xff] }
 0x7f7   :  { %6708 = vmatmul.mubr.msk.f32.gmra.mrb[166].mxu1 %vm2546_vm0, %v4205_v30 }
 0x7f8   :  { %v7350_v24 = vpop.eup %7349  ;;  %4554 = vmatprep.mubr.f32.mxu1 %v10224_v0 }
 0x7f9   :  { %v4207_v33 = vmul.f32 %v7350_v24, %v8937_v31 }
 0x7fb   :  { %6709 = vmatmul.mubr.msk.f32.gmra.mrb[168].mxu1 %vm2546_vm0, %v4207_v33  ;;  %v10296_v33 = vld [vmem:[#allocation12_spill] sm:$0xff] }
 0x852   :  { %v4370_v14 = vpop.f32.mrb[106].mxu1 }
 0x853   :  { %v4561_v45 = vmul.f32 %v4370_v14, %v10225_v40  ;;  %v4372_v29 = vpop.f32.mrb[107].mxu1 }
 0x854   :  { %v4562_v26 = vmul.f32 %v4372_v29, %v10226_v46  ;;  %v10297_v29 = vld [vmem:[#allocation35_spill] sm:$0xff] }
 0x856   :  { %v4376_v62 = vpop.f32.mrb[108].mxu1 }
 0x857   :  { %v4563_v32 = vmul.f32 %v4376_v62, %v8038_v58  ;;  %v4378_v18 = vpop.f32.mrb[109].mxu1 }
 0x858   :  { %v4564_v61 = vmul.f32 %v4378_v18, %v8044_v60 }
 0x859   :  { %v6960_v50 = vpack.c.bf16 %v4563_v32, %v4561_v45  ;;  %v10298_v32 = vld [vmem:[#allocation37_spill] sm:$0xff] }
 0x85a   :  { %v6958_v54 = vpack.c.bf16 %v4564_v61, %v4562_v26  ;;  %v4382_v21 = vpop.f32.mrb[110].mxu1 }
 0x85b   :  { %v4565_v28 = vmul.f32 %v4382_v21, %v10227_v39  ;;  %v4384_v31 = vpop.f32.mrb[111].mxu1  ;;  %v10299_v21 = vld [vmem:[#allocation13_spill] sm:$0xff] }
 0x85c   :  { %v4566_v38 = vmul.f32 %v4384_v31, %v10289_v1  ;;  %6959 = vmatprep.subr.bf16.mxu0 %v6958_v54 }
 0x85d   :  { %6961 = vmatpush1.bf16.msra.mxu0 %v6960_v50 }
 0x85e   :  { %v4388_v2 = vpop.f32.mrb[112].mxu1 }
 0x85f   :  { %v4567_v13 = vmul.f32 %v4388_v2, %v10290_v48  ;;  %v4390_v59 = vpop.f32.mrb[113].mxu1 }
 0x860   :  { %v4568_v56 = vmul.f32 %v4390_v59, %v10230_v55  ;;  %v10301_v59 = vld [vmem:[#allocation41_spill] sm:$0xff] }
 0x861   :  { %v6964_v3 = vpack.c.bf16 %v4567_v13, %v4565_v28 }
 0x862   :  { %v6962_v22 = vpack.c.bf16 %v4568_v56, %v4566_v38  ;;  %v4394_v51 = vpop.f32.mrb[114].mxu1  ;;  %v10300_v38 = vld [vmem:[#allocation14_spill] sm:$0xff] }
 0x863   :  { %v4569_v27 = vmul.f32 %v4394_v51, %v10291_v9  ;;  %v4396_v53 = vpop.f32.mrb[115].mxu1 }
 0x864   :  { %v4570_v12 = vmul.f32 %v4396_v53, %v10292_v7  ;;  %6963 = vmatprep.subr.bf16.mxu0 %v6962_v22  ;;  %v10302_v22 = vld [vmem:[#allocation43_spill] sm:$0xff] }
 0x865   :  { %6965 = vmatpush1.bf16.msra.mxu0 %v6964_v3 }
 0x866   :  { %v4400_v36 = vpop.f32.mrb[116].mxu1 }
 0x867   :  { %v4571_v49 = vmul.f32 %v4400_v36, %v10293_v35  ;;  %v4402_v57 = vpop.f32.mrb[117].mxu1  ;;  %v10303_v36 = vld [vmem:[#allocation15_spill] sm:$0xff] }
 0x868   :  { %v4572_v16 = vmul.f32 %v4402_v57, %v10294_v34 }
 0x869   :  { %v6968_v10 = vpack.c.bf16 %v4571_v49, %v4569_v27 }
 0x86a   :  { %v6966_v6 = vpack.c.bf16 %v4572_v16, %v4570_v12  ;;  %v4406_v37 = vpop.f32.mrb[118].mxu1  ;;  %v10304_v16 = vld [vmem:[#allocation16_spill] sm:$0xff] }
 0x86b   :  { %v4573_v30 = vmul.f32 %v4406_v37, %v10295_v4  ;;  %v4408_v24 = vpop.f32.mrb[119].mxu1  ;;  %v10305_v37 = vld [vmem:[#allocation45_spill] sm:$0xff] }
 0x86c   :  { %v4574_v14 = vmul.f32 %v4408_v24, %v10296_v33  ;;  %6967 = vmatprep.subr.bf16.mxu0 %v6966_v6 }
 0x86d   :  { %6969 = vmatpush1.bf16.msra.mxu0 %v6968_v10 }
 0x86e   :  { %v4412_v45 = vpop.f32.mrb[120].mxu1 }
 0x86f   :  { %v4575_v26 = vmul.f32 %v4412_v45, %v10297_v29  ;;  %v4414_v62 = vpop.f32.mrb[121].mxu1 }
 0x870   :  { %v4576_v18 = vmul.f32 %v4414_v62, %v10298_v32 }
 0x871   :  { %v6972_v61 = vpack.c.bf16 %v4575_v26, %v4573_v30 }
 0x872   :  { %v6970_v50 = vpack.c.bf16 %v4576_v18, %v4574_v14  ;;  %v4418_v54 = vpop.f32.mrb[122].mxu1  ;;  %v10306_v14 = vld [vmem:[#allocation46_spill] sm:$0xff] }
 0x873   :  { %v4577_v28 = vmul.f32 %v4418_v54, %v10299_v21  ;;  %v4420_v31 = vpop.f32.mrb[123].mxu1 }
 0x874   :  { %v4578_v2 = vmul.f32 %v4420_v31, %v10300_v38  ;;  %6971 = vmatprep.subr.bf16.mxu0 %v6970_v50 }
 0x875   :  { %6973 = vmatpush1.bf16.msra.mxu0 %v6972_v61  ;;  %v10307_v61 = vld [vmem:[#allocation17_spill] sm:$0xff] }
 0x876   :  { %v4424_v13 = vpop.f32.mrb[124].mxu1 }
 0x877   :  { %v4579_v56 = vmul.f32 %v4424_v13, %v10301_v59  ;;  %v4426_v3 = vpop.f32.mrb[125].mxu1  ;;  %v10309_v13 = vld [vmem:[#allocation47_spill] sm:$0xff] }
 0x878   :  { %v4580_v51 = vmul.f32 %v4426_v3, %v10302_v22 }
 0x879   :  { %v6976_v27 = vpack.c.bf16 %v4579_v56, %v4577_v28  ;;  %v10308_v28 = vld [vmem:[#allocation18_spill] sm:$0xff] }
 0x87a   :  { %v6974_v53 = vpack.c.bf16 %v4580_v51, %v4578_v2  ;;  %v4430_v12 = vpop.f32.mrb[126].mxu1  ;;  %v10310_v51 = vld [vmem:[#allocation48_spill] sm:$0xff] }
 0x87b   :  { %v4581_v49 = vmul.f32 %v4430_v12, %v10303_v36  ;;  %v4432_v57 = vpop.f32.mrb[127].mxu1 }
 0x87c   :  { %v4582_v10 = vmul.f32 %v4432_v57, %v10304_v16  ;;  %6975 = vmatprep.subr.bf16.mxu0 %v6974_v53 }
 0x87d   :  { %6977 = vmatpush1.bf16.msra.mxu0 %v6976_v27 }
 0x87e   :  { %v4436_v6 = vpop.f32.mrb[128].mxu1 }
 0x87f   :  { %v4583_v30 = vmul.f32 %v4436_v6, %v10305_v37  ;;  %v4438_v24 = vpop.f32.mrb[129].mxu1  ;;  %v10311_v6 = vld [vmem:[#allocation19_spill] sm:$0xff] }
 0x880   :  { %v4584_v45 = vmul.f32 %v4438_v24, %v10306_v14 }
 0x881   :  { %v6980_v26 = vpack.c.bf16 %v4583_v30, %v4581_v49  ;;  %v10312_v30 = vld [vmem:[#allocation20_spill] sm:$0xff] }
 0x882   :  { %v6978_v62 = vpack.c.bf16 %v4584_v45, %v4582_v10  ;;  %v4442_v18 = vpop.f32.mrb[130].mxu1 }
 0x883   :  { %v4585_v50 = vmul.f32 %v4442_v18, %v10307_v61  ;;  %v4444_v54 = vpop.f32.mrb[131].mxu1  ;;  %v10313_v18 = vld [vmem:[#allocation49_spill] sm:$0xff] }
 0x884   :  { %v4586_v31 = vmul.f32 %v4444_v54, %v10308_v28  ;;  %6979 = vmatprep.subr.bf16.mxu0 %v6978_v62  ;;  %v10314_v54 = vld [vmem:[#allocation50_spill] sm:$0xff] }
 0x885   :  { %6981 = vmatpush1.bf16.msra.mxu0 %v6980_v26 }
 0x886   :  { %v4448_v2 = vpop.f32.mrb[132].mxu1 }
 0x887   :  { %v4587_v56 = vmul.f32 %v4448_v2, %v10309_v13  ;;  %v4450_v3 = vpop.f32.mrb[133].mxu1 }
 0x888   :  { %v4588_v27 = vmul.f32 %v4450_v3, %v10310_v51  ;;  %v10315_v3 = vld [vmem:[#allocation21_spill] sm:$0xff] }
 0x889   :  { %v6984_v53 = vpack.c.bf16 %v4587_v56, %v4585_v50  ;;  %v10316_v56 = vld [vmem:[#allocation22_spill] sm:$0xff] }
 0x88a   :  { %v6982_v12 = vpack.c.bf16 %v4588_v27, %v4586_v31  ;;  %v4454_v57 = vpop.f32.mrb[134].mxu1 }
 0x88b   :  { %v4589_v49 = vmul.f32 %v4454_v57, %v10311_v6  ;;  %v4456_v10 = vpop.f32.mrb[135].mxu1 }
 0x88c   :  { %v4590_v24 = vmul.f32 %v4456_v10, %v10312_v30  ;;  %6983 = vmatprep.subr.bf16.mxu0 %v6982_v12  ;;  %v10317_v10 = vld [vmem:[#allocation51_spill] sm:$0xff] }
 0x88d   :  { %6985 = vmatpush1.bf16.msra.mxu0 %v6984_v53 }
 0x88e   :  { %v4460_v45 = vpop.f32.mrb[136].mxu1 }
 0x88f   :  { %v4591_v62 = vmul.f32 %v4460_v45, %v10313_v18  ;;  %v4462_v26 = vpop.f32.mrb[137].mxu1 }
 0x890   :  { %v4592_v44 = vmul.f32 %v4462_v26, %v10314_v54  ;;  %v10319_v26 = vld [vmem:[#allocation24_spill] sm:$0xff] }
 0x891   :  { %v6988_v2 = vpack.c.bf16 %v4591_v62, %v4589_v49 }
 0x892   :  { %v6986_v42 = vpack.c.bf16 %v4592_v44, %v4590_v24  ;;  %v4466_v52 = vpop.f32.mrb[138].mxu1  ;;  %v10320_v24 = vld [vmem:[#allocation26_spill] sm:$0xff] }
 0x893   :  { %v4593_v50 = vmul.f32 %v4466_v52, %v10315_v3  ;;  %v4468_v31 = vpop.f32.mrb[139].mxu1 }
 0x894   :  { %v4594_v27 = vmul.f32 %v4468_v31, %v10316_v56  ;;  %6987 = vmatprep.subr.bf16.mxu0 %v6986_v42  ;;  %v10321_v31 = vld [vmem:[#allocation53_spill] sm:$0xff]  ;;  %v10322_v56 = vld [vmem:[#allocation54_spill] sm:$0xff] }
 0x895   :  { %6989 = vmatpush1.bf16.msra.mxu0 %v6988_v2 }
 0x896   :  { %v4472_v57 = vpop.f32.mrb[140].mxu1 }
 0x897   :  { %v4595_v12 = vmul.f32 %v4472_v57, %v10317_v10  ;;  %v4474_v53 = vpop.f32.mrb[141].mxu1 }
 0x898   :  { %v4596_v15 = vmul.f32 %v4474_v53, %v10318_v11  ;;  %v10323_v53 = vld [vmem:[#allocation27_spill] sm:$0xff] }
 0x899   :  { %v6992_v45 = vpack.c.bf16 %v4595_v12, %v4593_v50 }
 0x89a   :  { %v6990_v18 = vpack.c.bf16 %v4596_v15, %v4594_v27  ;;  %v4478_v30 = vpop.f32.mrb[142].mxu1  ;;  %v10324_v27 = vld [vmem:[#allocation28_spill] sm:$0xff] }
 0x89b   :  { %v4597_v49 = vmul.f32 %v4478_v30, %v10319_v26  ;;  %v4480_v44 = vpop.f32.mrb[143].mxu1 }
 0x89c   :  { %v4598_v62 = vmul.f32 %v4480_v44, %v10320_v24  ;;  %6991 = vmatprep.subr.bf16.mxu0 %v6990_v18  ;;  %v10325_v44 = vld [vmem:[#allocation55_spill] sm:$0xff]  ;;  %v10326_v24 = vld [vmem:[#allocation56_spill] sm:$0xff] }
 0x89d   :  { %6993 = vmatpush1.bf16.msra.mxu0 %v6992_v45 }
 0x89e   :  { %v4484_v52 = vpop.f32.mrb[144].mxu1 }
 0x89f   :  { %v4599_v42 = vmul.f32 %v4484_v52, %v10321_v31  ;;  %v4486_v2 = vpop.f32.mrb[145].mxu1 }
 0x8a0   :  { %v4600_v3 = vmul.f32 %v4486_v2, %v10322_v56  ;;  %v10327_v2 = vld [vmem:[#allocation30_spill] sm:$0xff] }
 0x8a1   :  { %v6996_v57 = vpack.c.bf16 %v4599_v42, %v4597_v49 }
 0x8a2   :  { %v6994_v10 = vpack.c.bf16 %v4600_v3, %v4598_v62  ;;  %v4490_v54 = vpop.f32.mrb[146].mxu1  ;;  %v10328_v62 = vld [vmem:[#allocation32_spill] sm:$0xff] }
 0x8a3   :  { %v4601_v50 = vmul.f32 %v4490_v54, %v10323_v53  ;;  %v4492_v15 = vpop.f32.mrb[147].mxu1 }
 0x8a4   :  { %v4602_v12 = vmul.f32 %v4492_v15, %v10324_v27  ;;  %6995 = vmatprep.subr.bf16.mxu0 %v6994_v10  ;;  %v10329_v15 = vld [vmem:[#allocation57_spill] sm:$0xff]  ;;  %v10330_v27 = vld [vmem:[#allocation58_spill] sm:$0xff] }
 0x8a5   :  { %6997 = vmatpush1.bf16.msra.mxu0 %v6996_v57 }
 0x8a6   :  { %v4496_v30 = vpop.f32.mrb[148].mxu1 }
 0x8a7   :  { %v4603_v18 = vmul.f32 %v4496_v30, %v10325_v44  ;;  %v4498_v45 = vpop.f32.mrb[149].mxu1 }
 0x8a8   :  { %v4604_v26 = vmul.f32 %v4498_v45, %v10326_v24  ;;  %v10331_v45 = vld [vmem:[#allocation33_spill] sm:$0xff] }
 0x8a9   :  { %v7000_v52 = vpack.c.bf16 %v4603_v18, %v4601_v50 }
 0x8aa   :  { %v6998_v31 = vpack.c.bf16 %v4604_v26, %v4602_v12  ;;  %v4502_v11 = vpop.f32.mrb[150].mxu1  ;;  %v10332_v12 = vld [vmem:[#allocation34_spill] sm:$0xff] }
 0x8ab   :  { %v4605_v49 = vmul.f32 %v4502_v11, %v10327_v2  ;;  %v4504_v3 = vpop.f32.mrb[151].mxu1 }
 0x8ac   :  { %v4606_v42 = vmul.f32 %v4504_v3, %v10328_v62  ;;  %6999 = vmatprep.subr.bf16.mxu0 %v6998_v31  ;;  %v10333_v3 = vld [vmem:[#allocation59_spill] sm:$0xff]  ;;  %v10334_v62 = vld [vmem:[#allocation60_spill] sm:$0xff] }
 0x8ad   :  { %7001 = vmatpush1.bf16.msra.mxu0 %v7000_v52 }
 0x8ae   :  { %v4508_v54 = vpop.f32.mrb[152].mxu1 }
 0x8af   :  { %v4607_v10 = vmul.f32 %v4508_v54, %v10329_v15  ;;  %v4510_v57 = vpop.f32.mrb[153].mxu1 }
 0x8b0   :  { %v4608_v53 = vmul.f32 %v4510_v57, %v10330_v27  ;;  %v10335_v57 = vld [vmem:[#allocation36_spill] sm:$0xff] }
 0x8b1   :  { %v7004_v30 = vpack.c.bf16 %v4607_v10, %v4605_v49 }
 0x8b2   :  { %v7002_v44 = vpack.c.bf16 %v4608_v53, %v4606_v42  ;;  %v4514_v56 = vpop.f32.mrb[154].mxu1  ;;  %v10336_v42 = vld [vmem:[#allocation38_spill] sm:$0xff] }
 0x8b3   :  { %v4609_v50 = vmul.f32 %v4514_v56, %v10331_v45  ;;  %v4516_v26 = vpop.f32.mrb[155].mxu1 }
 0x8b4   :  { %v4610_v18 = vmul.f32 %v4516_v26, %v10332_v12  ;;  %7003 = vmatprep.subr.bf16.mxu0 %v7002_v44  ;;  %v10337_v26 = vld [vmem:[#allocation61_spill] sm:$0xff]  ;;  %v10338_v12 = vld [vmem:[#allocation62_spill] sm:$0xff] }
 0x8b5   :  { %7005 = vmatpush1.bf16.msra.mxu0 %v7004_v30 }
 0x8b6   :  { %v4520_v11 = vpop.f32.mrb[156].mxu1 }
 0x8b7   :  { %v4611_v31 = vmul.f32 %v4520_v11, %v10333_v3  ;;  %v4522_v52 = vpop.f32.mrb[157].mxu1 }
 0x8b8   :  { %v4612_v2 = vmul.f32 %v4522_v52, %v10334_v62  ;;  %v10339_v52 = vld [vmem:[#allocation39_spill] sm:$0xff] }
 0x8b9   :  { %v7008_v54 = vpack.c.bf16 %v4611_v31, %v4609_v50 }
 0x8ba   :  { %v7006_v15 = vpack.c.bf16 %v4612_v2, %v4610_v18  ;;  %v4526_v24 = vpop.f32.mrb[158].mxu1  ;;  %v10340_v18 = vld [vmem:[#allocation40_spill] sm:$0xff] }
 0x8bb   :  { %v4613_v49 = vmul.f32 %v4526_v24, %v10335_v57  ;;  %v4528_v53 = vpop.f32.mrb[159].mxu1 }
 0x8bc   :  { %v4614_v10 = vmul.f32 %v4528_v53, %v10336_v42  ;;  %7007 = vmatprep.subr.bf16.mxu0 %v7006_v15  ;;  %v10341_v53 = vld [vmem:[#allocation63_spill] sm:$0xff]  ;;  %v10342_v42 = vld [vmem:[#allocation64_spill] sm:$0xff] }
 0x8bd   :  { %7009 = vmatpush1.bf16.msra.mxu0 %v7008_v54 }
 0x8be   :  { %v4532_v56 = vpop.f32.mrb[160].mxu1 }
 0x8bf   :  { %v4615_v44 = vmul.f32 %v4532_v56, %v10337_v26  ;;  %v4534_v30 = vpop.f32.mrb[161].mxu1 }
 0x8c0   :  { %v4616_v45 = vmul.f32 %v4534_v30, %v10338_v12  ;;  %v10343_v30 = vld [vmem:[#allocation42_spill] sm:$0xff] }
 0x8c1   :  { %v7012_v11 = vpack.c.bf16 %v4615_v44, %v4613_v49 }
 0x8c2   :  { %v7010_v3 = vpack.c.bf16 %v4616_v45, %v4614_v10  ;;  %v4538_v27 = vpop.f32.mrb[162].mxu1  ;;  %v10344_v10 = vld [vmem:[#allocation44_spill] sm:$0xff] }
 0x8c3   :  { %v4617_v50 = vmul.f32 %v4538_v27, %v10339_v52  ;;  %v4540_v2 = vpop.f32.mrb[163].mxu1 }
 0x8c4   :  { %v4618_v31 = vmul.f32 %v4540_v2, %v10340_v18  ;;  %7011 = vmatprep.subr.bf16.mxu0 %v7010_v3  ;;  %v10345_v2 = vld [vmem:[#allocation65_spill] sm:$0xff]  ;;  %v10346_v18 = vld [vmem:[#allocation66_spill] sm:$0xff] }
 0x8c5   :  { %7013 = vmatpush1.bf16.msra.mxu0 %v7012_v11 }
 0x8c6   :  { %v4544_v24 = vpop.f32.mrb[164].mxu1 }
 0x8c7   :  { %v4619_v15 = vmul.f32 %v4544_v24, %v10341_v53  ;;  %v4546_v54 = vpop.f32.mrb[165].mxu1 }
 0x8c8   :  { %v4620_v57 = vmul.f32 %v4546_v54, %v10342_v42 }
 0x8c9   :  { %v7016_v56 = vpack.c.bf16 %v4619_v15, %v4617_v50  ;;  %v10349_v15 = vld [vmem:[#allocation4_spill] sm:$0xff] }
 0x8ca   :  { %v7014_v26 = vpack.c.bf16 %v4620_v57, %v4618_v31  ;;  %v4550_v62 = vpop.f32.mrb[166].mxu1  ;;  %v10347_v57 = vld [vmem:[#allocation2_spill] sm:$0xff] }
 0x8cb   :  { %v4621_v49 = vmul.f32 %v4550_v62, %v10343_v30  ;;  %v4552_v45 = vpop.f32.mrb[167].mxu1  ;;  %v7488_v62 = vld [vmem:[%s9938_s4] sm:$0xff] }
 0x8cc   :  { %v4622_v44 = vmul.f32 %v4552_v45, %v10344_v10  ;;  %7015 = vmatprep.subr.bf16.mxu0 %v7014_v26 }
 0x8cd   :  { %7017 = vmatpush1.bf16.msra.mxu0 %v7016_v56 }
 0x8ce   :  { %v4556_v27 = vpop.f32.mrb[168].mxu1 }
 0x8cf   :  { %v4623_v3 = vmul.f32 %v4556_v27, %v10345_v2  ;;  %v4558_v11 = vpop.f32.mrb[169].mxu1 }
 0x8d0   :  { %v4624_v52 = vmul.f32 %v4558_v11, %v10346_v18 }
 0x8d1   :  { %v7020_v24 = vpack.c.bf16 %v4623_v3, %v4621_v49 }
 0x8d2   :  { %v7018_v53 = vpack.c.bf16 %v4624_v52, %v4622_v44 }
 0x8d4   :  { %7019 = vmatprep.subr.bf16.mxu0 %v7018_v53 }
 0x8d5   :  { %7021 = vmatpush1.bf16.msra.mxu0 %v7020_v24 }
 0x8d6   :  { %7022 = vmatprep.subr.bf16.mxu0 %v10219_v41 }
 0x8d8   :  { %4690 = vmatmul.mubr.f32.vlgmr.msra.gmra.mrb[156].mxu0 %v7488_v62 }
 0x8d9   :  { %7024 = vmatpush1.bf16.msra.mxu0 %v8181_v17 }
 0x8da   :  { %7025 = vmatprep.subr.bf16.mxu0 %v10219_v41 }
 0x8dd   :  { %7027 = vmatpush1.bf16.msra.mxu0 %v8193_v8 }
 0x8de   :  { %7028 = vmatprep.subr.bf16.mxu0 %v10219_v41 }
 0x8e1   :  { %7030 = vmatpush1.bf16.msra.mxu0 %v8205_v47 }
 0x8e2   :  { %7031 = vmatprep.subr.bf16.mxu0 %v10219_v41 }
 0x8e5   :  { %7033 = vmatpush1.bf16.msra.mxu0 %v8217_v43 }
 0x8e6   :  { %7034 = vmatprep.subr.bf16.mxu0 %v10219_v41 }
 0x8e9   :  { %7036 = vmatpush1.bf16.msra.mxu0 %v8229_v23 }
 0x8ea   :  { %7037 = vmatprep.subr.bf16.mxu0 %v10219_v41 }
 0x8ed   :  { %7039 = vmatpush1.bf16.msra.mxu0 %v8241_v63 }
 0x8ee   :  { %7040 = vmatprep.subr.bf16.mxu0 %v10219_v41 }
 0x8f1   :  { %7042 = vmatpush1.bf16.msra.mxu0 %v8253_v19 }
 0x8f2   :  { %7043 = vmatprep.subr.bf16.mxu0 %v10219_v41 }
 0x8f5   :  { %7045 = vmatpush1.bf16.msra.mxu0 %v8265_v20 }
 0x8f6   :  { %7046 = vmatprep.subr.bf16.mxu0 %v10219_v41 }
 0x8f9   :  { %7048 = vmatpush1.bf16.msra.mxu0 %v8277_v5 }
 0x8fa   :  { %7049 = vmatprep.subr.bf16.mxu0 %v10219_v41 }
 0x8fd   :  { %7051 = vmatpush1.bf16.msra.mxu0 %v8353_v25 }
 0x8fe   :  { %7054 = vmatprep.subr.msk.bf16.mxu0 %vm7792_vm4, %v10347_v57 }
 0x9ab   :  { %v4691_v52 = vpop.f32.mrb[156].mxu0 }
 0x9ac   :  { %v4693_v50 = vpop.f32.mrb[157].mxu0  ;;  %v4696_v53 = vmul.f32 %v4691_v52, %v4691_v52 }
 0x9ad   :  { %v4697_v31 = vmul.f32 %v4693_v50, %v4693_v50 }
 0x9af   :  { %6710 = vmatprep.mubr.msk.f32.mxu0 %vm2956_vm5, %v4697_v31 }
 0x9b0   :  { %4766 = vmatmul.mubr.f32.vlgmr.msra.gmra.mrb[158].mxu0 %v4696_v53 }
 0x9b1   :  { %7057 = vmatpush1.bf16.msk.msra.mxu0 %vm7792_vm4, %v10349_v15  ;;  %4850 = vmatprep.mubr.f32.mxu0 %v10224_v0 }
 0xa83   :  { %v4767_v54 = vpop.f32.mrb[158].mxu0 }
 0xa84   :  { %7351 = vrsqrt.f32 %v4767_v54  ;;  %v4769_v56 = vpop.f32.mrb[159].mxu0  ;;  %vm4774_vm8 = vcmp.eq.f32.partialorder %v4767_v54, inf  ;;  %v4777_v44 = vand.u32 2147483648, %v4767_v54  ;;  %vm4776_vm9 = vcmp.eq.f32.partialorder %v4767_v54, 0.0 }
 0xa85   :  { %v4771_v11 = vadd.f32 1.0, %v4767_v54 }
 0xa8e   :  { %v7352_v49 = vpop.eup %7351 }
 0xa8f   :  { %v4773_v45 = vmul.f32 %v7352_v49, %v4767_v54  ;;  %v7489_v49 = vld [vmem:[%s9940_s5] sm:$0xff] }
 0xa91   :  { %v4775_v27 = vsel %vm4774_vm8, %v4767_v54, %v4773_v45  ;;  %v7496_v45 = vld [vmem:[%s9940_s5 + $0x38] sm:$0xff] }
 0xa92   :  { %v4778_v3 = vsel %vm4776_vm9, %v4777_v44, %v4775_v27  ;;  %v7497_v44 = vld [vmem:[%s9940_s5 + $0x40] sm:$0xff]  ;;  %v7498_v27 = vld [vmem:[%s9940_s5 + $0x48] sm:$0xff] }
 0xa93   :  { %v4779_v24 = vadd.f32 1e-08, %v4778_v3  ;;  %v7499_v3 = vld [vmem:[%s9940_s5 + $0x50] sm:$0xff] }
 0xa95   :  { %v4780_v62 = vmul.f32 %v4779_v24, %v4771_v11  ;;  %v7500_v11 = vld [vmem:[%s9940_s5 + $0x58] sm:$0xff]  ;;  %v7501_v24 = vld [vmem:[%s9940_s5 + $0x60] sm:$0xff] }
 0xa97   :  { %7353 = vrcp.f32 %v4780_v62  ;;  %v7502_v62 = vld [vmem:[%s9940_s5 + $0x68] sm:$0xff] }
 0xaa1   :  { %v7354_v31 = vpop.eup %7353 }
 0xaa2   :  { %v4782_v53 = vmul.f32 %v7354_v31, %v4767_v54  ;;  %v7495_v54 = vld [vmem:[%s9940_s5 + $0x30] sm:$0xff] }
 0xaa3   :  { %v7503_v31 = vld [vmem:[%s9940_s5 + $0x70] sm:$0xff] }
 0xaa4   :  { %6713 = vmatmul.mubr.msk.f32.vlgmr.msra.gmra.mrb[160].mxu0 %vm2546_vm0, %v4782_v53  ;;  %v7504_v53 = vld [vmem:[%s9940_s5 + $0x78] sm:$0xff] }
 0xaa5   :  { %4923 = vmatprep.mubr.f32.mxu0 %v10224_v0 }
 0xb77   :  { %v4852_v25 = vpop.f32.mrb[160].mxu0 }
 0xb78   :  { %v4857_v5 = vmul.f32 %v4852_v25, %v4691_v52  ;;  %v4854_v56 = vpop.f32.mrb[161].mxu0  ;;  %v7492_v25 = vld [vmem:[%s9940_s5 + $0x18] sm:$0xff]  ;;  %v7493_v52 = vld [vmem:[%s9940_s5 + $0x20] sm:$0xff] }
 0xb79   :  { %v4858_v20 = vmul.f32 %v4854_v56, %v4693_v50  ;;  %v7494_v50 = vld [vmem:[%s9940_s5 + $0x28] sm:$0xff]  ;;  %v7505_v56 = vld [vmem:[%s9940_s5 + $0x80] sm:$0xff] }
 0xb7b   :  { %4859 = vmatprep.subr.mxu0 %v4858_v20  ;;  %v7490_v20 = vld [vmem:[%s9940_s5 + $0x8] sm:$0xff] }
 0xb7c   :  { %4860 = vmatpush1.msra.mxu0 %v4857_v5  ;;  %v7491_v5 = vld [vmem:[%s9940_s5 + $0x10] sm:$0xff] }
 0xb7d   :  { %6714 = vmatmul.mubr.msk.f32.vlgmr.msra.gmra.mrb[162].mxu0 %vm177_vm1, %v7489_v49  ;;  %7090 = vmatprep.subr.msk.bf16.mxu0 %vm7792_vm4, %v10347_v57  ;;  %v7506_v49 = vld [vmem:[%s9940_s5 + $0x88] sm:$0xff] }
 0xb7e   :  { %4929 = vmatprep.mubr.f32.mxu0 %v10224_v0  ;;  %7093 = vmatpush1.bf16.msk.msra.mxu0 %vm7792_vm4, %v10349_v15 }
 0xb81   :  { %6715 = vmatmul.mubr.msk.f32.gmra.mrb[164].mxu0 %vm177_vm1, %v7490_v20  ;;  %v7507_v20 = vld [vmem:[%s9940_s5 + $0x90] sm:$0xff] }
 0xb82   :  { %4935 = vmatprep.mubr.f32.mxu0 %v10224_v0 }
 0xb85   :  { %6716 = vmatmul.mubr.msk.f32.gmra.mrb[166].mxu0 %vm177_vm1, %v7491_v5  ;;  %v7508_v5 = vld [vmem:[%s9940_s5 + $0x98] sm:$0xff] }
 0xb86   :  { %4941 = vmatprep.mubr.f32.mxu0 %v10224_v0 }
 0xb89   :  { %6717 = vmatmul.mubr.msk.f32.gmra.mrb[168].mxu0 %vm177_vm1, %v7492_v25  ;;  %v7509_v25 = vld [vmem:[%s9940_s5 + $0xa0] sm:$0xff] }
 0xb8a   :  { %4947 = vmatprep.mubr.f32.mxu0 %v10224_v0 }
 0xb8d   :  { %6718 = vmatmul.mubr.msk.f32.gmra.mrb[170].mxu0 %vm177_vm1, %v7493_v52  ;;  %v7510_v52 = vld [vmem:[%s9940_s5 + $0xa8] sm:$0xff] }
 0xb8e   :  { %4953 = vmatprep.mubr.f32.mxu0 %v10224_v0 }
 0xb91   :  { %6719 = vmatmul.mubr.msk.f32.gmra.mrb[172].mxu0 %vm177_vm1, %v7494_v50  ;;  %v7511_v50 = vld [vmem:[%s9940_s5 + $0xb0] sm:$0xff] }
 0xb92   :  { %4959 = vmatprep.mubr.f32.mxu0 %v10224_v0 }
 0xb95   :  { %6720 = vmatmul.mubr.msk.f32.gmra.mrb[174].mxu0 %vm177_vm1, %v7495_v54  ;;  %v7512_v54 = vld [vmem:[%s9940_s5 + $0xb8] sm:$0xff] }
 0xb96   :  { %4965 = vmatprep.mubr.f32.mxu0 %v10224_v0 }
 0xb99   :  { %6721 = vmatmul.mubr.msk.f32.gmra.mrb[176].mxu0 %vm177_vm1, %v7496_v45  ;;  %v7513_v45 = vld [vmem:[%s9940_s5 + $0xc0] sm:$0xff] }
 0xb9a   :  { %4971 = vmatprep.mubr.f32.mxu0 %v10224_v0 }
 0xb9d   :  { %6722 = vmatmul.mubr.msk.f32.gmra.mrb[178].mxu0 %vm177_vm1, %v7497_v44  ;;  %v7514_v44 = vld [vmem:[%s9940_s5 + $0xc8] sm:$0xff] }
 0xb9e   :  { %4977 = vmatprep.mubr.f32.mxu0 %v10224_v0 }
 0xba1   :  { %6723 = vmatmul.mubr.msk.f32.gmra.mrb[180].mxu0 %vm177_vm1, %v7498_v27  ;;  %v7515_v27 = vld [vmem:[%s9940_s5 + $0xd0] sm:$0xff] }
 0xba2   :  { %4983 = vmatprep.mubr.f32.mxu0 %v10224_v0 }
 0xba5   :  { %6724 = vmatmul.mubr.msk.f32.gmra.mrb[182].mxu0 %vm177_vm1, %v7499_v3  ;;  %v7516_v3 = vld [vmem:[%s9940_s5 + $0xd8] sm:$0xff] }
 0xba6   :  { %4989 = vmatprep.mubr.f32.mxu0 %v10224_v0 }
 0xba9   :  { %6725 = vmatmul.mubr.msk.f32.gmra.mrb[184].mxu0 %vm177_vm1, %v7500_v11  ;;  %v7517_v11 = vld [vmem:[%s9940_s5 + $0xe0] sm:$0xff] }
 0xbaa   :  { %4995 = vmatprep.mubr.f32.mxu0 %v10224_v0 }
 0xbad   :  { %6726 = vmatmul.mubr.msk.f32.gmra.mrb[186].mxu0 %vm177_vm1, %v7501_v24  ;;  %v7518_v24 = vld [vmem:[%s9940_s5 + $0xe8] sm:$0xff] }
 0xbae   :  { %5001 = vmatprep.mubr.f32.mxu0 %v10224_v0 }
 0xbb1   :  { %6727 = vmatmul.mubr.msk.f32.gmra.mrb[188].mxu0 %vm177_vm1, %v7502_v62  ;;  %v7519_v62 = vld [vmem:[%s9940_s5 + $0xf0] sm:$0xff] }
 0xbb2   :  { %5007 = vmatprep.mubr.f32.mxu0 %v10224_v0 }
 0xbb5   :  { %6728 = vmatmul.mubr.msk.f32.gmra.mrb[190].mxu0 %vm177_vm1, %v7503_v31  ;;  %v7520_v31 = vld [vmem:[%s9940_s5 + $0xf8] sm:$0xff] }
 0xbb6   :  { %5013 = vmatprep.mubr.f32.mxu0 %v10224_v0 }
 0xbb9   :  { %6729 = vmatmul.mubr.msk.f32.gmra.mrb[192].mxu0 %vm177_vm1, %v7504_v53 }
 0xbba   :  { %5019 = vmatprep.mubr.f32.mxu0 %v10224_v0 }
 0xbbd   :  { %6730 = vmatmul.mubr.msk.f32.gmra.mrb[194].mxu0 %vm177_vm1, %v7505_v56 }
 0xbbe   :  { %5025 = vmatprep.mubr.f32.mxu0 %v10224_v0 }
 0xbc1   :  { %6731 = vmatmul.mubr.msk.f32.gmra.mrb[196].mxu0 %vm177_vm1, %v7506_v49 }
 0xbc2   :  { %5031 = vmatprep.mubr.f32.mxu0 %v10224_v0 }
 0xbc5   :  { %6732 = vmatmul.mubr.msk.f32.gmra.mrb[198].mxu0 %vm177_vm1, %v7507_v20 }
 0xbc6   :  { %5037 = vmatprep.mubr.f32.mxu0 %v10224_v0 }
 0xbc9   :  { %6733 = vmatmul.mubr.msk.f32.gmra.mrb[200].mxu0 %vm177_vm1, %v7508_v5 }
 0xbca   :  { %5043 = vmatprep.mubr.f32.mxu0 %v10224_v0 }
 0xbcd   :  { %6734 = vmatmul.mubr.msk.f32.gmra.mrb[202].mxu0 %vm177_vm1, %v7509_v25 }
 0xbce   :  { %5049 = vmatprep.mubr.f32.mxu0 %v10224_v0 }
 0xbd1   :  { %6735 = vmatmul.mubr.msk.f32.gmra.mrb[204].mxu0 %vm177_vm1, %v7510_v52 }
 0xbd2   :  { %5055 = vmatprep.mubr.f32.mxu0 %v10224_v0 }
 0xbd5   :  { %6736 = vmatmul.mubr.msk.f32.gmra.mrb[206].mxu0 %vm177_vm1, %v7511_v50 }
 0xbd6   :  { %5061 = vmatprep.mubr.f32.mxu0 %v10224_v0 }
 0xbd9   :  { %6737 = vmatmul.mubr.msk.f32.gmra.mrb[208].mxu0 %vm177_vm1, %v7512_v54 }
 0xbda   :  { %5067 = vmatprep.mubr.f32.mxu0 %v10224_v0 }
 0xbdd   :  { %6738 = vmatmul.mubr.msk.f32.gmra.mrb[210].mxu0 %vm177_vm1, %v7513_v45 }
 0xbde   :  { %5073 = vmatprep.mubr.f32.mxu0 %v10224_v0 }
 0xbe1   :  { %6739 = vmatmul.mubr.msk.f32.gmra.mrb[212].mxu0 %vm177_vm1, %v7514_v44 }
 0xbe2   :  { %5079 = vmatprep.mubr.f32.mxu0 %v10224_v0 }
 0xbe5   :  { %6740 = vmatmul.mubr.msk.f32.gmra.mrb[214].mxu0 %vm177_vm1, %v7515_v27 }
 0xbe6   :  { %5085 = vmatprep.mubr.f32.mxu0 %v10224_v0 }
 0xbe9   :  { %6741 = vmatmul.mubr.msk.f32.gmra.mrb[216].mxu0 %vm177_vm1, %v7516_v3 }
 0xbea   :  { %5091 = vmatprep.mubr.f32.mxu0 %v10224_v0 }
 0xbed   :  { %6742 = vmatmul.mubr.msk.f32.gmra.mrb[218].mxu0 %vm177_vm1, %v7517_v11 }
 0xbee   :  { %5097 = vmatprep.mubr.f32.mxu0 %v10224_v0 }
 0xbf1   :  { %6743 = vmatmul.mubr.msk.f32.gmra.mrb[220].mxu0 %vm177_vm1, %v7518_v24 }
 0xbf2   :  { %5103 = vmatprep.mubr.f32.mxu0 %v10224_v0 }
 0xbf5   :  { %6744 = vmatmul.mubr.msk.f32.gmra.mrb[222].mxu0 %vm177_vm1, %v7519_v62 }
 0xbf6   :  { %5109 = vmatprep.mubr.f32.mxu0 %v10224_v0 }
 0xbf9   :  { %6745 = vmatmul.mubr.msk.f32.gmra.mrb[224].mxu0 %vm177_vm1, %v7520_v31 }
 0xbfa   :  { %6045 = vmatprep.mubr.f32.mxu0 %v10224_v0 }
 0xc50   :  { %v4925_v53 = vpop.f32.mrb[162].mxu0 }
 0xc51   :  { %v5116_v56 = vmul.f32 %v4925_v53, %v10225_v40  ;;  %v4927_v49 = vpop.f32.mrb[163].mxu0 }
 0xc52   :  { %v5117_v20 = vmul.f32 %v4927_v49, %v10226_v46 }
 0xc54   :  { %v4931_v5 = vpop.f32.mrb[164].mxu0  ;;  %6746 = vmatprep.mubr.msk.f32.mxu1 %vm2956_vm5, %v5117_v20 }
 0xc55   :  { %v5118_v25 = vmul.f32 %v4931_v5, %v8038_v58  ;;  %v4933_v52 = vpop.f32.mrb[165].mxu0  ;;  %5341 = vmatmul.mubr.f32.vlgmr.msra.gmra.mrb[170].mxu1 %v5116_v56 }
 0xc56   :  { %v5119_v50 = vmul.f32 %v4933_v52, %v8044_v60 }
 0xc58   :  { %v4937_v54 = vpop.f32.mrb[166].mxu0  ;;  %6747 = vmatprep.mubr.msk.f32.mxu1 %vm2956_vm5, %v5119_v50 }
 0xc59   :  { %v5120_v45 = vmul.f32 %v4937_v54, %v10227_v39  ;;  %v4939_v44 = vpop.f32.mrb[167].mxu0  ;;  %5346 = vmatmul.mubr.f32.gmra.mrb[172].mxu1 %v5118_v25 }
 0xc5a   :  { %v5121_v27 = vmul.f32 %v4939_v44, %v10289_v1 }
 0xc5c   :  { %v4943_v3 = vpop.f32.mrb[168].mxu0  ;;  %6748 = vmatprep.mubr.msk.f32.mxu1 %vm2956_vm5, %v5121_v27 }
 0xc5d   :  { %v5122_v11 = vmul.f32 %v4943_v3, %v10290_v48  ;;  %v4945_v24 = vpop.f32.mrb[169].mxu0  ;;  %5351 = vmatmul.mubr.f32.gmra.mrb[174].mxu1 %v5120_v45 }
 0xc5e   :  { %v5123_v62 = vmul.f32 %v4945_v24, %v10230_v55 }
 0xc60   :  { %v4949_v31 = vpop.f32.mrb[170].mxu0  ;;  %6749 = vmatprep.mubr.msk.f32.mxu1 %vm2956_vm5, %v5123_v62 }
 0xc61   :  { %v5124_v53 = vmul.f32 %v4949_v31, %v10291_v9  ;;  %v4951_v56 = vpop.f32.mrb[171].mxu0  ;;  %5356 = vmatmul.mubr.f32.gmra.mrb[176].mxu1 %v5122_v11 }
 0xc62   :  { %v5125_v49 = vmul.f32 %v4951_v56, %v10292_v7 }
 0xc64   :  { %v4955_v20 = vpop.f32.mrb[172].mxu0  ;;  %6750 = vmatprep.mubr.msk.f32.mxu1 %vm2956_vm5, %v5125_v49 }
 0xc65   :  { %v5126_v5 = vmul.f32 %v4955_v20, %v10293_v35  ;;  %v4957_v25 = vpop.f32.mrb[173].mxu0  ;;  %5361 = vmatmul.mubr.f32.gmra.mrb[178].mxu1 %v5124_v53 }
 0xc66   :  { %v5127_v52 = vmul.f32 %v4957_v25, %v10294_v34 }
 0xc68   :  { %v4961_v50 = vpop.f32.mrb[174].mxu0  ;;  %6751 = vmatprep.mubr.msk.f32.mxu1 %vm2956_vm5, %v5127_v52 }
 0xc69   :  { %v5128_v54 = vmul.f32 %v4961_v50, %v10295_v4  ;;  %v4963_v45 = vpop.f32.mrb[175].mxu0  ;;  %5366 = vmatmul.mubr.f32.gmra.mrb[180].mxu1 %v5126_v5 }
 0xc6a   :  { %v5129_v44 = vmul.f32 %v4963_v45, %v10296_v33 }
 0xc6c   :  { %v4967_v27 = vpop.f32.mrb[176].mxu0  ;;  %6752 = vmatprep.mubr.msk.f32.mxu1 %vm2956_vm5, %v5129_v44 }
 0xc6d   :  { %v5130_v3 = vmul.f32 %v4967_v27, %v10297_v29  ;;  %v4969_v11 = vpop.f32.mrb[177].mxu0  ;;  %5371 = vmatmul.mubr.f32.gmra.mrb[182].mxu1 %v5128_v54 }
 0xc6e   :  { %v5131_v24 = vmul.f32 %v4969_v11, %v10298_v32 }
 0xc70   :  { %v4973_v62 = vpop.f32.mrb[178].mxu0  ;;  %6753 = vmatprep.mubr.msk.f32.mxu1 %vm2956_vm5, %v5131_v24 }
 0xc71   :  { %v5132_v31 = vmul.f32 %v4973_v62, %v10299_v21  ;;  %v4975_v53 = vpop.f32.mrb[179].mxu0  ;;  %5376 = vmatmul.mubr.f32.gmra.mrb[184].mxu1 %v5130_v3 }
 0xc72   :  { %v5133_v56 = vmul.f32 %v4975_v53, %v10300_v38 }
 0xc74   :  { %v4979_v49 = vpop.f32.mrb[180].mxu0  ;;  %6754 = vmatprep.mubr.msk.f32.mxu1 %vm2956_vm5, %v5133_v56 }
 0xc75   :  { %v5134_v20 = vmul.f32 %v4979_v49, %v10301_v59  ;;  %v4981_v5 = vpop.f32.mrb[181].mxu0  ;;  %5381 = vmatmul.mubr.f32.gmra.mrb[186].mxu1 %v5132_v31 }
 0xc76   :  { %v5135_v25 = vmul.f32 %v4981_v5, %v10302_v22 }
 0xc78   :  { %v4985_v52 = vpop.f32.mrb[182].mxu0  ;;  %6755 = vmatprep.mubr.msk.f32.mxu1 %vm2956_vm5, %v5135_v25 }
 0xc79   :  { %v5136_v50 = vmul.f32 %v4985_v52, %v10303_v36  ;;  %v4987_v54 = vpop.f32.mrb[183].mxu0  ;;  %5386 = vmatmul.mubr.f32.gmra.mrb[188].mxu1 %v5134_v20 }
 0xc7a   :  { %v5137_v45 = vmul.f32 %v4987_v54, %v10304_v16  ;;  %v10350_v54 = vld [vmem:[#allocation20_spill] sm:$0xff] }
 0xc7c   :  { %v4991_v44 = vpop.f32.mrb[184].mxu0  ;;  %6756 = vmatprep.mubr.msk.f32.mxu1 %vm2956_vm5, %v5137_v45 }
 0xc7d   :  { %v5138_v27 = vmul.f32 %v4991_v44, %v10305_v37  ;;  %v4993_v3 = vpop.f32.mrb[185].mxu0  ;;  %5391 = vmatmul.mubr.f32.gmra.mrb[190].mxu1 %v5136_v50 }
 0xc7e   :  { %v5139_v11 = vmul.f32 %v4993_v3, %v10306_v14 }
 0xc80   :  { %v4997_v24 = vpop.f32.mrb[186].mxu0  ;;  %6757 = vmatprep.mubr.msk.f32.mxu1 %vm2956_vm5, %v5139_v11 }
 0xc81   :  { %v5140_v62 = vmul.f32 %v4997_v24, %v10307_v61  ;;  %v4999_v31 = vpop.f32.mrb[187].mxu0  ;;  %5396 = vmatmul.mubr.f32.gmra.mrb[192].mxu1 %v5138_v27  ;;  %v10351_v27 = vld [vmem:[#allocation49_spill] sm:$0xff]  ;;  %v10352_v24 = vld [vmem:[#allocation50_spill] sm:$0xff] }
 0xc82   :  { %v5141_v53 = vmul.f32 %v4999_v31, %v10308_v28 }
 0xc84   :  { %v5003_v56 = vpop.f32.mrb[188].mxu0  ;;  %6758 = vmatprep.mubr.msk.f32.mxu1 %vm2956_vm5, %v5141_v53  ;;  %v10353_v53 = vld [vmem:[#allocation21_spill] sm:$0xff] }
 0xc85   :  { %v5142_v49 = vmul.f32 %v5003_v56, %v10309_v13  ;;  %v5005_v20 = vpop.f32.mrb[189].mxu0  ;;  %5401 = vmatmul.mubr.f32.gmra.mrb[194].mxu1 %v5140_v62 }
 0xc86   :  { %v5143_v5 = vmul.f32 %v5005_v20, %v10310_v51 }
 0xc88   :  { %v5009_v25 = vpop.f32.mrb[190].mxu0  ;;  %6759 = vmatprep.mubr.msk.f32.mxu1 %vm2956_vm5, %v5143_v5  ;;  %v10354_v5 = vld [vmem:[#allocation22_spill] sm:$0xff] }
 0xc89   :  { %v5144_v52 = vmul.f32 %v5009_v25, %v10311_v6  ;;  %v5011_v50 = vpop.f32.mrb[191].mxu0  ;;  %5406 = vmatmul.mubr.f32.gmra.mrb[196].mxu1 %v5142_v49 }
 0xc8a   :  { %v5145_v45 = vmul.f32 %v5011_v50, %v10350_v54  ;;  %v10355_v50 = vld [vmem:[#allocation51_spill] sm:$0xff] }
 0xc8c   :  { %v5015_v44 = vpop.f32.mrb[192].mxu0  ;;  %6760 = vmatprep.mubr.msk.f32.mxu1 %vm2956_vm5, %v5145_v45 }
 0xc8d   :  { %v5146_v3 = vmul.f32 %v5015_v44, %v10351_v27  ;;  %v5017_v11 = vpop.f32.mrb[193].mxu0  ;;  %5411 = vmatmul.mubr.f32.gmra.mrb[198].mxu1 %v5144_v52  ;;  %v10356_v44 = vld [vmem:[#allocation52_spill] sm:$0xff] }
 0xc8e   :  { %v5147_v62 = vmul.f32 %v5017_v11, %v10352_v24  ;;  %v10357_v11 = vld [vmem:[#allocation24_spill] sm:$0xff] }
 0xc90   :  { %v5021_v31 = vpop.f32.mrb[194].mxu0  ;;  %6761 = vmatprep.mubr.msk.f32.mxu1 %vm2956_vm5, %v5147_v62 }
 0xc91   :  { %v5148_v56 = vmul.f32 %v5021_v31, %v10353_v53  ;;  %v5023_v20 = vpop.f32.mrb[195].mxu0  ;;  %5416 = vmatmul.mubr.f32.gmra.mrb[200].mxu1 %v5146_v3  ;;  %v10358_v31 = vld [vmem:[#allocation26_spill] sm:$0xff] }
 0xc92   :  { %v5149_v49 = vmul.f32 %v5023_v20, %v10354_v5  ;;  %v10359_v20 = vld [vmem:[#allocation53_spill] sm:$0xff] }
 0xc94   :  { %v5027_v25 = vpop.f32.mrb[196].mxu0  ;;  %6762 = vmatprep.mubr.msk.f32.mxu1 %vm2956_vm5, %v5149_v49 }
 0xc95   :  { %v5150_v45 = vmul.f32 %v5027_v25, %v10355_v50  ;;  %v5029_v15 = vpop.f32.mrb[197].mxu0  ;;  %5421 = vmatmul.mubr.f32.gmra.mrb[202].mxu1 %v5148_v56  ;;  %v10360_v25 = vld [vmem:[#allocation54_spill] sm:$0xff] }
 0xc96   :  { %v5151_v52 = vmul.f32 %v5029_v15, %v10356_v44  ;;  %v10361_v15 = vld [vmem:[#allocation27_spill] sm:$0xff] }
 0xc98   :  { %v5033_v26 = vpop.f32.mrb[198].mxu0  ;;  %6763 = vmatprep.mubr.msk.f32.mxu1 %vm2956_vm5, %v5151_v52 }
 0xc99   :  { %v5152_v62 = vmul.f32 %v5033_v26, %v10357_v11  ;;  %v5035_v57 = vpop.f32.mrb[199].mxu0  ;;  %5426 = vmatmul.mubr.f32.gmra.mrb[204].mxu1 %v5150_v45  ;;  %v10362_v26 = vld [vmem:[#allocation28_spill] sm:$0xff] }
 0xc9a   :  { %v5153_v3 = vmul.f32 %v5035_v57, %v10358_v31  ;;  %v10363_v57 = vld [vmem:[#allocation55_spill] sm:$0xff] }
 0xc9c   :  { %v5039_v19 = vpop.f32.mrb[200].mxu0  ;;  %6764 = vmatprep.mubr.msk.f32.mxu1 %vm2956_vm5, %v5153_v3 }
 0xc9d   :  { %v5154_v49 = vmul.f32 %v5039_v19, %v10359_v20  ;;  %v5041_v63 = vpop.f32.mrb[201].mxu0  ;;  %5431 = vmatmul.mubr.f32.gmra.mrb[206].mxu1 %v5152_v62  ;;  %v10364_v19 = vld [vmem:[#allocation56_spill] sm:$0xff] }
 0xc9e   :  { %v5155_v56 = vmul.f32 %v5041_v63, %v10360_v25  ;;  %v10365_v63 = vld [vmem:[#allocation30_spill] sm:$0xff] }
 0xca0   :  { %v5045_v23 = vpop.f32.mrb[202].mxu0  ;;  %6765 = vmatprep.mubr.msk.f32.mxu1 %vm2956_vm5, %v5155_v56 }
 0xca1   :  { %v5156_v52 = vmul.f32 %v5045_v23, %v10361_v15  ;;  %v5047_v43 = vpop.f32.mrb[203].mxu0  ;;  %5436 = vmatmul.mubr.f32.gmra.mrb[208].mxu1 %v5154_v49  ;;  %v10366_v23 = vld [vmem:[#allocation32_spill] sm:$0xff] }
 0xca2   :  { %v5157_v45 = vmul.f32 %v5047_v43, %v10362_v26  ;;  %v10367_v43 = vld [vmem:[#allocation57_spill] sm:$0xff] }
 0xca4   :  { %v5051_v47 = vpop.f32.mrb[204].mxu0  ;;  %6766 = vmatprep.mubr.msk.f32.mxu1 %vm2956_vm5, %v5157_v45 }
 0xca5   :  { %v5158_v3 = vmul.f32 %v5051_v47, %v10363_v57  ;;  %v5053_v8 = vpop.f32.mrb[205].mxu0  ;;  %5441 = vmatmul.mubr.f32.gmra.mrb[210].mxu1 %v5156_v52  ;;  %v10368_v47 = vld [vmem:[#allocation58_spill] sm:$0xff] }
 0xca6   :  { %v5159_v62 = vmul.f32 %v5053_v8, %v10364_v19  ;;  %v10369_v8 = vld [vmem:[#allocation33_spill] sm:$0xff] }
 0xca8   :  { %v5057_v17 = vpop.f32.mrb[206].mxu0  ;;  %6767 = vmatprep.mubr.msk.f32.mxu1 %vm2956_vm5, %v5159_v62 }
 0xca9   :  { %v5160_v56 = vmul.f32 %v5057_v17, %v10365_v63  ;;  %v5059_v41 = vpop.f32.mrb[207].mxu0  ;;  %5446 = vmatmul.mubr.f32.gmra.mrb[212].mxu1 %v5158_v3  ;;  %v10370_v17 = vld [vmem:[#allocation34_spill] sm:$0xff] }
 0xcaa   :  { %v5161_v49 = vmul.f32 %v5059_v41, %v10366_v23  ;;  %v10371_v41 = vld [vmem:[#allocation59_spill] sm:$0xff] }
 0xcac   :  { %v5063_v15 = vpop.f32.mrb[208].mxu0  ;;  %6768 = vmatprep.mubr.msk.f32.mxu1 %vm2956_vm5, %v5161_v49 }
 0xcad   :  { %v5162_v45 = vmul.f32 %v5063_v15, %v10367_v43  ;;  %v5065_v26 = vpop.f32.mrb[209].mxu0  ;;  %5451 = vmatmul.mubr.f32.gmra.mrb[214].mxu1 %v5160_v56  ;;  %v10372_v15 = vld [vmem:[#allocation60_spill] sm:$0xff] }
 0xcae   :  { %v5163_v52 = vmul.f32 %v5065_v26, %v10368_v47  ;;  %v10373_v26 = vld [vmem:[#allocation36_spill] sm:$0xff] }
 0xcb0   :  { %v5069_v57 = vpop.f32.mrb[210].mxu0  ;;  %6769 = vmatprep.mubr.msk.f32.mxu1 %vm2956_vm5, %v5163_v52 }
 0xcb1   :  { %v5164_v62 = vmul.f32 %v5069_v57, %v10369_v8  ;;  %v5071_v19 = vpop.f32.mrb[211].mxu0  ;;  %5456 = vmatmul.mubr.f32.gmra.mrb[216].mxu1 %v5162_v45  ;;  %v10374_v57 = vld [vmem:[#allocation38_spill] sm:$0xff] }
 0xcb2   :  { %v5165_v3 = vmul.f32 %v5071_v19, %v10370_v17  ;;  %v10375_v19 = vld [vmem:[#allocation61_spill] sm:$0xff] }
 0xcb4   :  { %v5075_v63 = vpop.f32.mrb[212].mxu0  ;;  %6770 = vmatprep.mubr.msk.f32.mxu1 %vm2956_vm5, %v5165_v3 }
 0xcb5   :  { %v5166_v49 = vmul.f32 %v5075_v63, %v10371_v41  ;;  %v5077_v23 = vpop.f32.mrb[213].mxu0  ;;  %5461 = vmatmul.mubr.f32.gmra.mrb[218].mxu1 %v5164_v62 }
 0xcb6   :  { %v5167_v56 = vmul.f32 %v5077_v23, %v10372_v15  ;;  %v10376_v23 = vld [vmem:[#allocation39_spill] sm:$0xff] }
 0xcb8   :  { %v5081_v43 = vpop.f32.mrb[214].mxu0  ;;  %6771 = vmatprep.mubr.msk.f32.mxu1 %vm2956_vm5, %v5167_v56 }
 0xcb9   :  { %v5168_v52 = vmul.f32 %v5081_v43, %v10373_v26  ;;  %v5083_v47 = vpop.f32.mrb[215].mxu0  ;;  %5466 = vmatmul.mubr.f32.gmra.mrb[220].mxu1 %v5166_v49  ;;  %v10377_v43 = vld [vmem:[#allocation40_spill] sm:$0xff] }
 0xcba   :  { %v5169_v45 = vmul.f32 %v5083_v47, %v10374_v57  ;;  %v10378_v47 = vld [vmem:[#allocation63_spill] sm:$0xff] }
 0xcbc   :  { %v5087_v8 = vpop.f32.mrb[216].mxu0  ;;  %6772 = vmatprep.mubr.msk.f32.mxu1 %vm2956_vm5, %v5169_v45 }
 0xcbd   :  { %v5170_v3 = vmul.f32 %v5087_v8, %v10375_v19  ;;  %v5089_v17 = vpop.f32.mrb[217].mxu0  ;;  %5471 = vmatmul.mubr.f32.gmra.mrb[222].mxu1 %v5168_v52 }
 0xcbe   :  { %v5171_v63 = vmul.f32 %v5089_v17, %v10338_v12 }
 0xcc0   :  { %v5093_v62 = vpop.f32.mrb[218].mxu0  ;;  %6773 = vmatprep.mubr.msk.f32.mxu1 %vm2956_vm5, %v5171_v63 }
 0xcc1   :  { %v5172_v56 = vmul.f32 %v5093_v62, %v10376_v23  ;;  %v5095_v15 = vpop.f32.mrb[219].mxu0  ;;  %5476 = vmatmul.mubr.f32.gmra.mrb[224].mxu1 %v5170_v3 }
 0xcc2   :  { %v5173_v49 = vmul.f32 %v5095_v15, %v10377_v43 }
 0xcc4   :  { %v5099_v26 = vpop.f32.mrb[220].mxu0  ;;  %6774 = vmatprep.mubr.msk.f32.mxu1 %vm2956_vm5, %v5173_v49 }
 0xcc5   :  { %v5174_v45 = vmul.f32 %v5099_v26, %v10378_v47  ;;  %v5101_v57 = vpop.f32.mrb[221].mxu0  ;;  %5481 = vmatmul.mubr.f32.gmra.mrb[226].mxu1 %v5172_v56 }
 0xcc6   :  { %v5175_v8 = vmul.f32 %v5101_v57, %v10342_v42  ;;  %v7521_v57 = vld [vmem:[%s9938_s4 + $0x8] sm:$0xff] }
 0xcc8   :  { %v5105_v52 = vpop.f32.mrb[222].mxu0  ;;  %6775 = vmatprep.mubr.msk.f32.mxu1 %vm2956_vm5, %v5175_v8 }
 0xcc9   :  { %v5176_v17 = vmul.f32 %v5105_v52, %v10343_v30  ;;  %v5107_v63 = vpop.f32.mrb[223].mxu0  ;;  %5486 = vmatmul.mubr.f32.gmra.mrb[228].mxu1 %v5174_v45  ;;  %v10379_v45 = vld [vmem:[#allocation5_spill] sm:$0xff] }
 0xcca   :  { %v5177_v3 = vmul.f32 %v5107_v63, %v10344_v10 }
 0xccc   :  { %v5111_v62 = vpop.f32.mrb[224].mxu0  ;;  %6776 = vmatprep.mubr.msk.f32.mxu1 %vm2956_vm5, %v5177_v3  ;;  %v10380_v3 = vld [vmem:[#allocation6_spill] sm:$0xff] }
 0xccd   :  { %v5178_v15 = vmul.f32 %v5111_v62, %v10345_v2  ;;  %v5113_v49 = vpop.f32.mrb[225].mxu0  ;;  %5491 = vmatmul.mubr.f32.gmra.mrb[230].mxu1 %v5176_v17 }
 0xcce   :  { %v5179_v26 = vmul.f32 %v5113_v49, %v10346_v18 }
 0xcd0   :  { %6777 = vmatprep.mubr.msk.f32.mxu1 %vm2956_vm5, %v5179_v26 }
 0xcd1   :  { %5496 = vmatmul.mubr.f32.gmra.mrb[232].mxu1 %v5178_v15 }
 0xcd2   :  { %6366 = vmatprep.mubr.f32.mxu1 %v7521_v57  ;;  %v10381_v57 = vld [vmem:[#allocation7_spill] sm:$0xff] }
 0xd28   :  { %v5342_v56 = vpop.f32.mrb[170].mxu1 }
 0xd29   :  { %v9418_v8 = vadd.f32 %v5342_v56, %v10379_v45  ;;  %v5344_v52 = vpop.f32.mrb[171].mxu1 }
 0xd2b   :  { %v5533_v63 = vsel %vm2546_vm0, %v9418_v8, -inf }
 0xd2c   :  { %5534 = vmax.xlane.f32.xlu1 %v5533_v63  ;;  %v5347_v17 = vpop.f32.mrb[172].mxu1  ;;  %v10382_v63 = vld [vmem:[#allocation25_spill] sm:$0xff] }
 0xd2d   :  { %v9423_v62 = vadd.f32 %v5347_v17, %v10380_v3  ;;  %v5349_v49 = vpop.f32.mrb[173].mxu1 }
 0xd2f   :  { %v5536_v15 = vsel %vm2546_vm0, %v9423_v62, -inf }
 0xd30   :  { %5537 = vmax.xlane.f32.xlu0 %v5536_v15  ;;  %v5352_v26 = vpop.f32.mrb[174].mxu1  ;;  %v10383_v15 = vld [vmem:[#allocation77_spill] sm:$0xff] }
 0xd31   :  { %v9428_v18 = vadd.f32 %v5352_v26, %v10381_v57  ;;  %v5354_v56 = vpop.f32.mrb[175].mxu1 }
 0xd33   :  { %v5539_v45 = vsel %vm2546_vm0, %v9428_v18, -inf }
 0xd34   :  { %5540 = vmax.xlane.f32.xlu1 %v5539_v45  ;;  %v5357_v52 = vpop.f32.mrb[176].mxu1  ;;  %v10384_v45 = vld [vmem:[#allocation78_spill] sm:$0xff] }
 0xd35   :  { %v9433_v2 = vadd.f32 %v5357_v52, %v10382_v63  ;;  %v5359_v17 = vpop.f32.mrb[177].mxu1 }
 0xd37   :  { %v5542_v3 = vsel %vm2546_vm0, %v9433_v2, -inf }
 0xd38   :  { %5543 = vmax.xlane.f32.xlu0 %v5542_v3  ;;  %v5362_v49 = vpop.f32.mrb[178].mxu1  ;;  %v10385_v3 = vld [vmem:[#allocation79_spill] sm:$0xff] }
 0xd39   :  { %v9438_v10 = vadd.f32 %v5362_v49, %v10383_v15  ;;  %v5364_v26 = vpop.f32.mrb[179].mxu1 }
 0xd3b   :  { %v5545_v57 = vsel %vm2546_vm0, %v9438_v10, -inf }
 0xd3c   :  { %5546 = vmax.xlane.f32.xlu1 %v5545_v57  ;;  %v5367_v56 = vpop.f32.mrb[180].mxu1  ;;  %v10386_v57 = vld [vmem:[#allocation80_spill] sm:$0xff] }
 0xd3d   :  { %v9443_v30 = vadd.f32 %v5367_v56, %v10384_v45  ;;  %v5369_v52 = vpop.f32.mrb[181].mxu1 }
 0xd3f   :  { %v5548_v63 = vsel %vm2546_vm0, %v9443_v30, -inf }
 0xd40   :  { %5549 = vmax.xlane.f32.xlu0 %v5548_v63  ;;  %v5372_v17 = vpop.f32.mrb[182].mxu1  ;;  %v10387_v63 = vld [vmem:[#allocation81_spill] sm:$0xff] }
 0xd41   :  { %v9448_v42 = vadd.f32 %v5372_v17, %v10385_v3  ;;  %v5374_v49 = vpop.f32.mrb[183].mxu1 }
 0xd43   :  { %v5551_v15 = vsel %vm2546_vm0, %v9448_v42, -inf }
 0xd44   :  { %5552 = vmax.xlane.f32.xlu1 %v5551_v15  ;;  %v5377_v26 = vpop.f32.mrb[184].mxu1  ;;  %v10388_v15 = vld [vmem:[#allocation82_spill] sm:$0xff] }
 0xd45   :  { %v9453_v47 = vadd.f32 %v5377_v26, %v10386_v57  ;;  %v5379_v56 = vpop.f32.mrb[185].mxu1 }
 0xd47   :  { %v5554_v45 = vsel %vm2546_vm0, %v9453_v47, -inf }
 0xd48   :  { %5555 = vmax.xlane.f32.xlu0 %v5554_v45  ;;  %v5382_v52 = vpop.f32.mrb[186].mxu1  ;;  %v10389_v45 = vld [vmem:[#allocation83_spill] sm:$0xff] }
 0xd49   :  { %v9458_v43 = vadd.f32 %v5382_v52, %v10387_v63  ;;  %v5384_v17 = vpop.f32.mrb[187].mxu1 }
 0xd4b   :  { %v5557_v3 = vsel %vm2546_vm0, %v9458_v43, -inf }
 0xd4c   :  { %5558 = vmax.xlane.f32.xlu1 %v5557_v3  ;;  %v5387_v49 = vpop.f32.mrb[188].mxu1  ;;  %v10390_v3 = vld [vmem:[#allocation84_spill] sm:$0xff] }
 0xd4d   :  { %v9463_v23 = vadd.f32 %v5387_v49, %v10388_v15  ;;  %v5389_v26 = vpop.f32.mrb[189].mxu1 }
 0xd4f   :  { %v5560_v57 = vsel %vm2546_vm0, %v9463_v23, -inf }
 0xd50   :  { %5561 = vmax.xlane.f32.xlu0 %v5560_v57  ;;  %v5392_v56 = vpop.f32.mrb[190].mxu1  ;;  %v10391_v57 = vld [vmem:[#allocation85_spill] sm:$0xff] }
 0xd51   :  { %v9468_v12 = vadd.f32 %v5392_v56, %v10389_v45  ;;  %v5394_v52 = vpop.f32.mrb[191].mxu1 }
 0xd53   :  { %v5563_v63 = vsel %vm2546_vm0, %v9468_v12, -inf }
 0xd54   :  { %5564 = vmax.xlane.f32.xlu1 %v5563_v63  ;;  %v5397_v17 = vpop.f32.mrb[192].mxu1  ;;  %v10392_v63 = vld [vmem:[#allocation86_spill] sm:$0xff] }
 0xd55   :  { %v9473_v19 = vadd.f32 %v5397_v17, %v10390_v3  ;;  %v5399_v49 = vpop.f32.mrb[193].mxu1 }
 0xd57   :  { %v5566_v15 = vsel %vm2546_vm0, %v9473_v19, -inf }
 0xd58   :  { %5567 = vmax.xlane.f32.xlu0 %v5566_v15  ;;  %v5402_v26 = vpop.f32.mrb[194].mxu1  ;;  %v10393_v15 = vld [vmem:[#allocation87_spill] sm:$0xff] }
 0xd59   :  { %v9478_v41 = vadd.f32 %v5402_v26, %v10391_v57  ;;  %v5404_v56 = vpop.f32.mrb[195].mxu1 }
 0xd5b   :  { %v5569_v45 = vsel %vm2546_vm0, %v9478_v41, -inf }
 0xd5c   :  { %5570 = vmax.xlane.f32.xlu1 %v5569_v45  ;;  %v5407_v52 = vpop.f32.mrb[196].mxu1  ;;  %v10394_v45 = vld [vmem:[#allocation88_spill] sm:$0xff] }
 0xd5d   :  { %v9483_v25 = vadd.f32 %v5407_v52, %v10392_v63  ;;  %v5409_v17 = vpop.f32.mrb[197].mxu1 }
 0xd5f   :  { %v5572_v3 = vsel %vm2546_vm0, %v9483_v25, -inf }
 0xd60   :  { %5573 = vmax.xlane.f32.xlu0 %v5572_v3  ;;  %v5412_v49 = vpop.f32.mrb[198].mxu1  ;;  %v10395_v3 = vld [vmem:[#allocation89_spill] sm:$0xff] }
 0xd61   :  { %v9488_v20 = vadd.f32 %v5412_v49, %v10393_v15  ;;  %v5414_v26 = vpop.f32.mrb[199].mxu1 }
 0xd63   :  { %v5575_v57 = vsel %vm2546_vm0, %v9488_v20, -inf }
 0xd64   :  { %5576 = vmax.xlane.f32.xlu1 %v5575_v57  ;;  %v5417_v56 = vpop.f32.mrb[200].mxu1  ;;  %v10396_v57 = vld [vmem:[#allocation90_spill] sm:$0xff] }
 0xd65   :  { %v9493_v31 = vadd.f32 %v5417_v56, %v10394_v45  ;;  %v5419_v52 = vpop.f32.mrb[201].mxu1 }
 0xd67   :  { %v5578_v63 = vsel %vm2546_vm0, %v9493_v31, -inf }
 0xd68   :  { %5579 = vmax.xlane.f32.xlu0 %v5578_v63  ;;  %v5422_v17 = vpop.f32.mrb[202].mxu1  ;;  %v10397_v63 = vld [vmem:[#allocation91_spill] sm:$0xff] }
 0xd69   :  { %v9498_v11 = vadd.f32 %v5422_v17, %v10395_v3  ;;  %v5424_v49 = vpop.f32.mrb[203].mxu1 }
 0xd6b   :  { %v5581_v15 = vsel %vm2546_vm0, %v9498_v11, -inf }
 0xd6c   :  { %5582 = vmax.xlane.f32.xlu1 %v5581_v15  ;;  %v5427_v26 = vpop.f32.mrb[204].mxu1  ;;  %v10398_v15 = vld [vmem:[#allocation92_spill] sm:$0xff] }
 0xd6d   :  { %v9503_v44 = vadd.f32 %v5427_v26, %v10396_v57  ;;  %v5429_v56 = vpop.f32.mrb[205].mxu1 }
 0xd6f   :  { %v5584_v45 = vsel %vm2546_vm0, %v9503_v44, -inf }
 0xd70   :  { %5585 = vmax.xlane.f32.xlu0 %v5584_v45  ;;  %v5432_v52 = vpop.f32.mrb[206].mxu1  ;;  %v10399_v45 = vld [vmem:[#allocation93_spill] sm:$0xff] }
 0xd71   :  { %v9508_v50 = vadd.f32 %v5432_v52, %v10397_v63  ;;  %v5434_v17 = vpop.f32.mrb[207].mxu1 }
 0xd73   :  { %v5587_v3 = vsel %vm2546_vm0, %v9508_v50, -inf }
 0xd74   :  { %5588 = vmax.xlane.f32.xlu1 %v5587_v3  ;;  %v5437_v49 = vpop.f32.mrb[208].mxu1  ;;  %v10400_v3 = vld [vmem:[#allocation94_spill] sm:$0xff] }
 0xd75   :  { %v9513_v5 = vadd.f32 %v5437_v49, %v10398_v15  ;;  %v5439_v26 = vpop.f32.mrb[209].mxu1 }
 0xd77   :  { %v5590_v57 = vsel %vm2546_vm0, %v9513_v5, -inf }
 0xd78   :  { %5591 = vmax.xlane.f32.xlu0 %v5590_v57  ;;  %v5442_v56 = vpop.f32.mrb[210].mxu1  ;;  %v10401_v57 = vld [vmem:[#allocation95_spill] sm:$0xff] }
 0xd79   :  { %v9518_v53 = vadd.f32 %v5442_v56, %v10399_v45  ;;  %v5444_v52 = vpop.f32.mrb[211].mxu1 }
 0xd7b   :  { %v5593_v63 = vsel %vm2546_vm0, %v9518_v53, -inf }
 0xd7c   :  { %5594 = vmax.xlane.f32.xlu1 %v5593_v63  ;;  %v5447_v17 = vpop.f32.mrb[212].mxu1  ;;  %v10402_v63 = vld [vmem:[#allocation96_spill] sm:$0xff] }
 0xd7d   :  { %v9523_v24 = vadd.f32 %v5447_v17, %v10400_v3  ;;  %v5449_v49 = vpop.f32.mrb[213].mxu1 }
 0xd7f   :  { %v5596_v15 = vsel %vm2546_vm0, %v9523_v24, -inf }
 0xd80   :  { %5597 = vmax.xlane.f32.xlu0 %v5596_v15  ;;  %v5452_v26 = vpop.f32.mrb[214].mxu1  ;;  %v10403_v15 = vld [vmem:[#allocation97_spill] sm:$0xff] }
 0xd81   :  { %v9528_v27 = vadd.f32 %v5452_v26, %v10401_v57  ;;  %v5454_v56 = vpop.f32.mrb[215].mxu1 }
 0xd83   :  { %v5599_v45 = vsel %vm2546_vm0, %v9528_v27, -inf }
 0xd84   :  { %5600 = vmax.xlane.f32.xlu1 %v5599_v45  ;;  %v5457_v52 = vpop.f32.mrb[216].mxu1  ;;  %v10404_v45 = vld [vmem:[#allocation98_spill] sm:$0xff] }
 0xd85   :  { %v9533_v54 = vadd.f32 %v5457_v52, %v10402_v63  ;;  %v5459_v17 = vpop.f32.mrb[217].mxu1 }
 0xd87   :  { %v5602_v3 = vsel %vm2546_vm0, %v9533_v54, -inf }
 0xd88   :  { %5603 = vmax.xlane.f32.xlu1 %v5602_v3  ;;  %v5462_v49 = vpop.f32.mrb[218].mxu1  ;;  %v10405_v3 = vld [vmem:[#allocation99_spill] sm:$0xff] }
 0xd89   :  { %v9538_v6 = vadd.f32 %v5462_v49, %v10403_v15  ;;  %v5464_v26 = vpop.f32.mrb[219].mxu1 }
 0xd8b   :  { %v5605_v57 = vsel %vm2546_vm0, %v9538_v6, -inf }
 0xd8c   :  { %5606 = vmax.xlane.f32.xlu1 %v5605_v57  ;;  %v5467_v56 = vpop.f32.mrb[220].mxu1  ;;  %v10406_v57 = vld [vmem:[#allocation100_spill] sm:$0xff] }
 0xd8d   :  { %v9543_v51 = vadd.f32 %v5467_v56, %v10404_v45  ;;  %v5469_v52 = vpop.f32.mrb[221].mxu1 }
 0xd8f   :  { %v5608_v63 = vsel %vm2546_vm0, %v9543_v51, -inf }
 0xd90   :  { %5609 = vmax.xlane.f32.xlu1 %v5608_v63  ;;  %v5472_v17 = vpop.f32.mrb[222].mxu1  ;;  %v10407_v63 = vld [vmem:[#allocation101_spill] sm:$0xff] }
 0xd91   :  { %v9548_v13 = vadd.f32 %v5472_v17, %v10405_v3  ;;  %v5474_v49 = vpop.f32.mrb[223].mxu1 }
 0xd93   :  { %v5611_v15 = vsel %vm2546_vm0, %v9548_v13, -inf }
 0xd94   :  { %5612 = vmax.xlane.f32.xlu1 %v5611_v15  ;;  %v5477_v26 = vpop.f32.mrb[224].mxu1  ;;  %v10408_v15 = vld [vmem:[#allocation102_spill] sm:$0xff] }
 0xd95   :  { %v9553_v28 = vadd.f32 %v5477_v26, %v10406_v57  ;;  %v5479_v56 = vpop.f32.mrb[225].mxu1 }
 0xd97   :  { %v5614_v45 = vsel %vm2546_vm0, %v9553_v28, -inf }
 0xd98   :  { %5615 = vmax.xlane.f32.xlu1 %v5614_v45  ;;  %v5482_v52 = vpop.f32.mrb[226].mxu1  ;;  %v10409_v45 = vld [vmem:[#allocation103_spill] sm:$0xff] }
 0xd99   :  { %v9558_v61 = vadd.f32 %v5482_v52, %v10407_v63  ;;  %v5484_v17 = vpop.f32.mrb[227].mxu1 }
 0xd9b   :  { %v5617_v3 = vsel %vm2546_vm0, %v9558_v61, -inf }
 0xd9c   :  { %5618 = vmax.xlane.f32.xlu1 %v5617_v3  ;;  %v5487_v49 = vpop.f32.mrb[228].mxu1  ;;  %v10410_v3 = vld [vmem:[#allocation104_spill] sm:$0xff] }
 0xd9d   :  { %v9563_v14 = vadd.f32 %v5487_v49, %v10408_v15  ;;  %v5489_v26 = vpop.f32.mrb[229].mxu1 }
 0xd9f   :  { %v5620_v57 = vsel %vm2546_vm0, %v9563_v14, -inf }
 0xda0   :  { %5621 = vmax.xlane.f32.xlu1 %v5620_v57  ;;  %v5492_v56 = vpop.f32.mrb[230].mxu1 }
 0xda1   :  { %v9568_v37 = vadd.f32 %v5492_v56, %v10409_v45  ;;  %v5494_v52 = vpop.f32.mrb[231].mxu1 }
 0xda3   :  { %v5623_v63 = vsel %vm2546_vm0, %v9568_v37, -inf }
 0xda4   :  { %5624 = vmax.xlane.f32.xlu1 %v5623_v63  ;;  %v5497_v17 = vpop.f32.mrb[232].mxu1 }
 0xda5   :  { %v9573_v16 = vadd.f32 %v5497_v17, %v10410_v3  ;;  %v5499_v49 = vpop.f32.mrb[233].mxu1 }
 0xda7   :  { %v5626_v15 = vsel %vm2546_vm0, %v9573_v16, -inf }
 0xda8   :  { %5627 = vmax.xlane.f32.xlu1 %v5626_v15 }
 0xdb9   :  { %v5535_v26 = vpop.xlane.xlu1 %5534 }
 0xdba   :  { %v5629_v57 = vsub.f32 %v9418_v8, %v5535_v26 }
 0xdbc   :  { %v5661_v36 = vmul.f32 1.442695, %v5629_v57 }
 0xdbd   :  { %v5538_v56 = vpop.xlane.xlu0 %5537 }
 0xdbe   :  { %7355 = vpow2.f32 %v5661_v36  ;;  %v5630_v45 = vsub.f32 %v9423_v62, %v5538_v56 }
 0xdc0   :  { %v5663_v52 = vmul.f32 1.442695, %v5630_v45 }
 0xdc1   :  { %v5541_v22 = vpop.xlane.xlu1 %5540 }
 0xdc2   :  { %7357 = vpow2.f32 %v5663_v52  ;;  %v5631_v63 = vsub.f32 %v9428_v18, %v5541_v22 }
 0xdc4   :  { %v5665_v17 = vmul.f32 1.442695, %v5631_v63 }
 0xdc5   :  { %v5544_v3 = vpop.xlane.xlu0 %5543 }
 0xdc6   :  { %7359 = vpow2.f32 %v5665_v17  ;;  %v5632_v49 = vsub.f32 %v9433_v2, %v5544_v3 }
 0xdc8   :  { %v9581_v59 = vpop.eup %7355  ;;  %v5667_v15 = vmul.f32 1.442695, %v5632_v49 }
 0xdc9   :  { %v5547_v38 = vpop.xlane.xlu1 %5546  ;;  %v5725_v8 = vsel %vm2546_vm0, %v9581_v59, 0.0 }
 0xdca   :  { %7361 = vpow2.f32 %v5667_v15  ;;  %v5633_v36 = vsub.f32 %v9438_v10, %v5547_v38  ;;  %5726 = vadd.xlane.f32.xlu0 %v5725_v8 }
 0xdcc   :  { %v9586_v62 = vpop.eup %7357  ;;  %v5669_v26 = vmul.f32 1.442695, %v5633_v36 }
 0xdcd   :  { %v5550_v22 = vpop.xlane.xlu0 %5549  ;;  %v5728_v18 = vsel %vm2546_vm0, %v9586_v62, 0.0 }
 0xdce   :  { %7363 = vpow2.f32 %v5669_v26  ;;  %v5634_v2 = vsub.f32 %v9443_v30, %v5550_v22  ;;  %5729 = vadd.xlane.f32.xlu0 %v5728_v18 }
 0xdd0   :  { %v9591_v57 = vpop.eup %7359  ;;  %v5671_v56 = vmul.f32 1.442695, %v5634_v2 }
 0xdd1   :  { %v5553_v45 = vpop.xlane.xlu1 %5552  ;;  %v5731_v52 = vsel %vm2546_vm0, %v9591_v57, 0.0 }
 0xdd2   :  { %7365 = vpow2.f32 %v5671_v56  ;;  %v5635_v38 = vsub.f32 %v9448_v42, %v5553_v45  ;;  %5732 = vadd.xlane.f32.xlu0 %v5731_v52 }
 0xdd4   :  { %v9596_v10 = vpop.eup %7361  ;;  %v5673_v63 = vmul.f32 1.442695, %v5635_v38 }
 0xdd5   :  { %v5556_v17 = vpop.xlane.xlu0 %5555  ;;  %v5734_v3 = vsel %vm2546_vm0, %v9596_v10, 0.0 }
 0xdd6   :  { %7367 = vpow2.f32 %v5673_v63  ;;  %v5636_v30 = vsub.f32 %v9453_v47, %v5556_v17  ;;  %5735 = vadd.xlane.f32.xlu0 %v5734_v3 }
 0xdd8   :  { %v9601_v49 = vpop.eup %7363  ;;  %v5675_v15 = vmul.f32 1.442695, %v5636_v30 }
 0xdd9   :  { %v5559_v8 = vpop.xlane.xlu1 %5558  ;;  %v5737_v36 = vsel %vm2546_vm0, %v9601_v49, 0.0 }
 0xdda   :  { %7369 = vpow2.f32 %v5675_v15  ;;  %v5637_v42 = vsub.f32 %v9458_v43, %v5559_v8  ;;  %5738 = vadd.xlane.f32.xlu0 %v5737_v36 }
 0xddc   :  { %v9606_v26 = vpop.eup %7365  ;;  %v5677_v22 = vmul.f32 1.442695, %v5637_v42 }
 0xddd   :  { %v5562_v18 = vpop.xlane.xlu0 %5561  ;;  %v5740_v2 = vsel %vm2546_vm0, %v9606_v26, 0.0 }
 0xdde   :  { %7371 = vpow2.f32 %v5677_v22  ;;  %v5638_v47 = vsub.f32 %v9463_v23, %v5562_v18  ;;  %5741 = vadd.xlane.f32.xlu0 %v5740_v2 }
 0xde0   :  { %v9611_v56 = vpop.eup %7367  ;;  %v5679_v45 = vmul.f32 1.442695, %v5638_v47 }
 0xde1   :  { %v5565_v52 = vpop.xlane.xlu1 %5564  ;;  %v5743_v38 = vsel %vm2546_vm0, %v9611_v56, 0.0 }
 0xde2   :  { %7373 = vpow2.f32 %v5679_v45  ;;  %v5639_v43 = vsub.f32 %v9468_v12, %v5565_v52  ;;  %5744 = vadd.xlane.f32.xlu0 %v5743_v38 }
 0xde4   :  { %v9616_v63 = vpop.eup %7369  ;;  %v5681_v17 = vmul.f32 1.442695, %v5639_v43 }
 0xde5   :  { %v5568_v3 = vpop.xlane.xlu0 %5567  ;;  %v5746_v30 = vsel %vm2546_vm0, %v9616_v63, 0.0 }
 0xde6   :  { %7375 = vpow2.f32 %v5681_v17  ;;  %v5640_v23 = vsub.f32 %v9473_v19, %v5568_v3  ;;  %5747 = vadd.xlane.f32.xlu0 %v5746_v30 }
 0xde8   :  { %v9621_v15 = vpop.eup %7371  ;;  %v5683_v8 = vmul.f32 1.442695, %v5640_v23 }
 0xde9   :  { %v5571_v36 = vpop.xlane.xlu1 %5570  ;;  %v5749_v42 = vsel %vm2546_vm0, %v9621_v15, 0.0 }
 0xdea   :  { %7377 = vpow2.f32 %v5683_v8  ;;  %v5641_v12 = vsub.f32 %v9478_v41, %v5571_v36  ;;  %5750 = vadd.xlane.f32.xlu0 %v5749_v42 }
 0xdec   :  { %v9626_v22 = vpop.eup %7373  ;;  %v5685_v18 = vmul.f32 1.442695, %v5641_v12 }
 0xded   :  { %v5574_v2 = vpop.xlane.xlu0 %5573  ;;  %v5752_v47 = vsel %vm2546_vm0, %v9626_v22, 0.0 }
 0xdee   :  { %7379 = vpow2.f32 %v5685_v18  ;;  %v5642_v19 = vsub.f32 %v9483_v25, %v5574_v2  ;;  %5753 = vadd.xlane.f32.xlu0 %v5752_v47 }
 0xdf0   :  { %v9631_v45 = vpop.eup %7375  ;;  %v5687_v52 = vmul.f32 1.442695, %v5642_v19 }
 0xdf1   :  { %v5577_v38 = vpop.xlane.xlu1 %5576  ;;  %v5755_v43 = vsel %vm2546_vm0, %v9631_v45, 0.0 }
 0xdf2   :  { %7381 = vpow2.f32 %v5687_v52  ;;  %v5643_v41 = vsub.f32 %v9488_v20, %v5577_v38  ;;  %5756 = vadd.xlane.f32.xlu1 %v5755_v43 }
 0xdf4   :  { %v9636_v17 = vpop.eup %7377  ;;  %v5689_v3 = vmul.f32 1.442695, %v5643_v41 }
 0xdf5   :  { %v5580_v30 = vpop.xlane.xlu0 %5579  ;;  %v5758_v23 = vsel %vm2546_vm0, %v9636_v17, 0.0 }
 0xdf6   :  { %7383 = vpow2.f32 %v5689_v3  ;;  %v5644_v25 = vsub.f32 %v9493_v31, %v5580_v30  ;;  %5759 = vadd.xlane.f32.xlu0 %v5758_v23 }
 0xdf8   :  { %v9641_v8 = vpop.eup %7379  ;;  %v5691_v36 = vmul.f32 1.442695, %v5644_v25 }
 0xdf9   :  { %v5583_v42 = vpop.xlane.xlu1 %5582  ;;  %v5761_v12 = vsel %vm2546_vm0, %v9641_v8, 0.0 }
 0xdfa   :  { %7385 = vpow2.f32 %v5691_v36  ;;  %v5645_v20 = vsub.f32 %v9498_v11, %v5583_v42  ;;  %5762 = vadd.xlane.f32.xlu1 %v5761_v12 }
 0xdfc   :  { %v9646_v18 = vpop.eup %7381  ;;  %v5693_v2 = vmul.f32 1.442695, %v5645_v20 }
 0xdfd   :  { %v5586_v47 = vpop.xlane.xlu0 %5585  ;;  %v5764_v19 = vsel %vm2546_vm0, %v9646_v18, 0.0 }
 0xdfe   :  { %7387 = vpow2.f32 %v5693_v2  ;;  %v5646_v31 = vsub.f32 %v9503_v44, %v5586_v47  ;;  %5765 = vadd.xlane.f32.xlu0 %v5764_v19 }
 0xe00   :  { %v9651_v52 = vpop.eup %7383  ;;  %v5695_v38 = vmul.f32 1.442695, %v5646_v31 }
 0xe01   :  { %v5589_v43 = vpop.xlane.xlu1 %5588  ;;  %v5767_v41 = vsel %vm2546_vm0, %v9651_v52, 0.0 }
 0xe02   :  { %7389 = vpow2.f32 %v5695_v38  ;;  %v5647_v11 = vsub.f32 %v9508_v50, %v5589_v43  ;;  %5768 = vadd.xlane.f32.xlu1 %v5767_v41 }
 0xe04   :  { %v9656_v3 = vpop.eup %7385  ;;  %v5697_v30 = vmul.f32 1.442695, %v5647_v11 }
 0xe05   :  { %v5592_v23 = vpop.xlane.xlu0 %5591  ;;  %v5770_v25 = vsel %vm2546_vm0, %v9656_v3, 0.0 }
 0xe06   :  { %7391 = vpow2.f32 %v5697_v30  ;;  %v5648_v44 = vsub.f32 %v9513_v5, %v5592_v23  ;;  %5771 = vadd.xlane.f32.xlu0 %v5770_v25 }
 0xe08   :  { %v9661_v36 = vpop.eup %7387  ;;  %v5699_v42 = vmul.f32 1.442695, %v5648_v44 }
 0xe09   :  { %v5595_v12 = vpop.xlane.xlu1 %5594  ;;  %v5773_v20 = vsel %vm2546_vm0, %v9661_v36, 0.0 }
 0xe0a   :  { %7393 = vpow2.f32 %v5699_v42  ;;  %v5649_v50 = vsub.f32 %v9518_v53, %v5595_v12  ;;  %5774 = vadd.xlane.f32.xlu1 %v5773_v20 }
 0xe0c   :  { %v9666_v2 = vpop.eup %7389  ;;  %v5701_v47 = vmul.f32 1.442695, %v5649_v50 }
 0xe0d   :  { %v5598_v19 = vpop.xlane.xlu0 %5597  ;;  %v5776_v31 = vsel %vm2546_vm0, %v9666_v2, 0.0 }
 0xe0e   :  { %7395 = vpow2.f32 %v5701_v47  ;;  %v5650_v5 = vsub.f32 %v9523_v24, %v5598_v19  ;;  %5777 = vadd.xlane.f32.xlu0 %v5776_v31 }
 0xe10   :  { %v9671_v38 = vpop.eup %7391  ;;  %v5703_v43 = vmul.f32 1.442695, %v5650_v5 }
 0xe11   :  { %v5601_v41 = vpop.xlane.xlu1 %5600  ;;  %v5779_v11 = vsel %vm2546_vm0, %v9671_v38, 0.0 }
 0xe12   :  { %7397 = vpow2.f32 %v5703_v43  ;;  %v5651_v53 = vsub.f32 %v9528_v27, %v5601_v41  ;;  %5780 = vadd.xlane.f32.xlu1 %v5779_v11 }
 0xe14   :  { %v9676_v30 = vpop.eup %7393  ;;  %v5705_v23 = vmul.f32 1.442695, %v5651_v53 }
 0xe15   :  { %v5604_v25 = vpop.xlane.xlu1 %5603  ;;  %v5782_v44 = vsel %vm2546_vm0, %v9676_v30, 0.0 }
 0xe16   :  { %7399 = vpow2.f32 %v5705_v23  ;;  %v5652_v24 = vsub.f32 %v9533_v54, %v5604_v25  ;;  %5783 = vadd.xlane.f32.xlu0 %v5782_v44 }
 0xe18   :  { %v9681_v42 = vpop.eup %7395  ;;  %v5707_v12 = vmul.f32 1.442695, %v5652_v24 }
 0xe19   :  { %v5607_v20 = vpop.xlane.xlu1 %5606  ;;  %v5785_v50 = vsel %vm2546_vm0, %v9681_v42, 0.0 }
 0xe1a   :  { %7401 = vpow2.f32 %v5707_v12  ;;  %v5653_v27 = vsub.f32 %v9538_v6, %v5607_v20  ;;  %5786 = vadd.xlane.f32.xlu1 %v5785_v50 }
 0xe1c   :  { %v9686_v47 = vpop.eup %7397  ;;  %v5709_v19 = vmul.f32 1.442695, %v5653_v27 }
 0xe1d   :  { %v5610_v31 = vpop.xlane.xlu1 %5609  ;;  %v5788_v5 = vsel %vm2546_vm0, %v9686_v47, 0.0 }
 0xe1e   :  { %7403 = vpow2.f32 %v5709_v19  ;;  %v5654_v54 = vsub.f32 %v9543_v51, %v5610_v31  ;;  %5789 = vadd.xlane.f32.xlu0 %v5788_v5 }
 0xe20   :  { %v9691_v43 = vpop.eup %7399  ;;  %v5711_v41 = vmul.f32 1.442695, %v5654_v54 }
 0xe21   :  { %v5613_v11 = vpop.xlane.xlu1 %5612  ;;  %v5791_v53 = vsel %vm2546_vm0, %v9691_v43, 0.0 }
 0xe22   :  { %7405 = vpow2.f32 %v5711_v41  ;;  %v5655_v6 = vsub.f32 %v9548_v13, %v5613_v11  ;;  %5792 = vadd.xlane.f32.xlu1 %v5791_v53 }
 0xe24   :  { %v9696_v23 = vpop.eup %7401  ;;  %v5713_v25 = vmul.f32 1.442695, %v5655_v6 }
 0xe25   :  { %v5616_v44 = vpop.xlane.xlu1 %5615  ;;  %v5794_v24 = vsel %vm2546_vm0, %v9696_v23, 0.0 }
 0xe26   :  { %7407 = vpow2.f32 %v5713_v25  ;;  %v5656_v51 = vsub.f32 %v9553_v28, %v5616_v44  ;;  %5795 = vadd.xlane.f32.xlu0 %v5794_v24 }
 0xe28   :  { %v9701_v12 = vpop.eup %7403  ;;  %v5715_v20 = vmul.f32 1.442695, %v5656_v51 }
 0xe29   :  { %v5619_v50 = vpop.xlane.xlu1 %5618  ;;  %v5797_v27 = vsel %vm2546_vm0, %v9701_v12, 0.0 }
 0xe2a   :  { %7409 = vpow2.f32 %v5715_v20  ;;  %v5657_v13 = vsub.f32 %v9558_v61, %v5619_v50  ;;  %5798 = vadd.xlane.f32.xlu1 %v5797_v27 }
 0xe2c   :  { %v9706_v19 = vpop.eup %7405  ;;  %v5717_v31 = vmul.f32 1.442695, %v5657_v13 }
 0xe2d   :  { %v5622_v5 = vpop.xlane.xlu1 %5621  ;;  %v5800_v54 = vsel %vm2546_vm0, %v9706_v19, 0.0 }
 0xe2e   :  { %7411 = vpow2.f32 %v5717_v31  ;;  %v5658_v28 = vsub.f32 %v9563_v14, %v5622_v5  ;;  %5801 = vadd.xlane.f32.xlu0 %v5800_v54 }
 0xe30   :  { %v9711_v41 = vpop.eup %7407  ;;  %v5719_v11 = vmul.f32 1.442695, %v5658_v28 }
 0xe31   :  { %v5625_v53 = vpop.xlane.xlu1 %5624  ;;  %v5803_v6 = vsel %vm2546_vm0, %v9711_v41, 0.0 }
 0xe32   :  { %7413 = vpow2.f32 %v5719_v11  ;;  %v5659_v61 = vsub.f32 %v9568_v37, %v5625_v53  ;;  %5804 = vadd.xlane.f32.xlu1 %v5803_v6 }
 0xe34   :  { %v9716_v25 = vpop.eup %7409  ;;  %v5721_v44 = vmul.f32 1.442695, %v5659_v61 }
 0xe35   :  { %v5628_v24 = vpop.xlane.xlu1 %5627  ;;  %v5806_v51 = vsel %vm2546_vm0, %v9716_v25, 0.0 }
 0xe36   :  { %7415 = vpow2.f32 %v5721_v44  ;;  %v5660_v14 = vsub.f32 %v9573_v16, %v5628_v24  ;;  %5807 = vadd.xlane.f32.xlu0 %v5806_v51 }
 0xe38   :  { %v9721_v20 = vpop.eup %7411  ;;  %v5723_v50 = vmul.f32 1.442695, %v5660_v14 }
 0xe39   :  { %v5809_v27 = vsel %vm2546_vm0, %v9721_v20, 0.0 }
 0xe3a   :  { %7417 = vpow2.f32 %v5723_v50  ;;  %5810 = vadd.xlane.f32.xlu1 %v5809_v27 }
 0xe3c   :  { %v9725_v37 = vpop.eup %7413 }
 0xe3d   :  { %v5812_v13 = vsel %vm2546_vm0, %v9725_v37, 0.0 }
 0xe3e   :  { %5813 = vadd.xlane.f32.xlu0 %v5812_v13 }
 0xe40   :  { %v9729_v31 = vpop.eup %7415 }
 0xe41   :  { %v5815_v16 = vsel %vm2546_vm0, %v9729_v31, 0.0 }
 0xe42   :  { %5816 = vadd.xlane.f32.xlu1 %v5815_v16 }
 0xe44   :  { %v9733_v5 = vpop.eup %7417 }
 0xe45   :  { %v5818_v54 = vsel %vm2546_vm0, %v9733_v5, 0.0 }
 0xe46   :  { %5819 = vadd.xlane.f32.xlu0 %v5818_v54 }
 0xe57   :  { %v5727_v28 = vpop.xlane.xlu0 %5726 }
 0xe58   :  { %7419 = vrcp.f32 %v5727_v28 }
 0xe5b   :  { %v5730_v11 = vpop.xlane.xlu0 %5729 }
 0xe5c   :  { %7421 = vrcp.f32 %v5730_v11 }
 0xe5f   :  { %v5733_v53 = vpop.xlane.xlu0 %5732 }
 0xe60   :  { %7423 = vrcp.f32 %v5733_v53 }
 0xe62   :  { %v7420_v6 = vpop.eup %7419 }
 0xe63   :  { %v5822_v61 = vmul.f32 %v7420_v6, %v9581_v59  ;;  %v5736_v44 = vpop.xlane.xlu0 %5735 }
 0xe64   :  { %7425 = vrcp.f32 %v5736_v44 }
 0xe65   :  { %6780 = vmatmul.mubr.msk.f32.vlgmr.msra.gmra.mrb[226].mxu0 %vm2546_vm0, %v5822_v61 }
 0xe66   :  { %v7422_v24 = vpop.eup %7421  ;;  %6051 = vmatprep.mubr.f32.mxu0 %v10224_v0 }
 0xe67   :  { %v5739_v51 = vpop.xlane.xlu0 %5738  ;;  %v5824_v14 = vmul.f32 %v7422_v24, %v9586_v62 }
 0xe68   :  { %7427 = vrcp.f32 %v5739_v51 }
 0xe69   :  { %6781 = vmatmul.mubr.msk.f32.gmra.mrb[228].mxu0 %vm2546_vm0, %v5824_v14 }
 0xe6a   :  { %v7424_v50 = vpop.eup %7423  ;;  %6057 = vmatprep.mubr.f32.mxu0 %v10224_v0 }
 0xe6b   :  { %v5742_v27 = vpop.xlane.xlu0 %5741  ;;  %v5826_v13 = vmul.f32 %v7424_v50, %v9591_v57 }
 0xe6c   :  { %7429 = vrcp.f32 %v5742_v27 }
 0xe6d   :  { %6782 = vmatmul.mubr.msk.f32.gmra.mrb[230].mxu0 %vm2546_vm0, %v5826_v13 }
 0xe6e   :  { %v7426_v59 = vpop.eup %7425  ;;  %6063 = vmatprep.mubr.f32.mxu0 %v10224_v0 }
 0xe6f   :  { %v5745_v16 = vpop.xlane.xlu0 %5744  ;;  %v5828_v54 = vmul.f32 %v7426_v59, %v9596_v10 }
 0xe70   :  { %7431 = vrcp.f32 %v5745_v16 }
 0xe71   :  { %6783 = vmatmul.mubr.msk.f32.gmra.mrb[232].mxu0 %vm2546_vm0, %v5828_v54 }
 0xe72   :  { %v7428_v62 = vpop.eup %7427  ;;  %6069 = vmatprep.mubr.f32.mxu0 %v10224_v0 }
 0xe73   :  { %v5748_v28 = vpop.xlane.xlu0 %5747  ;;  %v5830_v11 = vmul.f32 %v7428_v62, %v9601_v49 }
 0xe74   :  { %7433 = vrcp.f32 %v5748_v28 }
 0xe75   :  { %6784 = vmatmul.mubr.msk.f32.gmra.mrb[234].mxu0 %vm2546_vm0, %v5830_v11 }
 0xe76   :  { %v7430_v57 = vpop.eup %7429  ;;  %6075 = vmatprep.mubr.f32.mxu0 %v10224_v0 }
 0xe77   :  { %v5751_v53 = vpop.xlane.xlu0 %5750  ;;  %v5832_v6 = vmul.f32 %v7430_v57, %v9606_v26 }
 0xe78   :  { %7435 = vrcp.f32 %v5751_v53 }
 0xe79   :  { %6785 = vmatmul.mubr.msk.f32.gmra.mrb[236].mxu0 %vm2546_vm0, %v5832_v6 }
 0xe7a   :  { %v7432_v10 = vpop.eup %7431  ;;  %6081 = vmatprep.mubr.f32.mxu0 %v10224_v0 }
 0xe7b   :  { %v5754_v61 = vpop.xlane.xlu0 %5753  ;;  %v5834_v44 = vmul.f32 %v7432_v10, %v9611_v56 }
 0xe7c   :  { %7437 = vrcp.f32 %v5754_v61 }
 0xe7d   :  { %6786 = vmatmul.mubr.msk.f32.gmra.mrb[238].mxu0 %vm2546_vm0, %v5834_v44 }
 0xe7e   :  { %v7434_v49 = vpop.eup %7433  ;;  %6087 = vmatprep.mubr.f32.mxu0 %v10224_v0 }
 0xe7f   :  { %v5757_v24 = vpop.xlane.xlu1 %5756  ;;  %v5836_v51 = vmul.f32 %v7434_v49, %v9616_v63 }
 0xe80   :  { %7439 = vrcp.f32 %v5757_v24 }
 0xe81   :  { %6787 = vmatmul.mubr.msk.f32.gmra.mrb[240].mxu0 %vm2546_vm0, %v5836_v51 }
 0xe82   :  { %v7436_v26 = vpop.eup %7435  ;;  %6093 = vmatprep.mubr.f32.mxu0 %v10224_v0 }
 0xe83   :  { %v5760_v14 = vpop.xlane.xlu0 %5759  ;;  %v5838_v50 = vmul.f32 %v7436_v26, %v9621_v15 }
 0xe84   :  { %7441 = vrcp.f32 %v5760_v14 }
 0xe85   :  { %6788 = vmatmul.mubr.msk.f32.gmra.mrb[242].mxu0 %vm2546_vm0, %v5838_v50 }
 0xe86   :  { %v7438_v56 = vpop.eup %7437  ;;  %6099 = vmatprep.mubr.f32.mxu0 %v10224_v0 }
 0xe87   :  { %v5763_v27 = vpop.xlane.xlu1 %5762  ;;  %v5840_v13 = vmul.f32 %v7438_v56, %v9626_v22 }
 0xe88   :  { %7443 = vrcp.f32 %v5763_v27 }
 0xe89   :  { %6789 = vmatmul.mubr.msk.f32.gmra.mrb[244].mxu0 %vm2546_vm0, %v5840_v13 }
 0xe8a   :  { %v7440_v63 = vpop.eup %7439  ;;  %6105 = vmatprep.mubr.f32.mxu0 %v10224_v0 }
 0xe8b   :  { %v5766_v59 = vpop.xlane.xlu0 %5765  ;;  %v5842_v16 = vmul.f32 %v7440_v63, %v9631_v45 }
 0xe8c   :  { %7445 = vrcp.f32 %v5766_v59 }
 0xe8d   :  { %6790 = vmatmul.mubr.msk.f32.gmra.mrb[246].mxu0 %vm2546_vm0, %v5842_v16 }
 0xe8e   :  { %v7442_v15 = vpop.eup %7441  ;;  %6111 = vmatprep.mubr.f32.mxu0 %v10224_v0 }
 0xe8f   :  { %v5769_v54 = vpop.xlane.xlu1 %5768  ;;  %v5844_v62 = vmul.f32 %v7442_v15, %v9636_v17 }
 0xe90   :  { %7447 = vrcp.f32 %v5769_v54 }
 0xe91   :  { %6791 = vmatmul.mubr.msk.f32.gmra.mrb[248].mxu0 %vm2546_vm0, %v5844_v62 }
 0xe92   :  { %v7444_v22 = vpop.eup %7443  ;;  %6117 = vmatprep.mubr.f32.mxu0 %v10224_v0 }
 0xe93   :  { %v5772_v28 = vpop.xlane.xlu0 %5771  ;;  %v5846_v11 = vmul.f32 %v7444_v22, %v9641_v8 }
 0xe94   :  { %7449 = vrcp.f32 %v5772_v28 }
 0xe95   :  { %6792 = vmatmul.mubr.msk.f32.gmra.mrb[250].mxu0 %vm2546_vm0, %v5846_v11 }
 0xe96   :  { %v7446_v45 = vpop.eup %7445  ;;  %6123 = vmatprep.mubr.f32.mxu0 %v10224_v0 }
 0xe97   :  { %v5775_v57 = vpop.xlane.xlu1 %5774  ;;  %v5848_v53 = vmul.f32 %v7446_v45, %v9646_v18 }
 0xe98   :  { %7451 = vrcp.f32 %v5775_v57 }
 0xe99   :  { %6793 = vmatmul.mubr.msk.f32.gmra.mrb[252].mxu0 %vm2546_vm0, %v5848_v53 }
 0xe9a   :  { %v7448_v17 = vpop.eup %7447  ;;  %6129 = vmatprep.mubr.f32.mxu0 %v10224_v0 }
 0xe9b   :  { %v5778_v6 = vpop.xlane.xlu0 %5777  ;;  %v5850_v10 = vmul.f32 %v7448_v17, %v9651_v52 }
 0xe9c   :  { %7453 = vrcp.f32 %v5778_v6 }
 0xe9d   :  { %6794 = vmatmul.mubr.msk.f32.gmra.mrb[254].mxu0 %vm2546_vm0, %v5850_v10 }
 0xe9e   :  { %v7450_v8 = vpop.eup %7449  ;;  %6135 = vmatprep.mubr.f32.mxu0 %v10224_v0 }
 0xe9f   :  { %v5852_v61 = vmul.f32 %v7450_v8, %v9656_v3  ;;  %v5781_v44 = vpop.xlane.xlu1 %5780 }
 0xea0   :  { %7455 = vrcp.f32 %v5781_v44 }
 0xea1   :  { %6795 = vmatmul.mubr.msk.f32.gmra.mrb[0].mxu0 %vm2546_vm0, %v5852_v61 }
 0xea2   :  { %v7452_v18 = vpop.eup %7451  ;;  %6141 = vmatprep.mubr.f32.mxu0 %v10224_v0 }
 0xea3   :  { %v5854_v49 = vmul.f32 %v7452_v18, %v9661_v36  ;;  %v5784_v24 = vpop.xlane.xlu0 %5783 }
 0xea4   :  { %7457 = vrcp.f32 %v5784_v24 }
 0xea5   :  { %6796 = vmatmul.mubr.msk.f32.gmra.mrb[2].mxu0 %vm2546_vm0, %v5854_v49 }
 0xea6   :  { %v7454_v52 = vpop.eup %7453  ;;  %6147 = vmatprep.mubr.f32.mxu0 %v10224_v0 }
 0xea7   :  { %v5856_v51 = vmul.f32 %v7454_v52, %v9666_v2  ;;  %v5787_v26 = vpop.xlane.xlu1 %5786 }
 0xea8   :  { %7459 = vrcp.f32 %v5787_v26 }
 0xea9   :  { %6797 = vmatmul.mubr.msk.f32.gmra.mrb[4].mxu0 %vm2546_vm0, %v5856_v51 }
 0xeaa   :  { %v7456_v3 = vpop.eup %7455  ;;  %6153 = vmatprep.mubr.f32.mxu0 %v10224_v0 }
 0xeab   :  { %v5858_v14 = vmul.f32 %v7456_v3, %v9671_v38  ;;  %v5790_v50 = vpop.xlane.xlu0 %5789 }
 0xeac   :  { %7461 = vrcp.f32 %v5790_v50 }
 0xead   :  { %6798 = vmatmul.mubr.msk.f32.gmra.mrb[6].mxu0 %vm2546_vm0, %v5858_v14 }
 0xeae   :  { %v7458_v36 = vpop.eup %7457  ;;  %6159 = vmatprep.mubr.f32.mxu0 %v10224_v0 }
 0xeaf   :  { %v5860_v56 = vmul.f32 %v7458_v36, %v9676_v30  ;;  %v5793_v27 = vpop.xlane.xlu1 %5792 }
 0xeb0   :  { %7463 = vrcp.f32 %v5793_v27 }
 0xeb1   :  { %6799 = vmatmul.mubr.msk.f32.gmra.mrb[8].mxu0 %vm2546_vm0, %v5860_v56 }
 0xeb2   :  { %v7460_v2 = vpop.eup %7459  ;;  %6165 = vmatprep.mubr.f32.mxu0 %v10224_v0 }
 0xeb3   :  { %v5862_v13 = vmul.f32 %v7460_v2, %v9681_v42  ;;  %v5796_v63 = vpop.xlane.xlu0 %5795 }
 0xeb4   :  { %7465 = vrcp.f32 %v5796_v63 }
 0xeb5   :  { %6800 = vmatmul.mubr.msk.f32.gmra.mrb[10].mxu0 %vm2546_vm0, %v5862_v13 }
 0xeb6   :  { %v7462_v38 = vpop.eup %7461  ;;  %6171 = vmatprep.mubr.f32.mxu0 %v10224_v0 }
 0xeb7   :  { %v5864_v59 = vmul.f32 %v7462_v38, %v9686_v47  ;;  %v5799_v16 = vpop.xlane.xlu1 %5798 }
 0xeb8   :  { %7467 = vrcp.f32 %v5799_v16 }
 0xeb9   :  { %6801 = vmatmul.mubr.msk.f32.gmra.mrb[12].mxu0 %vm2546_vm0, %v5864_v59 }
 0xeba   :  { %v7464_v30 = vpop.eup %7463  ;;  %6177 = vmatprep.mubr.f32.mxu0 %v10224_v0 }
 0xebb   :  { %v5866_v15 = vmul.f32 %v7464_v30, %v9691_v43  ;;  %v5802_v54 = vpop.xlane.xlu0 %5801 }
 0xebc   :  { %7469 = vrcp.f32 %v5802_v54 }
 0xebd   :  { %6802 = vmatmul.mubr.msk.f32.gmra.mrb[14].mxu0 %vm2546_vm0, %v5866_v15 }
 0xebe   :  { %v7466_v42 = vpop.eup %7465  ;;  %6183 = vmatprep.mubr.f32.mxu0 %v10224_v0 }
 0xebf   :  { %v5868_v62 = vmul.f32 %v7466_v42, %v9696_v23  ;;  %v5805_v22 = vpop.xlane.xlu1 %5804 }
 0xec0   :  { %7471 = vrcp.f32 %v5805_v22 }
 0xec1   :  { %6803 = vmatmul.mubr.msk.f32.gmra.mrb[16].mxu0 %vm2546_vm0, %v5868_v62 }
 0xec2   :  { %v7468_v47 = vpop.eup %7467  ;;  %6189 = vmatprep.mubr.f32.mxu0 %v10224_v0 }
 0xec3   :  { %v5870_v28 = vmul.f32 %v7468_v47, %v9701_v12  ;;  %v5808_v11 = vpop.xlane.xlu0 %5807 }
 0xec4   :  { %7473 = vrcp.f32 %v5808_v11 }
 0xec5   :  { %6804 = vmatmul.mubr.msk.f32.gmra.mrb[18].mxu0 %vm2546_vm0, %v5870_v28 }
 0xec6   :  { %v7470_v43 = vpop.eup %7469  ;;  %6195 = vmatprep.mubr.f32.mxu0 %v10224_v0 }
 0xec7   :  { %v5872_v45 = vmul.f32 %v7470_v43, %v9706_v19  ;;  %v5811_v57 = vpop.xlane.xlu1 %5810 }
 0xec8   :  { %7475 = vrcp.f32 %v5811_v57 }
 0xec9   :  { %6805 = vmatmul.mubr.msk.f32.gmra.mrb[20].mxu0 %vm2546_vm0, %v5872_v45 }
 0xeca   :  { %v7472_v23 = vpop.eup %7471  ;;  %6201 = vmatprep.mubr.f32.mxu0 %v10224_v0 }
 0xecb   :  { %v5874_v53 = vmul.f32 %v7472_v23, %v9711_v41  ;;  %v5814_v17 = vpop.xlane.xlu0 %5813  ;;  %v10411_v23 = vld [vmem:[#allocation14_spill] sm:$0xff] }
 0xecc   :  { %7477 = vrcp.f32 %v5814_v17 }
 0xecd   :  { %6806 = vmatmul.mubr.msk.f32.gmra.mrb[22].mxu0 %vm2546_vm0, %v5874_v53 }
 0xece   :  { %v7474_v12 = vpop.eup %7473  ;;  %6207 = vmatprep.mubr.f32.mxu0 %v10224_v0 }
 0xecf   :  { %v5876_v6 = vmul.f32 %v7474_v12, %v9716_v25  ;;  %v5817_v10 = vpop.xlane.xlu1 %5816 }
 0xed0   :  { %7479 = vrcp.f32 %v5817_v10 }
 0xed1   :  { %6807 = vmatmul.mubr.msk.f32.gmra.mrb[24].mxu0 %vm2546_vm0, %v5876_v6  ;;  %v10413_v6 = vld [vmem:[#allocation43_spill] sm:$0xff] }
 0xed2   :  { %v7476_v19 = vpop.eup %7475  ;;  %6213 = vmatprep.mubr.f32.mxu0 %v10224_v0 }
 0xed3   :  { %v5878_v8 = vmul.f32 %v7476_v19, %v9721_v20  ;;  %v5820_v61 = vpop.xlane.xlu0 %5819 }
 0xed4   :  { %7481 = vrcp.f32 %v5820_v61 }
 0xed5   :  { %6808 = vmatmul.mubr.msk.f32.gmra.mrb[26].mxu0 %vm2546_vm0, %v5878_v8 }
 0xed6   :  { %v7478_v41 = vpop.eup %7477  ;;  %6219 = vmatprep.mubr.f32.mxu0 %v10224_v0 }
 0xed7   :  { %v5880_v44 = vmul.f32 %v7478_v41, %v9725_v37 }
 0xed9   :  { %6809 = vmatmul.mubr.msk.f32.gmra.mrb[28].mxu0 %vm2546_vm0, %v5880_v44  ;;  %v10415_v44 = vld [vmem:[#allocation16_spill] sm:$0xff] }
 0xeda   :  { %v7480_v25 = vpop.eup %7479  ;;  %6225 = vmatprep.mubr.f32.mxu0 %v10224_v0 }
 0xedb   :  { %v5882_v18 = vmul.f32 %v7480_v25, %v9729_v31 }
 0xedd   :  { %6810 = vmatmul.mubr.msk.f32.gmra.mrb[30].mxu0 %vm2546_vm0, %v5882_v18  ;;  %v10416_v18 = vld [vmem:[#allocation45_spill] sm:$0xff] }
 0xede   :  { %v7482_v49 = vpop.eup %7481  ;;  %6231 = vmatprep.mubr.f32.mxu0 %v10224_v0 }
 0xedf   :  { %v5884_v20 = vmul.f32 %v7482_v49, %v9733_v5 }
 0xee1   :  { %6811 = vmatmul.mubr.msk.f32.gmra.mrb[32].mxu0 %vm2546_vm0, %v5884_v20 }
 0xf38   :  { %v6047_v24 = vpop.f32.mrb[226].mxu0 }
 0xf39   :  { %v6238_v52 = vmul.f32 %v6047_v24, %v10225_v40  ;;  %v6049_v37 = vpop.f32.mrb[227].mxu0  ;;  %v10417_v24 = vld [vmem:[#allocation46_spill] sm:$0xff] }
 0xf3a   :  { %v6239_v51 = vmul.f32 %v6049_v37, %v10226_v46 }
 0xf3c   :  { %v6053_v26 = vpop.f32.mrb[228].mxu0 }
 0xf3d   :  { %v6240_v3 = vmul.f32 %v6053_v26, %v8038_v58  ;;  %v6055_v14 = vpop.f32.mrb[229].mxu0 }
 0xf3e   :  { %v6241_v31 = vmul.f32 %v6055_v14, %v8044_v60 }
 0xf3f   :  { %v7096_v50 = vpack.c.bf16 %v6240_v3, %v6238_v52  ;;  %v10418_v3 = vld [vmem:[#allocation17_spill] sm:$0xff] }
 0xf40   :  { %v7094_v36 = vpack.c.bf16 %v6241_v31, %v6239_v51  ;;  %v6059_v56 = vpop.f32.mrb[230].mxu0 }
 0xf41   :  { %v6242_v27 = vmul.f32 %v6059_v56, %v10227_v39  ;;  %v6061_v5 = vpop.f32.mrb[231].mxu0 }
 0xf42   :  { %v6243_v2 = vmul.f32 %v6061_v5, %v10289_v1  ;;  %7095 = vmatprep.subr.bf16.mxu1 %v7094_v36 }
 0xf43   :  { %7097 = vmatpush1.bf16.msra.mxu1 %v7096_v50  ;;  %v10419_v50 = vld [vmem:[#allocation18_spill] sm:$0xff] }
 0xf44   :  { %v6065_v40 = vpop.f32.mrb[232].mxu0 }
 0xf45   :  { %v6244_v13 = vmul.f32 %v6065_v40, %v10290_v48  ;;  %v6067_v46 = vpop.f32.mrb[233].mxu0  ;;  %v10421_v40 = vld [vmem:[#allocation48_spill] sm:$0xff] }
 0xf46   :  { %v6245_v63 = vmul.f32 %v6067_v46, %v10230_v55 }
 0xf47   :  { %v7100_v58 = vpack.c.bf16 %v6244_v13, %v6242_v27  ;;  %v10420_v27 = vld [vmem:[#allocation47_spill] sm:$0xff] }
 0xf48   :  { %v7098_v38 = vpack.c.bf16 %v6245_v63, %v6243_v2  ;;  %v6071_v59 = vpop.f32.mrb[234].mxu0 }
 0xf49   :  { %v6246_v60 = vmul.f32 %v6071_v59, %v10291_v9  ;;  %v6073_v16 = vpop.f32.mrb[235].mxu0 }
 0xf4a   :  { %v6247_v30 = vmul.f32 %v6073_v16, %v10292_v7  ;;  %7099 = vmatprep.subr.bf16.mxu1 %v7098_v38  ;;  %v10422_v38 = vld [vmem:[#allocation19_spill] sm:$0xff]  ;;  %v10423_v16 = vld [vmem:[#allocation20_spill] sm:$0xff] }
 0xf4b   :  { %7101 = vmatpush1.bf16.msra.mxu1 %v7100_v58 }
 0xf4c   :  { %v6077_v39 = vpop.f32.mrb[236].mxu0 }
 0xf4d   :  { %v6248_v1 = vmul.f32 %v6077_v39, %v10293_v35  ;;  %v6079_v15 = vpop.f32.mrb[237].mxu0 }
 0xf4e   :  { %v6249_v54 = vmul.f32 %v6079_v15, %v10294_v34 }
 0xf4f   :  { %v7104_v48 = vpack.c.bf16 %v6248_v1, %v6246_v60  ;;  %v10424_v1 = vld [vmem:[#allocation49_spill] sm:$0xff] }
 0xf50   :  { %v7102_v42 = vpack.c.bf16 %v6249_v54, %v6247_v30  ;;  %v6083_v62 = vpop.f32.mrb[238].mxu0 }
 0xf51   :  { %v6250_v55 = vmul.f32 %v6083_v62, %v10295_v4  ;;  %v6085_v22 = vpop.f32.mrb[239].mxu0 }
 0xf52   :  { %v6251_v47 = vmul.f32 %v6085_v22, %v10296_v33  ;;  %7103 = vmatprep.subr.bf16.mxu1 %v7102_v42  ;;  %v10412_v33 = vld [vmem:[#allocation41_spill] sm:$0xff] }
 0xf53   :  { %7105 = vmatpush1.bf16.msra.mxu1 %v7104_v48  ;;  %v10425_v48 = vld [vmem:[#allocation50_spill] sm:$0xff] }
 0xf54   :  { %v6089_v9 = vpop.f32.mrb[240].mxu0 }
 0xf55   :  { %v6252_v7 = vmul.f32 %v6089_v9, %v10297_v29  ;;  %v6091_v28 = vpop.f32.mrb[241].mxu0 }
 0xf56   :  { %v6253_v11 = vmul.f32 %v6091_v28, %v10298_v32  ;;  %v10414_v32 = vld [vmem:[#allocation15_spill] sm:$0xff]  ;;  %v10427_v28 = vld [vmem:[#allocation22_spill] sm:$0xff] }
 0xf57   :  { %v7108_v35 = vpack.c.bf16 %v6252_v7, %v6250_v55 }
 0xf58   :  { %v7106_v43 = vpack.c.bf16 %v6253_v11, %v6251_v47  ;;  %v6095_v45 = vpop.f32.mrb[242].mxu0  ;;  %v10426_v47 = vld [vmem:[#allocation21_spill] sm:$0xff] }
 0xf59   :  { %v6254_v34 = vmul.f32 %v6095_v45, %v10299_v21  ;;  %v6097_v57 = vpop.f32.mrb[243].mxu0 }
 0xf5a   :  { %v6255_v53 = vmul.f32 %v6097_v57, %v10411_v23  ;;  %7107 = vmatprep.subr.bf16.mxu1 %v7106_v43  ;;  %v10428_v43 = vld [vmem:[#allocation51_spill] sm:$0xff]  ;;  %v10429_v57 = vld [vmem:[#allocation52_spill] sm:$0xff] }
 0xf5b   :  { %7109 = vmatpush1.bf16.msra.mxu1 %v7108_v35 }
 0xf5c   :  { %v6101_v4 = vpop.f32.mrb[244].mxu0 }
 0xf5d   :  { %v6256_v17 = vmul.f32 %v6101_v4, %v10412_v33  ;;  %v6103_v12 = vpop.f32.mrb[245].mxu0 }
 0xf5e   :  { %v6257_v10 = vmul.f32 %v6103_v12, %v10413_v6 }
 0xf5f   :  { %v7112_v29 = vpack.c.bf16 %v6256_v17, %v6254_v34  ;;  %v10430_v17 = vld [vmem:[#allocation24_spill] sm:$0xff] }
 0xf60   :  { %v7110_v19 = vpack.c.bf16 %v6257_v10, %v6255_v53  ;;  %v6107_v8 = vpop.f32.mrb[246].mxu0  ;;  %v10431_v10 = vld [vmem:[#allocation26_spill] sm:$0xff] }
 0xf61   :  { %v6258_v61 = vmul.f32 %v6107_v8, %v10414_v32  ;;  %v6109_v41 = vpop.f32.mrb[247].mxu0  ;;  %v10432_v8 = vld [vmem:[#allocation53_spill] sm:$0xff] }
 0xf62   :  { %v6259_v25 = vmul.f32 %v6109_v41, %v10415_v44  ;;  %7111 = vmatprep.subr.bf16.mxu1 %v7110_v19  ;;  %v10433_v41 = vld [vmem:[#allocation54_spill] sm:$0xff] }
 0xf63   :  { %7113 = vmatpush1.bf16.msra.mxu1 %v7112_v29 }
 0xf64   :  { %v6113_v21 = vpop.f32.mrb[248].mxu0 }
 0xf65   :  { %v6260_v49 = vmul.f32 %v6113_v21, %v10416_v18  ;;  %v6115_v20 = vpop.f32.mrb[249].mxu0 }
 0xf66   :  { %v6261_v52 = vmul.f32 %v6115_v20, %v10417_v24 }
 0xf67   :  { %v7116_v37 = vpack.c.bf16 %v6260_v49, %v6258_v61  ;;  %v10434_v49 = vld [vmem:[#allocation27_spill] sm:$0xff] }
 0xf68   :  { %v7114_v51 = vpack.c.bf16 %v6261_v52, %v6259_v25  ;;  %v6119_v26 = vpop.f32.mrb[250].mxu0  ;;  %v10435_v52 = vld [vmem:[#allocation28_spill] sm:$0xff] }
 0xf69   :  { %v6262_v14 = vmul.f32 %v6119_v26, %v10418_v3  ;;  %v6121_v31 = vpop.f32.mrb[251].mxu0  ;;  %v10436_v26 = vld [vmem:[#allocation55_spill] sm:$0xff] }
 0xf6a   :  { %v6263_v36 = vmul.f32 %v6121_v31, %v10419_v50  ;;  %7115 = vmatprep.subr.bf16.mxu1 %v7114_v51  ;;  %v10437_v31 = vld [vmem:[#allocation56_spill] sm:$0xff] }
 0xf6b   :  { %7117 = vmatpush1.bf16.msra.mxu1 %v7116_v37 }
 0xf6c   :  { %v6125_v56 = vpop.f32.mrb[252].mxu0 }
 0xf6d   :  { %v6264_v5 = vmul.f32 %v6125_v56, %v10420_v27  ;;  %v6127_v2 = vpop.f32.mrb[253].mxu0 }
 0xf6e   :  { %v6265_v13 = vmul.f32 %v6127_v2, %v10421_v40 }
 0xf6f   :  { %v7120_v46 = vpack.c.bf16 %v6264_v5, %v6262_v14  ;;  %v10438_v5 = vld [vmem:[#allocation30_spill] sm:$0xff] }
 0xf70   :  { %v7118_v63 = vpack.c.bf16 %v6265_v13, %v6263_v36  ;;  %v6131_v58 = vpop.f32.mrb[254].mxu0  ;;  %v10439_v13 = vld [vmem:[#allocation32_spill] sm:$0xff] }
 0xf71   :  { %v6266_v59 = vmul.f32 %v6131_v58, %v10422_v38  ;;  %v6133_v60 = vpop.f32.mrb[255].mxu0  ;;  %v10440_v58 = vld [vmem:[#allocation57_spill] sm:$0xff] }
 0xf72   :  { %v6267_v30 = vmul.f32 %v6133_v60, %v10423_v16  ;;  %7119 = vmatprep.subr.bf16.mxu1 %v7118_v63  ;;  %v10441_v60 = vld [vmem:[#allocation58_spill] sm:$0xff] }
 0xf73   :  { %7121 = vmatpush1.bf16.msra.mxu1 %v7120_v46 }
 0xf74   :  { %v6137_v39 = vpop.f32.mrb[0].mxu0 }
 0xf75   :  { %v6268_v15 = vmul.f32 %v6137_v39, %v10424_v1  ;;  %v6139_v54 = vpop.f32.mrb[1].mxu0 }
 0xf76   :  { %v6269_v42 = vmul.f32 %v6139_v54, %v10425_v48 }
 0xf77   :  { %v7124_v62 = vpack.c.bf16 %v6268_v15, %v6266_v59  ;;  %v10442_v15 = vld [vmem:[#allocation33_spill] sm:$0xff] }
 0xf78   :  { %v7122_v55 = vpack.c.bf16 %v6269_v42, %v6267_v30  ;;  %v6143_v22 = vpop.f32.mrb[2].mxu0  ;;  %v10443_v42 = vld [vmem:[#allocation34_spill] sm:$0xff] }
 0xf79   :  { %v6270_v9 = vmul.f32 %v6143_v22, %v10426_v47  ;;  %v6145_v7 = vpop.f32.mrb[3].mxu0  ;;  %v10444_v22 = vld [vmem:[#allocation59_spill] sm:$0xff] }
 0xf7a   :  { %v6271_v11 = vmul.f32 %v6145_v7, %v10427_v28  ;;  %7123 = vmatprep.subr.bf16.mxu1 %v7122_v55  ;;  %v10445_v7 = vld [vmem:[#allocation60_spill] sm:$0xff] }
 0xf7b   :  { %7125 = vmatpush1.bf16.msra.mxu1 %v7124_v62 }
 0xf7c   :  { %v6149_v35 = vpop.f32.mrb[4].mxu0 }
 0xf7d   :  { %v6272_v45 = vmul.f32 %v6149_v35, %v10428_v43  ;;  %v6151_v34 = vpop.f32.mrb[5].mxu0 }
 0xf7e   :  { %v6273_v23 = vmul.f32 %v6151_v34, %v10429_v57 }
 0xf7f   :  { %v7128_v53 = vpack.c.bf16 %v6272_v45, %v6270_v9  ;;  %v10446_v45 = vld [vmem:[#allocation36_spill] sm:$0xff] }
 0xf80   :  { %v7126_v4 = vpack.c.bf16 %v6273_v23, %v6271_v11  ;;  %v6155_v33 = vpop.f32.mrb[6].mxu0  ;;  %v10447_v23 = vld [vmem:[#allocation38_spill] sm:$0xff] }
 0xf81   :  { %v6274_v12 = vmul.f32 %v6155_v33, %v10430_v17  ;;  %v6157_v6 = vpop.f32.mrb[7].mxu0  ;;  %v10448_v33 = vld [vmem:[#allocation61_spill] sm:$0xff] }
 0xf82   :  { %v6275_v29 = vmul.f32 %v6157_v6, %v10431_v10  ;;  %7127 = vmatprep.subr.bf16.mxu1 %v7126_v4  ;;  %v10449_v6 = vld [vmem:[#allocation62_spill] sm:$0xff] }
 0xf83   :  { %7129 = vmatpush1.bf16.msra.mxu1 %v7128_v53 }
 0xf84   :  { %v6161_v19 = vpop.f32.mrb[8].mxu0 }
 0xf85   :  { %v6276_v32 = vmul.f32 %v6161_v19, %v10432_v8  ;;  %v6163_v61 = vpop.f32.mrb[9].mxu0 }
 0xf86   :  { %v6277_v44 = vmul.f32 %v6163_v61, %v10433_v41 }
 0xf87   :  { %v7132_v25 = vpack.c.bf16 %v6276_v32, %v6274_v12  ;;  %v10450_v32 = vld [vmem:[#allocation39_spill] sm:$0xff] }
 0xf88   :  { %v7130_v21 = vpack.c.bf16 %v6277_v44, %v6275_v29  ;;  %v6167_v18 = vpop.f32.mrb[10].mxu0  ;;  %v10451_v44 = vld [vmem:[#allocation40_spill] sm:$0xff] }
 0xf89   :  { %v6278_v20 = vmul.f32 %v6167_v18, %v10434_v49  ;;  %v6169_v24 = vpop.f32.mrb[11].mxu0  ;;  %v10452_v18 = vld [vmem:[#allocation63_spill] sm:$0xff] }
 0xf8a   :  { %v6279_v37 = vmul.f32 %v6169_v24, %v10435_v52  ;;  %7131 = vmatprep.subr.bf16.mxu1 %v7130_v21  ;;  %v10453_v24 = vld [vmem:[#allocation64_spill] sm:$0xff] }
 0xf8b   :  { %7133 = vmatpush1.bf16.msra.mxu1 %v7132_v25 }
 0xf8c   :  { %v6173_v51 = vpop.f32.mrb[12].mxu0 }
 0xf8d   :  { %v6280_v3 = vmul.f32 %v6173_v51, %v10436_v26  ;;  %v6175_v14 = vpop.f32.mrb[13].mxu0 }
 0xf8e   :  { %v6281_v50 = vmul.f32 %v6175_v14, %v10437_v31 }
 0xf8f   :  { %v7136_v36 = vpack.c.bf16 %v6280_v3, %v6278_v20  ;;  %v10454_v3 = vld [vmem:[#allocation42_spill] sm:$0xff] }
 0xf90   :  { %v7134_v56 = vpack.c.bf16 %v6281_v50, %v6279_v37  ;;  %v6179_v27 = vpop.f32.mrb[14].mxu0  ;;  %v10455_v50 = vld [vmem:[#allocation44_spill] sm:$0xff] }
 0xf91   :  { %v6282_v2 = vmul.f32 %v6179_v27, %v10438_v5  ;;  %v6181_v40 = vpop.f32.mrb[15].mxu0  ;;  %v10456_v27 = vld [vmem:[#allocation65_spill] sm:$0xff] }
 0xf92   :  { %v6283_v46 = vmul.f32 %v6181_v40, %v10439_v13  ;;  %7135 = vmatprep.subr.bf16.mxu1 %v7134_v56  ;;  %v10457_v40 = vld [vmem:[#allocation66_spill] sm:$0xff] }
 0xf93   :  { %7137 = vmatpush1.bf16.msra.mxu1 %v7136_v36 }
 0xf94   :  { %v6185_v63 = vpop.f32.mrb[16].mxu0 }
 0xf95   :  { %v6284_v38 = vmul.f32 %v6185_v63, %v10440_v58  ;;  %v6187_v59 = vpop.f32.mrb[17].mxu0  ;;  %v10458_v58 = vmov 0.0|0.0  }
 0xf96   :  { %v6285_v16 = vmul.f32 %v6187_v59, %v10441_v60  ;;  %v10459_v59 = vld [vmem:[#allocation67_spill] sm:$0xff]  ;;  %v10460_v60 = vld [vmem:[#allocation68_spill] sm:$0xff] }
 0xf97   :  { %v7140_v30 = vpack.c.bf16 %v6284_v38, %v6282_v2  ;;  %v7522_v38 = vld [vmem:[%s9938_s4] sm:$0xff] }
 0xf98   :  { %v7138_v39 = vpack.c.bf16 %v6285_v16, %v6283_v46  ;;  %v6191_v1 = vpop.f32.mrb[18].mxu0  ;;  %v10461_v16 = vld [vmem:[#allocation69_spill] sm:$0xff] }
 0xf99   :  { %v6286_v54 = vmul.f32 %v6191_v1, %v10442_v15  ;;  %v6193_v48 = vpop.f32.mrb[19].mxu0  ;;  %v10464_v1 = vld [vmem:[#allocation72_spill] sm:$0xff]  ;;  %v10465_v15 = vld [vmem:[#allocation73_spill] sm:$0xff] }
 0xf9a   :  { %v6287_v62 = vmul.f32 %v6193_v48, %v10443_v42  ;;  %7139 = vmatprep.subr.bf16.mxu1 %v7138_v39  ;;  %v10463_v39 = vld [vmem:[#allocation71_spill] sm:$0xff]  ;;  %v10468_v42 = vld [vmem:[#allocation76_spill] sm:$0xff] }
 0xf9b   :  { %7141 = vmatpush1.bf16.msra.mxu1 %v7140_v30  ;;  %v10462_v30 = vld [vmem:[#allocation70_spill] sm:$0xff]  ;;  %v10467_v48 = vld [vmem:[#allocation75_spill] sm:$0xff] }
 0xf9c   :  { %v6197_v55 = vpop.f32.mrb[20].mxu0 }
 0xf9d   :  { %v6288_v47 = vmul.f32 %v6197_v55, %v10444_v22  ;;  %v6199_v9 = vpop.f32.mrb[21].mxu0 }
 0xf9e   :  { %v6289_v28 = vmul.f32 %v6199_v9, %v10445_v7 }
 0xf9f   :  { %v7144_v11 = vpack.c.bf16 %v6288_v47, %v6286_v54  ;;  %v10466_v54 = vld [vmem:[#allocation74_spill] sm:$0xff] }
 0xfa0   :  { %v7142_v35 = vpack.c.bf16 %v6289_v28, %v6287_v62  ;;  %v6203_v43 = vpop.f32.mrb[22].mxu0  ;;  %v10469_v62 = vld [vmem:[#allocation2_spill] sm:$0xff]  ;;  %v10471_v28 = vld [vmem:[#allocation4_spill] sm:$0xff] }
 0xfa1   :  { %v6290_v34 = vmul.f32 %v6203_v43, %v10446_v45  ;;  %v6205_v57 = vpop.f32.mrb[23].mxu0 }
 0xfa2   :  { %v6291_v53 = vmul.f32 %v6205_v57, %v10447_v23  ;;  %7143 = vmatprep.subr.bf16.mxu1 %v7142_v35 }
 0xfa3   :  { %7145 = vmatpush1.bf16.msra.mxu1 %v7144_v11 }
 0xfa4   :  { %v6209_v4 = vpop.f32.mrb[24].mxu0 }
 0xfa5   :  { %v6292_v17 = vmul.f32 %v6209_v4, %v10448_v33  ;;  %v6211_v12 = vpop.f32.mrb[25].mxu0 }
 0xfa6   :  { %v6293_v10 = vmul.f32 %v6211_v12, %v10449_v6 }
 0xfa7   :  { %v7148_v29 = vpack.c.bf16 %v6292_v17, %v6290_v34 }
 0xfa8   :  { %v7146_v19 = vpack.c.bf16 %v6293_v10, %v6291_v53  ;;  %v6215_v8 = vpop.f32.mrb[26].mxu0 }
 0xfa9   :  { %v6294_v61 = vmul.f32 %v6215_v8, %v10450_v32  ;;  %v6217_v41 = vpop.f32.mrb[27].mxu0 }
 0xfaa   :  { %v6295_v25 = vmul.f32 %v6217_v41, %v10451_v44  ;;  %7147 = vmatprep.subr.bf16.mxu1 %v7146_v19 }
 0xfab   :  { %7149 = vmatpush1.bf16.msra.mxu1 %v7148_v29 }
 0xfac   :  { %v6221_v21 = vpop.f32.mrb[28].mxu0 }
 0xfad   :  { %v6296_v49 = vmul.f32 %v6221_v21, %v10452_v18  ;;  %v6223_v20 = vpop.f32.mrb[29].mxu0 }
 0xfae   :  { %v6297_v52 = vmul.f32 %v6223_v20, %v10453_v24 }
 0xfaf   :  { %v7152_v37 = vpack.c.bf16 %v6296_v49, %v6294_v61 }
 0xfb0   :  { %v7150_v51 = vpack.c.bf16 %v6297_v52, %v6295_v25  ;;  %v6227_v26 = vpop.f32.mrb[30].mxu0 }
 0xfb1   :  { %v6298_v14 = vmul.f32 %v6227_v26, %v10454_v3  ;;  %v6229_v31 = vpop.f32.mrb[31].mxu0 }
 0xfb2   :  { %v6299_v36 = vmul.f32 %v6229_v31, %v10455_v50  ;;  %7151 = vmatprep.subr.bf16.mxu1 %v7150_v51 }
 0xfb3   :  { %7153 = vmatpush1.bf16.msra.mxu1 %v7152_v37 }
 0xfb4   :  { %v6233_v56 = vpop.f32.mrb[32].mxu0 }
 0xfb5   :  { %v6300_v5 = vmul.f32 %v6233_v56, %v10456_v27  ;;  %v6235_v2 = vpop.f32.mrb[33].mxu0 }
 0xfb6   :  { %v6301_v13 = vmul.f32 %v6235_v2, %v10457_v40 }
 0xfb7   :  { %v7156_v46 = vpack.c.bf16 %v6300_v5, %v6298_v14 }
 0xfb8   :  { %v7154_v63 = vpack.c.bf16 %v6301_v13, %v6299_v36 }
 0xfba   :  { %7155 = vmatprep.subr.bf16.mxu1 %v7154_v63 }
 0xfbb   :  { %7157 = vmatpush1.bf16.msra.mxu1 %v7156_v46 }
 0xfbc   :  { %7158 = vmatprep.subr.bf16.mxu1 %v10458_v58 }
 0xfbe   :  { %6367 = vmatmul.mubr.f32.vlgmr.msra.gmra.mrb[234].mxu1 %v7522_v38 }
 0xfbf   :  { %7160 = vmatpush1.bf16.msra.mxu1 %v10459_v59 }
 0xfc0   :  { %7161 = vmatprep.subr.bf16.mxu1 %v10458_v58 }
 0xfc3   :  { %7163 = vmatpush1.bf16.msra.mxu1 %v10460_v60 }
 0xfc4   :  { %7164 = vmatprep.subr.bf16.mxu1 %v10458_v58 }
 0xfc7   :  { %7166 = vmatpush1.bf16.msra.mxu1 %v10461_v16 }
 0xfc8   :  { %7167 = vmatprep.subr.bf16.mxu1 %v10458_v58 }
 0xfcb   :  { %7169 = vmatpush1.bf16.msra.mxu1 %v10462_v30 }
 0xfcc   :  { %7170 = vmatprep.subr.bf16.mxu1 %v10458_v58 }
 0xfcf   :  { %7172 = vmatpush1.bf16.msra.mxu1 %v10463_v39 }
 0xfd0   :  { %7173 = vmatprep.subr.bf16.mxu1 %v10458_v58 }
 0xfd3   :  { %7175 = vmatpush1.bf16.msra.mxu1 %v10464_v1 }
 0xfd4   :  { %7176 = vmatprep.subr.bf16.mxu1 %v10458_v58 }
 0xfd7   :  { %7178 = vmatpush1.bf16.msra.mxu1 %v10465_v15 }
 0xfd8   :  { %7179 = vmatprep.subr.bf16.mxu1 %v10458_v58 }
 0xfdb   :  { %7181 = vmatpush1.bf16.msra.mxu1 %v10466_v54 }
 0xfdc   :  { %7182 = vmatprep.subr.bf16.mxu1 %v10458_v58 }
 0xfdf   :  { %7184 = vmatpush1.bf16.msra.mxu1 %v10467_v48 }
 0xfe0   :  { %7185 = vmatprep.subr.bf16.mxu1 %v10458_v58 }
 0xfe3   :  { %7187 = vmatpush1.bf16.msra.mxu1 %v10468_v42 }
 0xfe4   :  { %7190 = vmatprep.subr.msk.bf16.mxu1 %vm7792_vm4, %v10469_v62 }
0x1091   :  { %v6368_v22 = vpop.f32.mrb[234].mxu1 }
0x1092   :  { %v6370_v47 = vpop.f32.mrb[235].mxu1  ;;  %v6373_v7 = vmul.f32 %v6368_v22, %v6368_v22 }
0x1093   :  { %v6374_v9 = vmul.f32 %v6370_v47, %v6370_v47 }
0x1095   :  { %6812 = vmatprep.mubr.msk.f32.mxu1 %vm2956_vm5, %v6374_v9 }
0x1096   :  { %6443 = vmatmul.mubr.f32.vlgmr.msra.gmra.mrb[236].mxu1 %v6373_v7 }
0x1097   :  { %7193 = vmatpush1.bf16.msk.msra.mxu1 %vm7792_vm4, %v10471_v28  ;;  %6527 = vmatprep.mubr.f32.mxu1 %v10224_v0 }
0x1169   :  { %v6444_v11 = vpop.f32.mrb[236].mxu1 }
0x116a   :  { %7483 = vrsqrt.f32 %v6444_v11  ;;  %v6446_v35 = vpop.f32.mrb[237].mxu1  ;;  %vm6451_vm10 = vcmp.eq.f32.partialorder %v6444_v11, inf  ;;  %v6454_v34 = vand.u32 2147483648, %v6444_v11  ;;  %vm6453_vm11 = vcmp.eq.f32.partialorder %v6444_v11, 0.0 }
0x116b   :  { %v6448_v53 = vadd.f32 1.0, %v6444_v11 }
0x1174   :  { %v7484_v43 = vpop.eup %7483 }
0x1175   :  { %v6450_v45 = vmul.f32 %v7484_v43, %v6444_v11 }
0x1177   :  { %v6452_v57 = vsel %vm6451_vm10, %v6444_v11, %v6450_v45 }
0x1178   :  { %v6455_v23 = vsel %vm6453_vm11, %v6454_v34, %v6452_v57 }
0x1179   :  { %v6456_v4 = vadd.f32 1e-08, %v6455_v23 }
0x117b   :  { %v6457_v33 = vmul.f32 %v6456_v4, %v6448_v53 }
0x117d   :  { %7485 = vrcp.f32 %v6457_v33 }
0x1187   :  { %v7486_v17 = vpop.eup %7485 }
0x1188   :  { %v6459_v12 = vmul.f32 %v7486_v17, %v6444_v11 }
0x118a   :  { %6815 = vmatmul.mubr.msk.f32.vlgmr.msra.gmra.mrb[238].mxu1 %vm2546_vm0, %v6459_v12 }
0x125d   :  { %v6529_v6 = vpop.f32.mrb[238].mxu1 }
0x125e   :  { %v6534_v0 = vmul.f32 %v6529_v6, %v6368_v22  ;;  %v6531_v10 = vpop.f32.mrb[239].mxu1 }
0x125f   :  { %v6535_v29 = vmul.f32 %v6531_v10, %v6370_v47 }
0x1260   :  { %6536 = vst [vmem:[%s9941_s6] sm:$0xff] %v6534_v0 }
0x1261   :  { %6537 = vst.msk [vmem:[%s9941_s6 + $0x8] sm:$0xff] %vm2956_vm5, %v6535_v29 }

</bundles_post_ra>
